<compile_context>
chip_gen: v7x
topology: tpu7x:2x2x1
jax: 0.10.0
libtpu: 0.0.40
codegen_flags: <defaults>
</compile_context>

<pallas_src>
import functools

import jax
import jax.numpy as jnp
from jax import lax
from jax.experimental import pallas as pl
from jax.experimental.pallas import tpu as pltpu


def _sigmoid_ref(x):
    return 1.0 / (1.0 + jnp.exp(-x))


def _sigmoid_pl(x):
    # exp and the approximate reciprocal both run on the EUP slot (VPU stays free).
    return pl.reciprocal(1.0 + jnp.exp(-x), approx=True)


# ---------------------------------------------------------------------------
# Fused Conv2d(k=3,s=1,p=1) + ReLU + MaxPool2d(2,2) as a quadrant GEMM kernel.
#   x_ref: (4, M, K)  bf16  -- im2col patches for the 4 pool quadrants
#   w_ref: (K, C)     bf16
#   b_ref: (1, C)     f32
#   o_ref: (M, C)     bf16  -- pooled output rows ordered (n, ho, wo)
# ---------------------------------------------------------------------------
def _conv_relu_pool_kernel(x_ref, w_ref, b_ref, o_ref):
    w = w_ref[...]
    b = b_ref[...]

    def quad(q):
        y = jnp.dot(x_ref[q], w, preferred_element_type=jnp.float32) + b
        return jnp.maximum(y, 0.0)

    pooled = jnp.maximum(jnp.maximum(quad(0), quad(1)),
                         jnp.maximum(quad(2), quad(3)))
    o_ref[...] = pooled.astype(o_ref.dtype)


def conv_relu_pool(x_nhwc, w_oihw, bias):
    """x_nhwc: (N, H, W, Cin) -> pooled (N, H//2, W//2, Cout), bf16."""
    N, H, W, Cin = x_nhwc.shape
    Cout = w_oihw.shape[0]
    Ho, Wo = H // 2, W // 2

    x_nhwc = x_nhwc.astype(jnp.bfloat16)
    xp = jnp.pad(x_nhwc, ((0, 0), (1, 1), (1, 1), (0, 0)))
    # im2col (glue): column ordering (dy, dx, cin) matches the weight flatten below.
    cols = [xp[:, dy:dy + H, dx:dx + W, :] for dy in range(3) for dx in range(3)]
    patches = jnp.concatenate(cols, axis=-1)               # (N, H, W, 9*Cin)

    K = 9 * Cin
    Kp = ((K + 31) // 32) * 32                             # align contraction dim
    if Kp != K:
        patches = jnp.pad(patches, ((0, 0), (0, 0), (0, 0), (0, Kp - K)))

    # Split into the 4 pooling quadrants -> pooling becomes an epilogue max.
    quads = jnp.stack([patches[:, 0::2, 0::2, :],
                       patches[:, 0::2, 1::2, :],
                       patches[:, 1::2, 0::2, :],
                       patches[:, 1::2, 1::2, :]], axis=1)  # (N, 4, Ho, Wo, Kp)

    n_blk = 2 if N % 2 == 0 else 1                          # 2 parallel blocks -> both v7x TCs
    Nb = N // n_blk
    M_half = Nb * Ho * Wo
    quads = quads.reshape(n_blk, Nb, 4, Ho * Wo, Kp)
    quads = jnp.transpose(quads, (0, 2, 1, 3, 4)).reshape(n_blk, 4, M_half, Kp)

    w_mat = jnp.transpose(w_oihw, (2, 3, 1, 0)).reshape(K, Cout)
    if Kp != K:
        w_mat = jnp.pad(w_mat, ((0, Kp - K), (0, 0)))
    w_mat = w_mat.astype(jnp.bfloat16)
    b = bias.reshape(1, Cout).astype(jnp.float32)

    out = pl.pallas_call(
        _conv_relu_pool_kernel,
        out_shape=jax.ShapeDtypeStruct((n_blk, M_half, Cout), jnp.bfloat16),
        grid=(n_blk,),
        in_specs=[
            pl.BlockSpec((None, 4, M_half, Kp), lambda i: (i, 0, 0, 0)),
            pl.BlockSpec((Kp, Cout), lambda i: (0, 0)),
            pl.BlockSpec((1, Cout), lambda i: (0, 0)),
        ],
        out_specs=pl.BlockSpec((None, M_half, Cout), lambda i: (i, 0, 0)),
        compiler_params=pltpu.CompilerParams(dimension_semantics=("parallel",)),
    )(quads, w_mat, b)
    return out.reshape(N, Ho, Wo, Cout)


# ---------------------------------------------------------------------------
# Single-block GEMM + bias (used for the hoisted LSTM input projection).
# ---------------------------------------------------------------------------
def _gemm_bias_kernel(x_ref, w_ref, b_ref, o_ref):
    o_ref[...] = (jnp.dot(x_ref[...], w_ref[...], preferred_element_type=jnp.float32)
                  + b_ref[...])


def gemm_bias(x, w, b):
    M, K = x.shape
    N = w.shape[1]
    return pl.pallas_call(
        _gemm_bias_kernel,
        out_shape=jax.ShapeDtypeStruct((M, N), jnp.float32),
        grid=(1,),
        in_specs=[
            pl.BlockSpec((M, K), lambda i: (0, 0)),
            pl.BlockSpec((K, N), lambda i: (0, 0)),
            pl.BlockSpec((1, N), lambda i: (0, 0)),
        ],
        out_specs=pl.BlockSpec((M, N), lambda i: (0, 0)),
    )(x, w, b)


# ---------------------------------------------------------------------------
# LSTM recurrence (input projection precomputed) + fused, lane-dense heads.
# Grid iterates over time; h/c live in VMEM scratch across grid steps.
#   gx_ref : (B, 4H) f32   precomputed x_t @ W_ih^T + (b_ih + b_hh)
#   whh_ref: (H, 4H) bf16
#   wh_ref : (H, P)  bf16  policy|value weights padded to P=128 lanes
#   bh_ref : (1, P)  f32
# ---------------------------------------------------------------------------
def _lstm_heads_kernel(gx_ref, h0_ref, c0_ref, whh_ref, wh_ref, bh_ref,
                       heads_ref, hn_ref, cn_ref, h_scr, c_scr, *, hidden):
    t = pl.program_id(0)

    @pl.when(t == 0)
    def _():
        h_scr[...] = h0_ref[...]
        c_scr[...] = c0_ref[...]

    gates = gx_ref[...] + jnp.dot(h_scr[...].astype(jnp.bfloat16), whh_ref[...],
                                  preferred_element_type=jnp.float32)
    i = _sigmoid_pl(gates[:, 0:hidden])
    f = _sigmoid_pl(gates[:, hidden:2 * hidden])
    g = jnp.tanh(gates[:, 2 * hidden:3 * hidden])
    o = _sigmoid_pl(gates[:, 3 * hidden:4 * hidden])
    c_new = f * c_scr[...] + i * g
    h_new = o * jnp.tanh(c_new)
    c_scr[...] = c_new
    h_scr[...] = h_new

    @pl.when(t == pl.num_programs(0) - 1)
    def _():
        hn_ref[...] = h_new
        cn_ref[...] = c_new
        heads_ref[...] = (jnp.dot(h_new.astype(jnp.bfloat16), wh_ref[...],
                                  preferred_element_type=jnp.float32) + bh_ref[...])


def lstm_heads(gates_x, h0, c0, whh_t, w_heads, b_heads):
    T, B, G = gates_x.shape
    Hd = h0.shape[-1]
    P = w_heads.shape[-1]
    kernel = functools.partial(_lstm_heads_kernel, hidden=Hd)
    return pl.pallas_call(
        kernel,
        out_shape=(jax.ShapeDtypeStruct((B, P), jnp.float32),
                   jax.ShapeDtypeStruct((B, Hd), jnp.float32),
                   jax.ShapeDtypeStruct((B, Hd), jnp.float32)),
        grid=(T,),
        in_specs=[
            pl.BlockSpec((None, B, G), lambda t: (t, 0, 0)),   # gates_x[t]
            pl.BlockSpec((B, Hd), lambda t: (0, 0)),           # h0
            pl.BlockSpec((B, Hd), lambda t: (0, 0)),           # c0
            pl.BlockSpec((Hd, G), lambda t: (0, 0)),           # W_hh^T (bf16)
            pl.BlockSpec((Hd, P), lambda t: (0, 0)),           # heads W (bf16, padded)
            pl.BlockSpec((1, P), lambda t: (0, 0)),            # heads b
        ],
        out_specs=(pl.BlockSpec((B, P), lambda t: (0, 0)),
                   pl.BlockSpec((B, Hd), lambda t: (0, 0)),
                   pl.BlockSpec((B, Hd), lambda t: (0, 0))),
        scratch_shapes=[pltpu.VMEM((B, Hd), jnp.float32),
                        pltpu.VMEM((B, Hd), jnp.float32)],
        compiler_params=pltpu.CompilerParams(dimension_semantics=("arbitrary",)),
    )(gates_x, h0, c0, whh_t, w_heads, b_heads)


# ---------------------------------------------------------------------------
# Full forward pass (mirrors CNNLSTMPolicy.forward)
# ---------------------------------------------------------------------------
def forward(obs, h0, c0, p):
    B, T, C, H, W = obs.shape
    x = obs.reshape(B * T, C, H, W)
    x = jnp.transpose(x, (0, 2, 3, 1))                       # NCHW -> NHWC (glue)
    x = conv_relu_pool(x, p["conv1_w"], p["conv1_b"])        # (N, H/2, W/2, 32) bf16
    x = conv_relu_pool(x, p["conv2_w"], p["conv2_b"])        # (N, H/4, W/4, 64) bf16
    N, Hp, Wp, Cp = x.shape
    # flatten in (C, H, W) order to match PyTorch's .view on NCHW
    feats = jnp.transpose(x, (0, 3, 1, 2)).reshape(B, T, Cp * Hp * Wp)
    F = Cp * Hp * Wp
    x_seq = jnp.transpose(feats, (1, 0, 2)).reshape(T * B, F)  # (T*B, F), bf16

    Hd = h0.shape[-1]
    A = p["pol_w"].shape[0]

    # Hoisted input projection: one big GEMM over all timesteps.
    wih_t = p["lstm_wih"].T.astype(jnp.bfloat16)                      # (F, 4Hd)
    b_gates = (p["lstm_bih"] + p["lstm_bhh"]).reshape(1, -1).astype(jnp.float32)
    gates_x = gemm_bias(x_seq, wih_t, b_gates).reshape(T, B, 4 * Hd)  # f32

    whh_t = p["lstm_whh"].T.astype(jnp.bfloat16)                      # (Hd, 4Hd)

    # Policy + value heads fused into one lane-dense (Hd, 128)-padded matrix.
    P = ((A + 1 + 127) // 128) * 128
    w_heads = jnp.zeros((Hd, P), jnp.float32)
    w_heads = w_heads.at[:, :A].set(p["pol_w"].T).at[:, A:A + 1].set(p["val_w"].T)
    w_heads = w_heads.astype(jnp.bfloat16)
    b_heads = jnp.zeros((1, P), jnp.float32)
    b_heads = b_heads.at[0, :A].set(p["pol_b"]).at[0, A].set(p["val_b"][0])

    heads, hn, cn = lstm_heads(gates_x, h0[0], c0[0], whh_t, w_heads, b_heads)
    logits = heads[:, :A]
    value = heads[:, A:A + 1]
    return logits, value, (hn[None], cn[None])


# ---------------------------------------------------------------------------
# Pure-JAX reference (numerical sanity check only)
# ---------------------------------------------------------------------------
def reference_forward(obs, h0, c0, p):
    B, T, C, H, W = obs.shape
    x = obs.reshape(B * T, C, H, W)

    def conv(x, w, b):
        y = lax.conv_general_dilated(
            x, w, (1, 1), ((1, 1), (1, 1)),
            dimension_numbers=("NCHW", "OIHW", "NCHW"),
            precision=lax.Precision.HIGHEST)
        return jnp.maximum(y + b[None, :, None, None], 0.0)

    def pool(x):
        return lax.reduce_window(x, -jnp.inf, lax.max,
                                 (1, 1, 2, 2), (1, 1, 2, 2), "VALID")

    x = pool(conv(x, p["conv1_w"], p["conv1_b"]))
    x = pool(conv(x, p["conv2_w"], p["conv2_b"]))
    feats = x.reshape(B, T, -1)

    Hd = h0.shape[-1]
    h, c = h0[0], c0[0]
    for t in range(T):
        gates = (feats[:, t, :] @ p["lstm_wih"].T + p["lstm_bih"]
                 + h @ p["lstm_whh"].T + p["lstm_bhh"])
        i = _sigmoid_ref(gates[:, :Hd])
        f = _sigmoid_ref(gates[:, Hd:2 * Hd])
        g = jnp.tanh(gates[:, 2 * Hd:3 * Hd])
        o = _sigmoid_ref(gates[:, 3 * Hd:])
        c = f * c + i * g
        h = o * jnp.tanh(c)
    logits = h @ p["pol_w"].T + p["pol_b"]
    value = h @ p["val_w"].T + p["val_b"]
    return logits, value, (h[None], c[None])


if __name__ == "__main__":
    import numpy as np

    # feat_dim is hard-coded to 64*3*3 in the module, implying 12x12 inputs
    # (12 -> pool -> 6 -> pool -> 3).
    B, T, Cin, H, W = 2, 4, 3, 12, 12
    hidden, action = 128, 8
    s = 0.05

    key = jax.random.PRNGKey(0)
    keys = jax.random.split(key, 11)
    params = {
        "conv1_w": jax.random.normal(keys[0], (32, 3, 3, 3), jnp.float32) * s,
        "conv1_b": jax.random.normal(keys[1], (32,), jnp.float32) * s,
        "conv2_w": jax.random.normal(keys[2], (64, 32, 3, 3), jnp.float32) * s,
        "conv2_b": jax.random.normal(keys[3], (64,), jnp.float32) * s,
        "lstm_wih": jax.random.normal(keys[4], (4 * hidden, 64 * 3 * 3), jnp.float32) * s,
        "lstm_whh": jax.random.normal(keys[5], (4 * hidden, hidden), jnp.float32) * s,
        "lstm_bih": jax.random.normal(keys[6], (4 * hidden,), jnp.float32) * s,
        "lstm_bhh": jax.random.normal(keys[7], (4 * hidden,), jnp.float32) * s,
        "pol_w": jax.random.normal(keys[8], (action, hidden), jnp.float32) * s,
        "pol_b": jnp.zeros((action,), jnp.float32),
        "val_w": jax.random.normal(keys[9], (1, hidden), jnp.float32) * s,
        "val_b": jnp.zeros((1,), jnp.float32),
    }

    obs = jax.random.normal(keys[10], (B, T, Cin, H, W), jnp.float32)
    h0 = jnp.zeros((1, B, hidden), jnp.float32)   # init_hidden()
    c0 = jnp.zeros((1, B, hidden), jnp.float32)

    logits, value, (hn, cn) = jax.jit(forward)(obs, h0, c0, params)
    jax.block_until_ready((logits, value, hn, cn))

    with jax.default_matmul_precision("highest"):
        rl, rv, (rh, rc) = reference_forward(obs, h0, c0, params)
    np.testing.assert_allclose(np.asarray(logits), np.asarray(rl), rtol=2e-2, atol=2e-2)
    np.testing.assert_allclose(np.asarray(value), np.asarray(rv), rtol=2e-2, atol=2e-2)
    np.testing.assert_allclose(np.asarray(hn), np.asarray(rh), rtol=2e-2, atol=2e-2)
    np.testing.assert_allclose(np.asarray(cn), np.asarray(rc), rtol=2e-2, atol=2e-2)

    print("KERNEL_OK")
</pallas_src>

<mosaic_0001>
module attributes {stable_mosaic.version = 11 : i64} {
  func.func @_conv_relu_pool_kernel(%arg0: i32, %arg1: memref<1x4x144x32xbf16, #tpu.memory_space<vmem>>, %arg2: memref<32x32xbf16, #tpu.memory_space<vmem>>, %arg3: memref<1x32xf32, #tpu.memory_space<vmem>>, %arg4: memref<1x144x32xbf16, #tpu.memory_space<vmem>>) attributes {dimension_semantics = [#tpu.dimension_semantics<parallel>], iteration_bounds = array<i64: 2>, scalar_prefetch = 0 : i64, scratch_operands = 0 : i64, tpu.core_type = #tpu.core_type<tc>, window_params = [{transform_indices = @transform_0, window_bounds = array<i64: 1, 4, 144, 32>}, {pipeline_mode = #tpu.pipeline_mode<synchronous>, transform_indices = @transform_1, window_bounds = array<i64: 32, 32>}, {pipeline_mode = #tpu.pipeline_mode<synchronous>, transform_indices = @transform_2, window_bounds = array<i64: 1, 32>}, {transform_indices = @transform_3, window_bounds = array<i64: 1, 144, 32>}]} {
    %c0 = arith.constant 0 : index
    %c0_0 = arith.constant 0 : index
    %0 = vector.load %arg2[%c0, %c0_0] : memref<32x32xbf16, #tpu.memory_space<vmem>>, vector<32x32xbf16>
    %c0_1 = arith.constant 0 : index
    %c0_2 = arith.constant 0 : index
    %1 = vector.load %arg3[%c0_1, %c0_2] : memref<1x32xf32, #tpu.memory_space<vmem>>, vector<1x32xf32>
    %c0_3 = arith.constant 0 : index
    %c0_4 = arith.constant 0 : index
    %c0_5 = arith.constant 0 : index
    %c0_6 = arith.constant 0 : index
    %2 = vector.load %arg1[%c0_3, %c0_4, %c0_5, %c0_6] : memref<1x4x144x32xbf16, #tpu.memory_space<vmem>>, vector<1x1x144x32xbf16>
    %3 = vector.shape_cast %2 : vector<1x1x144x32xbf16> to vector<144x32xbf16>
    %cst = arith.constant dense<0.000000e+00> : vector<144x32xf32>
    %4 = tpu.matmul %3, %0, %cst {dimension_numbers = #tpu.dot_dimension_numbers<[1], [0], [0], [1], [0, 0, 1, 1], [], []>} : vector<144x32xbf16>, vector<32x32xbf16>, vector<144x32xf32> -> vector<144x32xf32>
    %5 = vector.broadcast %1 : vector<1x32xf32> to vector<144x32xf32>
    %6 = arith.addf %4, %5 : vector<144x32xf32>
    %cst_7 = arith.constant 0.000000e+00 : f32
    %7 = vector.broadcast %cst_7 : f32 to vector<144x32xf32>
    %8 = arith.maximumf %6, %7 : vector<144x32xf32>
    %c0_8 = arith.constant 0 : index
    %c1 = arith.constant 1 : index
    %c0_9 = arith.constant 0 : index
    %c0_10 = arith.constant 0 : index
    %9 = vector.load %arg1[%c0_8, %c1, %c0_9, %c0_10] : memref<1x4x144x32xbf16, #tpu.memory_space<vmem>>, vector<1x1x144x32xbf16>
    %10 = vector.shape_cast %9 : vector<1x1x144x32xbf16> to vector<144x32xbf16>
    %cst_11 = arith.constant dense<0.000000e+00> : vector<144x32xf32>
    %11 = tpu.matmul %10, %0, %cst_11 {dimension_numbers = #tpu.dot_dimension_numbers<[1], [0], [0], [1], [0, 0, 1, 1], [], []>} : vector<144x32xbf16>, vector<32x32xbf16>, vector<144x32xf32> -> vector<144x32xf32>
    %12 = vector.broadcast %1 : vector<1x32xf32> to vector<144x32xf32>
    %13 = arith.addf %11, %12 : vector<144x32xf32>
    %cst_12 = arith.constant 0.000000e+00 : f32
    %14 = vector.broadcast %cst_12 : f32 to vector<144x32xf32>
    %15 = arith.maximumf %13, %14 : vector<144x32xf32>
    %16 = arith.maximumf %8, %15 : vector<144x32xf32>
    %c0_13 = arith.constant 0 : index
    %c2 = arith.constant 2 : index
    %c0_14 = arith.constant 0 : index
    %c0_15 = arith.constant 0 : index
    %17 = vector.load %arg1[%c0_13, %c2, %c0_14, %c0_15] : memref<1x4x144x32xbf16, #tpu.memory_space<vmem>>, vector<1x1x144x32xbf16>
    %18 = vector.shape_cast %17 : vector<1x1x144x32xbf16> to vector<144x32xbf16>
    %cst_16 = arith.constant dense<0.000000e+00> : vector<144x32xf32>
    %19 = tpu.matmul %18, %0, %cst_16 {dimension_numbers = #tpu.dot_dimension_numbers<[1], [0], [0], [1], [0, 0, 1, 1], [], []>} : vector<144x32xbf16>, vector<32x32xbf16>, vector<144x32xf32> -> vector<144x32xf32>
    %20 = vector.broadcast %1 : vector<1x32xf32> to vector<144x32xf32>
    %21 = arith.addf %19, %20 : vector<144x32xf32>
    %cst_17 = arith.constant 0.000000e+00 : f32
    %22 = vector.broadcast %cst_17 : f32 to vector<144x32xf32>
    %23 = arith.maximumf %21, %22 : vector<144x32xf32>
    %c0_18 = arith.constant 0 : index
    %c3 = arith.constant 3 : index
    %c0_19 = arith.constant 0 : index
    %c0_20 = arith.constant 0 : index
    %24 = vector.load %arg1[%c0_18, %c3, %c0_19, %c0_20] : memref<1x4x144x32xbf16, #tpu.memory_space<vmem>>, vector<1x1x144x32xbf16>
    %25 = vector.shape_cast %24 : vector<1x1x144x32xbf16> to vector<144x32xbf16>
    %cst_21 = arith.constant dense<0.000000e+00> : vector<144x32xf32>
    %26 = tpu.matmul %25, %0, %cst_21 {dimension_numbers = #tpu.dot_dimension_numbers<[1], [0], [0], [1], [0, 0, 1, 1], [], []>} : vector<144x32xbf16>, vector<32x32xbf16>, vector<144x32xf32> -> vector<144x32xf32>
    %27 = vector.broadcast %1 : vector<1x32xf32> to vector<144x32xf32>
    %28 = arith.addf %26, %27 : vector<144x32xf32>
    %cst_22 = arith.constant 0.000000e+00 : f32
    %29 = vector.broadcast %cst_22 : f32 to vector<144x32xf32>
    %30 = arith.maximumf %28, %29 : vector<144x32xf32>
    %31 = arith.maximumf %23, %30 : vector<144x32xf32>
    %32 = arith.maximumf %16, %31 : vector<144x32xf32>
    %33 = arith.truncf %32 : vector<144x32xf32> to vector<144x32xbf16>
    %c0_23 = arith.constant 0 : index
    %c0_24 = arith.constant 0 : index
    %c0_25 = arith.constant 0 : index
    %34 = vector.load %arg4[%c0_23, %c0_24, %c0_25] : memref<1x144x32xbf16, #tpu.memory_space<vmem>>, vector<1x144x32xbf16>
    %35 = vector.shape_cast %34 : vector<1x144x32xbf16> to vector<144x32xbf16>
    %36 = vector.shape_cast %33 : vector<144x32xbf16> to vector<1x144x32xbf16>
    tpu.vector_store %arg4[%c0_23, %c0_24, %c0_25], %36 {strides = array<i32>} : memref<1x144x32xbf16, #tpu.memory_space<vmem>>, vector<1x144x32xbf16>,
    return
  }
  func.func @transform_0(%arg0: i32) -> (i32, i32, i32, i32) {
    %c0_i32 = arith.constant 0 : i32
    %c0_i32_0 = arith.constant 0 : i32
    %c0_i32_1 = arith.constant 0 : i32
    %c0_i32_2 = arith.constant 0 : i32
    return %arg0, %c0_i32, %c0_i32_0, %c0_i32_1 : i32, i32, i32, i32
  }
  func.func @transform_1(%arg0: i32) -> (i32, i32) {
    %c0_i32 = arith.constant 0 : i32
    %c0_i32_0 = arith.constant 0 : i32
    %c0_i32_1 = arith.constant 0 : i32
    return %c0_i32, %c0_i32_0 : i32, i32
  }
  func.func @transform_2(%arg0: i32) -> (i32, i32) {
    %c0_i32 = arith.constant 0 : i32
    %c0_i32_0 = arith.constant 0 : i32
    %c0_i32_1 = arith.constant 0 : i32
    return %c0_i32, %c0_i32_0 : i32, i32
  }
  func.func @transform_3(%arg0: i32) -> (i32, i32, i32) {
    %c0_i32 = arith.constant 0 : i32
    %c0_i32_0 = arith.constant 0 : i32
    %c0_i32_1 = arith.constant 0 : i32
    return %arg0, %c0_i32, %c0_i32_0 : i32, i32, i32
  }
}

module attributes {stable_mosaic.version = 11 : i64} {
  func.func @_conv_relu_pool_kernel(%arg0: i32, %arg1: memref<1x4x36x288xbf16, #tpu.memory_space<vmem>>, %arg2: memref<288x64xbf16, #tpu.memory_space<vmem>>, %arg3: memref<1x64xf32, #tpu.memory_space<vmem>>, %arg4: memref<1x36x64xbf16, #tpu.memory_space<vmem>>) attributes {dimension_semantics = [#tpu.dimension_semantics<parallel>], iteration_bounds = array<i64: 2>, scalar_prefetch = 0 : i64, scratch_operands = 0 : i64, tpu.core_type = #tpu.core_type<tc>, window_params = [{transform_indices = @transform_0, window_bounds = array<i64: 1, 4, 36, 288>}, {pipeline_mode = #tpu.pipeline_mode<synchronous>, transform_indices = @transform_1, window_bounds = array<i64: 288, 64>}, {pipeline_mode = #tpu.pipeline_mode<synchronous>, transform_indices = @transform_2, window_bounds = array<i64: 1, 64>}, {transform_indices = @transform_3, window_bounds = array<i64: 1, 36, 64>}]} {
    %c0 = arith.constant 0 : index
    %c0_0 = arith.constant 0 : index
    %0 = vector.load %arg2[%c0, %c0_0] : memref<288x64xbf16, #tpu.memory_space<vmem>>, vector<288x64xbf16>
    %c0_1 = arith.constant 0 : index
    %c0_2 = arith.constant 0 : index
    %1 = vector.load %arg3[%c0_1, %c0_2] : memref<1x64xf32, #tpu.memory_space<vmem>>, vector<1x64xf32>
    %c0_3 = arith.constant 0 : index
    %c0_4 = arith.constant 0 : index
    %c0_5 = arith.constant 0 : index
    %c0_6 = arith.constant 0 : index
    %2 = vector.load %arg1[%c0_3, %c0_4, %c0_5, %c0_6] : memref<1x4x36x288xbf16, #tpu.memory_space<vmem>>, vector<1x1x36x288xbf16>
    %3 = vector.shape_cast %2 : vector<1x1x36x288xbf16> to vector<36x288xbf16>
    %cst = arith.constant dense<0.000000e+00> : vector<36x64xf32>
    %4 = tpu.matmul %3, %0, %cst {dimension_numbers = #tpu.dot_dimension_numbers<[1], [0], [0], [1], [0, 0, 1, 1], [], []>} : vector<36x288xbf16>, vector<288x64xbf16>, vector<36x64xf32> -> vector<36x64xf32>
    %5 = vector.broadcast %1 : vector<1x64xf32> to vector<36x64xf32>
    %6 = arith.addf %4, %5 : vector<36x64xf32>
    %cst_7 = arith.constant 0.000000e+00 : f32
    %7 = vector.broadcast %cst_7 : f32 to vector<36x64xf32>
    %8 = arith.maximumf %6, %7 : vector<36x64xf32>
    %c0_8 = arith.constant 0 : index
    %c1 = arith.constant 1 : index
    %c0_9 = arith.constant 0 : index
    %c0_10 = arith.constant 0 : index
    %9 = vector.load %arg1[%c0_8, %c1, %c0_9, %c0_10] : memref<1x4x36x288xbf16, #tpu.memory_space<vmem>>, vector<1x1x36x288xbf16>
    %10 = vector.shape_cast %9 : vector<1x1x36x288xbf16> to vector<36x288xbf16>
    %cst_11 = arith.constant dense<0.000000e+00> : vector<36x64xf32>
    %11 = tpu.matmul %10, %0, %cst_11 {dimension_numbers = #tpu.dot_dimension_numbers<[1], [0], [0], [1], [0, 0, 1, 1], [], []>} : vector<36x288xbf16>, vector<288x64xbf16>, vector<36x64xf32> -> vector<36x64xf32>
    %12 = vector.broadcast %1 : vector<1x64xf32> to vector<36x64xf32>
    %13 = arith.addf %11, %12 : vector<36x64xf32>
    %cst_12 = arith.constant 0.000000e+00 : f32
    %14 = vector.broadcast %cst_12 : f32 to vector<36x64xf32>
    %15 = arith.maximumf %13, %14 : vector<36x64xf32>
    %16 = arith.maximumf %8, %15 : vector<36x64xf32>
    %c0_13 = arith.constant 0 : index
    %c2 = arith.constant 2 : index
    %c0_14 = arith.constant 0 : index
    %c0_15 = arith.constant 0 : index
    %17 = vector.load %arg1[%c0_13, %c2, %c0_14, %c0_15] : memref<1x4x36x288xbf16, #tpu.memory_space<vmem>>, vector<1x1x36x288xbf16>
    %18 = vector.shape_cast %17 : vector<1x1x36x288xbf16> to vector<36x288xbf16>
    %cst_16 = arith.constant dense<0.000000e+00> : vector<36x64xf32>
    %19 = tpu.matmul %18, %0, %cst_16 {dimension_numbers = #tpu.dot_dimension_numbers<[1], [0], [0], [1], [0, 0, 1, 1], [], []>} : vector<36x288xbf16>, vector<288x64xbf16>, vector<36x64xf32> -> vector<36x64xf32>
    %20 = vector.broadcast %1 : vector<1x64xf32> to vector<36x64xf32>
    %21 = arith.addf %19, %20 : vector<36x64xf32>
    %cst_17 = arith.constant 0.000000e+00 : f32
    %22 = vector.broadcast %cst_17 : f32 to vector<36x64xf32>
    %23 = arith.maximumf %21, %22 : vector<36x64xf32>
    %c0_18 = arith.constant 0 : index
    %c3 = arith.constant 3 : index
    %c0_19 = arith.constant 0 : index
    %c0_20 = arith.constant 0 : index
    %24 = vector.load %arg1[%c0_18, %c3, %c0_19, %c0_20] : memref<1x4x36x288xbf16, #tpu.memory_space<vmem>>, vector<1x1x36x288xbf16>
    %25 = vector.shape_cast %24 : vector<1x1x36x288xbf16> to vector<36x288xbf16>
    %cst_21 = arith.constant dense<0.000000e+00> : vector<36x64xf32>
    %26 = tpu.matmul %25, %0, %cst_21 {dimension_numbers = #tpu.dot_dimension_numbers<[1], [0], [0], [1], [0, 0, 1, 1], [], []>} : vector<36x288xbf16>, vector<288x64xbf16>, vector<36x64xf32> -> vector<36x64xf32>
    %27 = vector.broadcast %1 : vector<1x64xf32> to vector<36x64xf32>
    %28 = arith.addf %26, %27 : vector<36x64xf32>
    %cst_22 = arith.constant 0.000000e+00 : f32
    %29 = vector.broadcast %cst_22 : f32 to vector<36x64xf32>
    %30 = arith.maximumf %28, %29 : vector<36x64xf32>
    %31 = arith.maximumf %23, %30 : vector<36x64xf32>
    %32 = arith.maximumf %16, %31 : vector<36x64xf32>
    %33 = arith.truncf %32 : vector<36x64xf32> to vector<36x64xbf16>
    %c0_23 = arith.constant 0 : index
    %c0_24 = arith.constant 0 : index
    %c0_25 = arith.constant 0 : index
    %34 = vector.load %arg4[%c0_23, %c0_24, %c0_25] : memref<1x36x64xbf16, #tpu.memory_space<vmem>>, vector<1x36x64xbf16>
    %35 = vector.shape_cast %34 : vector<1x36x64xbf16> to vector<36x64xbf16>
    %36 = vector.shape_cast %33 : vector<36x64xbf16> to vector<1x36x64xbf16>
    tpu.vector_store %arg4[%c0_23, %c0_24, %c0_25], %36 {strides = array<i32>} : memref<1x36x64xbf16, #tpu.memory_space<vmem>>, vector<1x36x64xbf16>,
    return
  }
  func.func @transform_0(%arg0: i32) -> (i32, i32, i32, i32) {
    %c0_i32 = arith.constant 0 : i32
    %c0_i32_0 = arith.constant 0 : i32
    %c0_i32_1 = arith.constant 0 : i32
    %c0_i32_2 = arith.constant 0 : i32
    return %arg0, %c0_i32, %c0_i32_0, %c0_i32_1 : i32, i32, i32, i32
  }
  func.func @transform_1(%arg0: i32) -> (i32, i32) {
    %c0_i32 = arith.constant 0 : i32
    %c0_i32_0 = arith.constant 0 : i32
    %c0_i32_1 = arith.constant 0 : i32
    return %c0_i32, %c0_i32_0 : i32, i32
  }
  func.func @transform_2(%arg0: i32) -> (i32, i32) {
    %c0_i32 = arith.constant 0 : i32
    %c0_i32_0 = arith.constant 0 : i32
    %c0_i32_1 = arith.constant 0 : i32
    return %c0_i32, %c0_i32_0 : i32, i32
  }
  func.func @transform_3(%arg0: i32) -> (i32, i32, i32) {
    %c0_i32 = arith.constant 0 : i32
    %c0_i32_0 = arith.constant 0 : i32
    %c0_i32_1 = arith.constant 0 : i32
    return %arg0, %c0_i32, %c0_i32_0 : i32, i32, i32
  }
}

module attributes {stable_mosaic.version = 11 : i64} {
  func.func @_gemm_bias_kernel(%arg0: i32, %arg1: memref<8x576xbf16, #tpu.memory_space<vmem>>, %arg2: memref<576x512xbf16, #tpu.memory_space<vmem>>, %arg3: memref<1x512xf32, #tpu.memory_space<vmem>>, %arg4: memref<8x512xf32, #tpu.memory_space<vmem>>) attributes {dimension_semantics = [#tpu.dimension_semantics<arbitrary>], iteration_bounds = array<i64: 1>, scalar_prefetch = 0 : i64, scratch_operands = 0 : i64, tpu.core_type = #tpu.core_type<tc>, window_params = [{pipeline_mode = #tpu.pipeline_mode<synchronous>, transform_indices = @transform_0, window_bounds = array<i64: 8, 576>}, {pipeline_mode = #tpu.pipeline_mode<synchronous>, transform_indices = @transform_1, window_bounds = array<i64: 576, 512>}, {pipeline_mode = #tpu.pipeline_mode<synchronous>, transform_indices = @transform_2, window_bounds = array<i64: 1, 512>}, {pipeline_mode = #tpu.pipeline_mode<synchronous>, transform_indices = @transform_3, window_bounds = array<i64: 8, 512>}]} {
    %c0 = arith.constant 0 : index
    %c0_0 = arith.constant 0 : index
    %0 = vector.load %arg1[%c0, %c0_0] : memref<8x576xbf16, #tpu.memory_space<vmem>>, vector<8x576xbf16>
    %c0_1 = arith.constant 0 : index
    %c0_2 = arith.constant 0 : index
    %1 = vector.load %arg2[%c0_1, %c0_2] : memref<576x512xbf16, #tpu.memory_space<vmem>>, vector<576x512xbf16>
    %cst = arith.constant dense<0.000000e+00> : vector<8x512xf32>
    %2 = tpu.matmul %0, %1, %cst {dimension_numbers = #tpu.dot_dimension_numbers<[1], [0], [0], [1], [0, 0, 1, 1], [], []>} : vector<8x576xbf16>, vector<576x512xbf16>, vector<8x512xf32> -> vector<8x512xf32>
    %c0_3 = arith.constant 0 : index
    %c0_4 = arith.constant 0 : index
    %3 = vector.load %arg3[%c0_3, %c0_4] : memref<1x512xf32, #tpu.memory_space<vmem>>, vector<1x512xf32>
    %4 = vector.broadcast %3 : vector<1x512xf32> to vector<8x512xf32>
    %5 = arith.addf %2, %4 : vector<8x512xf32>
    %c0_5 = arith.constant 0 : index
    %c0_6 = arith.constant 0 : index
    %6 = vector.load %arg4[%c0_5, %c0_6] : memref<8x512xf32, #tpu.memory_space<vmem>>, vector<8x512xf32>
    tpu.vector_store %arg4[%c0_5, %c0_6], %5 {strides = array<i32>} : memref<8x512xf32, #tpu.memory_space<vmem>>, vector<8x512xf32>,
    return
  }
  func.func @transform_0(%arg0: i32) -> (i32, i32) {
    %c0_i32 = arith.constant 0 : i32
    %c0_i32_0 = arith.constant 0 : i32
    %c0_i32_1 = arith.constant 0 : i32
    return %c0_i32, %c0_i32_0 : i32, i32
  }
  func.func @transform_1(%arg0: i32) -> (i32, i32) {
    %c0_i32 = arith.constant 0 : i32
    %c0_i32_0 = arith.constant 0 : i32
    %c0_i32_1 = arith.constant 0 : i32
    return %c0_i32, %c0_i32_0 : i32, i32
  }
  func.func @transform_2(%arg0: i32) -> (i32, i32) {
    %c0_i32 = arith.constant 0 : i32
    %c0_i32_0 = arith.constant 0 : i32
    %c0_i32_1 = arith.constant 0 : i32
    return %c0_i32, %c0_i32_0 : i32, i32
  }
  func.func @transform_3(%arg0: i32) -> (i32, i32) {
    %c0_i32 = arith.constant 0 : i32
    %c0_i32_0 = arith.constant 0 : i32
    %c0_i32_1 = arith.constant 0 : i32
    return %c0_i32, %c0_i32_0 : i32, i32
  }
}

module attributes {stable_mosaic.version = 11 : i64} {
  func.func @_lstm_heads_kernel(%arg0: i32, %arg1: memref<1x2x512xf32, #tpu.memory_space<vmem>>, %arg2: memref<2x128xf32, #tpu.memory_space<vmem>>, %arg3: memref<2x128xf32, #tpu.memory_space<vmem>>, %arg4: memref<128x512xbf16, #tpu.memory_space<vmem>>, %arg5: memref<128x128xbf16, #tpu.memory_space<vmem>>, %arg6: memref<1x128xf32, #tpu.memory_space<vmem>>, %arg7: memref<2x128xf32, #tpu.memory_space<vmem>>, %arg8: memref<2x128xf32, #tpu.memory_space<vmem>>, %arg9: memref<2x128xf32, #tpu.memory_space<vmem>>, %arg10: memref<2x128xf32, #tpu.memory_space<vmem>>, %arg11: memref<2x128xf32, #tpu.memory_space<vmem>>) attributes {dimension_semantics = [#tpu.dimension_semantics<arbitrary>], iteration_bounds = array<i64: 4>, scalar_prefetch = 0 : i64, scratch_operands = 2 : i64, tpu.core_type = #tpu.core_type<tc>, window_params = [{transform_indices = @transform_0, window_bounds = array<i64: 1, 2, 512>}, {pipeline_mode = #tpu.pipeline_mode<synchronous>, transform_indices = @transform_1, window_bounds = array<i64: 2, 128>}, {pipeline_mode = #tpu.pipeline_mode<synchronous>, transform_indices = @transform_2, window_bounds = array<i64: 2, 128>}, {pipeline_mode = #tpu.pipeline_mode<synchronous>, transform_indices = @transform_3, window_bounds = array<i64: 128, 512>}, {pipeline_mode = #tpu.pipeline_mode<synchronous>, transform_indices = @transform_4, window_bounds = array<i64: 128, 128>}, {pipeline_mode = #tpu.pipeline_mode<synchronous>, transform_indices = @transform_5, window_bounds = array<i64: 1, 128>}, {pipeline_mode = #tpu.pipeline_mode<synchronous>, transform_indices = @transform_6, window_bounds = array<i64: 2, 128>}, {pipeline_mode = #tpu.pipeline_mode<synchronous>, transform_indices = @transform_7, window_bounds = array<i64: 2, 128>}, {pipeline_mode = #tpu.pipeline_mode<synchronous>, transform_indices = @transform_8, window_bounds = array<i64: 2, 128>}]} {
    %c0_i32 = arith.constant 0 : i32
    %0 = arith.cmpi eq, %arg0, %c0_i32 : i32
    %1 = arith.extui %0 : i1 to i32
    %c0_i32_0 = arith.constant 0 : i32
    %2 = arith.cmpi ne, %1, %c0_i32_0 : i32
    scf.if %2 {
      %c0_20 = arith.constant 0 : index
      %c0_21 = arith.constant 0 : index
      %44 = vector.load %arg2[%c0_20, %c0_21] : memref<2x128xf32, #tpu.memory_space<vmem>>, vector<2x128xf32>
      %c0_22 = arith.constant 0 : index
      %c0_23 = arith.constant 0 : index
      %45 = vector.load %arg10[%c0_22, %c0_23] : memref<2x128xf32, #tpu.memory_space<vmem>>, vector<2x128xf32>
      tpu.vector_store %arg10[%c0_22, %c0_23], %44 {strides = array<i32>} : memref<2x128xf32, #tpu.memory_space<vmem>>, vector<2x128xf32>,
      %c0_24 = arith.constant 0 : index
      %c0_25 = arith.constant 0 : index
      %46 = vector.load %arg3[%c0_24, %c0_25] : memref<2x128xf32, #tpu.memory_space<vmem>>, vector<2x128xf32>
      %c0_26 = arith.constant 0 : index
      %c0_27 = arith.constant 0 : index
      %47 = vector.load %arg11[%c0_26, %c0_27] : memref<2x128xf32, #tpu.memory_space<vmem>>, vector<2x128xf32>
      tpu.vector_store %arg11[%c0_26, %c0_27], %46 {strides = array<i32>} : memref<2x128xf32, #tpu.memory_space<vmem>>, vector<2x128xf32>,
    } else {
    }
    %c0 = arith.constant 0 : index
    %c0_1 = arith.constant 0 : index
    %c0_2 = arith.constant 0 : index
    %3 = vector.load %arg1[%c0, %c0_1, %c0_2] : memref<1x2x512xf32, #tpu.memory_space<vmem>>, vector<1x2x512xf32>
    %4 = vector.shape_cast %3 : vector<1x2x512xf32> to vector<2x512xf32>
    %c0_3 = arith.constant 0 : index
    %c0_4 = arith.constant 0 : index
    %5 = vector.load %arg10[%c0_3, %c0_4] : memref<2x128xf32, #tpu.memory_space<vmem>>, vector<2x128xf32>
    %6 = arith.truncf %5 : vector<2x128xf32> to vector<2x128xbf16>
    %c0_5 = arith.constant 0 : index
    %c0_6 = arith.constant 0 : index
    %7 = vector.load %arg4[%c0_5, %c0_6] : memref<128x512xbf16, #tpu.memory_space<vmem>>, vector<128x512xbf16>
    %cst = arith.constant dense<0.000000e+00> : vector<2x512xf32>
    %8 = tpu.matmul %6, %7, %cst {dimension_numbers = #tpu.dot_dimension_numbers<[1], [0], [0], [1], [0, 0, 1, 1], [], []>} : vector<2x128xbf16>, vector<128x512xbf16>, vector<2x512xf32> -> vector<2x512xf32>
    %9 = arith.addf %4, %8 : vector<2x512xf32>
    %10 = vector.extract_strided_slice %9 {offsets = [0, 0], sizes = [2, 128], strides = [1, 1]} : vector<2x512xf32> to vector<2x128xf32>
    %cst_7 = arith.constant 0.000000e+00 : f32
    %11 = vector.broadcast %cst_7 : f32 to vector<2x128xf32>
    %12 = arith.subf %11, %10 : vector<2x128xf32>
    %13 = math.exp %12 : vector<2x128xf32>
    %cst_8 = arith.constant 1.000000e+00 : f32
    %14 = vector.broadcast %cst_8 : f32 to vector<2x128xf32>
    %15 = arith.addf %14, %13 : vector<2x128xf32>
    %16 = tpu.reciprocal %15 {approx = true} : vector<2x128xf32> -> vector<2x128xf32>
    %17 = vector.extract_strided_slice %9 {offsets = [0, 128], sizes = [2, 128], strides = [1, 1]} : vector<2x512xf32> to vector<2x128xf32>
    %cst_9 = arith.constant 0.000000e+00 : f32
    %18 = vector.broadcast %cst_9 : f32 to vector<2x128xf32>
    %19 = arith.subf %18, %17 : vector<2x128xf32>
    %20 = math.exp %19 : vector<2x128xf32>
    %cst_10 = arith.constant 1.000000e+00 : f32
    %21 = vector.broadcast %cst_10 : f32 to vector<2x128xf32>
    %22 = arith.addf %21, %20 : vector<2x128xf32>
    %23 = tpu.reciprocal %22 {approx = true} : vector<2x128xf32> -> vector<2x128xf32>
    %24 = vector.extract_strided_slice %9 {offsets = [0, 256], sizes = [2, 128], strides = [1, 1]} : vector<2x512xf32> to vector<2x128xf32>
    %25 = math.tanh %24 : vector<2x128xf32>
    %26 = vector.extract_strided_slice %9 {offsets = [0, 384], sizes = [2, 128], strides = [1, 1]} : vector<2x512xf32> to vector<2x128xf32>
    %cst_11 = arith.constant 0.000000e+00 : f32
    %27 = vector.broadcast %cst_11 : f32 to vector<2x128xf32>
    %28 = arith.subf %27, %26 : vector<2x128xf32>
    %29 = math.exp %28 : vector<2x128xf32>
    %cst_12 = arith.constant 1.000000e+00 : f32
    %30 = vector.broadcast %cst_12 : f32 to vector<2x128xf32>
    %31 = arith.addf %30, %29 : vector<2x128xf32>
    %32 = tpu.reciprocal %31 {approx = true} : vector<2x128xf32> -> vector<2x128xf32>
    %c0_13 = arith.constant 0 : index
    %c0_14 = arith.constant 0 : index
    %33 = vector.load %arg11[%c0_13, %c0_14] : memref<2x128xf32, #tpu.memory_space<vmem>>, vector<2x128xf32>
    %34 = arith.mulf %23, %33 : vector<2x128xf32>
    %35 = arith.mulf %16, %25 : vector<2x128xf32>
    %36 = arith.addf %34, %35 : vector<2x128xf32>
    %37 = math.tanh %36 : vector<2x128xf32>
    %38 = arith.mulf %32, %37 : vector<2x128xf32>
    %c0_15 = arith.constant 0 : index
    %c0_16 = arith.constant 0 : index
    %39 = vector.load %arg11[%c0_15, %c0_16] : memref<2x128xf32, #tpu.memory_space<vmem>>, vector<2x128xf32>
    tpu.vector_store %arg11[%c0_15, %c0_16], %36 {strides = array<i32>} : memref<2x128xf32, #tpu.memory_space<vmem>>, vector<2x128xf32>,
    %c0_17 = arith.constant 0 : index
    %c0_18 = arith.constant 0 : index
    %40 = vector.load %arg10[%c0_17, %c0_18] : memref<2x128xf32, #tpu.memory_space<vmem>>, vector<2x128xf32>
    tpu.vector_store %arg10[%c0_17, %c0_18], %38 {strides = array<i32>} : memref<2x128xf32, #tpu.memory_space<vmem>>, vector<2x128xf32>,
    %c3_i32 = arith.constant 3 : i32
    %41 = arith.cmpi eq, %arg0, %c3_i32 : i32
    %42 = arith.extui %41 : i1 to i32
    %c0_i32_19 = arith.constant 0 : i32
    %43 = arith.cmpi ne, %42, %c0_i32_19 : i32
    scf.if %43 {
      %c0_20 = arith.constant 0 : index
      %c0_21 = arith.constant 0 : index
      %44 = vector.load %arg8[%c0_20, %c0_21] : memref<2x128xf32, #tpu.memory_space<vmem>>, vector<2x128xf32>
      tpu.vector_store %arg8[%c0_20, %c0_21], %38 {strides = array<i32>} : memref<2x128xf32, #tpu.memory_space<vmem>>, vector<2x128xf32>,
      %c0_22 = arith.constant 0 : index
      %c0_23 = arith.constant 0 : index
      %45 = vector.load %arg9[%c0_22, %c0_23] : memref<2x128xf32, #tpu.memory_space<vmem>>, vector<2x128xf32>
      tpu.vector_store %arg9[%c0_22, %c0_23], %36 {strides = array<i32>} : memref<2x128xf32, #tpu.memory_space<vmem>>, vector<2x128xf32>,
      %46 = arith.truncf %38 : vector<2x128xf32> to vector<2x128xbf16>
      %c0_24 = arith.constant 0 : index
      %c0_25 = arith.constant 0 : index
      %47 = vector.load %arg5[%c0_24, %c0_25] : memref<128x128xbf16, #tpu.memory_space<vmem>>, vector<128x128xbf16>
      %cst_26 = arith.constant dense<0.000000e+00> : vector<2x128xf32>
      %48 = tpu.matmul %46, %47, %cst_26 {dimension_numbers = #tpu.dot_dimension_numbers<[1], [0], [0], [1], [0, 0, 1, 1], [], []>} : vector<2x128xbf16>, vector<128x128xbf16>, vector<2x128xf32> -> vector<2x128xf32>
      %c0_27 = arith.constant 0 : index
      %c0_28 = arith.constant 0 : index
      %49 = vector.load %arg6[%c0_27, %c0_28] : memref<1x128xf32, #tpu.memory_space<vmem>>, vector<1x128xf32>
      %50 = vector.broadcast %49 : vector<1x128xf32> to vector<2x128xf32>
      %51 = arith.addf %48, %50 : vector<2x128xf32>
      %c0_29 = arith.constant 0 : index
      %c0_30 = arith.constant 0 : index
      %52 = vector.load %arg7[%c0_29, %c0_30] : memref<2x128xf32, #tpu.memory_space<vmem>>, vector<2x128xf32>
      tpu.vector_store %arg7[%c0_29, %c0_30], %51 {strides = array<i32>} : memref<2x128xf32, #tpu.memory_space<vmem>>, vector<2x128xf32>,
    } else {
    }
    return
  }
  func.func @transform_0(%arg0: i32) -> (i32, i32, i32) {
    %c0_i32 = arith.constant 0 : i32
    %c0_i32_0 = arith.constant 0 : i32
    %c0_i32_1 = arith.constant 0 : i32
    return %arg0, %c0_i32, %c0_i32_0 : i32, i32, i32
  }
  func.func @transform_1(%arg0: i32) -> (i32, i32) {
    %c0_i32 = arith.constant 0 : i32
    %c0_i32_0 = arith.constant 0 : i32
    %c0_i32_1 = arith.constant 0 : i32
    return %c0_i32, %c0_i32_0 : i32, i32
  }
  func.func @transform_2(%arg0: i32) -> (i32, i32) {
    %c0_i32 = arith.constant 0 : i32
    %c0_i32_0 = arith.constant 0 : i32
    %c0_i32_1 = arith.constant 0 : i32
    return %c0_i32, %c0_i32_0 : i32, i32
  }
  func.func @transform_3(%arg0: i32) -> (i32, i32) {
    %c0_i32 = arith.constant 0 : i32
    %c0_i32_0 = arith.constant 0 : i32
    %c0_i32_1 = arith.constant 0 : i32
    return %c0_i32, %c0_i32_0 : i32, i32
  }
  func.func @transform_4(%arg0: i32) -> (i32, i32) {
    %c0_i32 = arith.constant 0 : i32
    %c0_i32_0 = arith.constant 0 : i32
    %c0_i32_1 = arith.constant 0 : i32
    return %c0_i32, %c0_i32_0 : i32, i32
  }
  func.func @transform_5(%arg0: i32) -> (i32, i32) {
    %c0_i32 = arith.constant 0 : i32
    %c0_i32_0 = arith.constant 0 : i32
    %c0_i32_1 = arith.constant 0 : i32
    return %c0_i32, %c0_i32_0 : i32, i32
  }
  func.func @transform_6(%arg0: i32) -> (i32, i32) {
    %c0_i32 = arith.constant 0 : i32
    %c0_i32_0 = arith.constant 0 : i32
    %c0_i32_1 = arith.constant 0 : i32
    return %c0_i32, %c0_i32_0 : i32, i32
  }
  func.func @transform_7(%arg0: i32) -> (i32, i32) {
    %c0_i32 = arith.constant 0 : i32
    %c0_i32_0 = arith.constant 0 : i32
    %c0_i32_1 = arith.constant 0 : i32
    return %c0_i32, %c0_i32_0 : i32, i32
  }
  func.func @transform_8(%arg0: i32) -> (i32, i32) {
    %c0_i32 = arith.constant 0 : i32
    %c0_i32_0 = arith.constant 0 : i32
    %c0_i32_1 = arith.constant 0 : i32
    return %c0_i32, %c0_i32_0 : i32, i32
  }
}

</mosaic_0001>

<bundles_post_ra>
// kernel: forward.4
= control target key start
LH: loop header
LB: loop body
LE: loop exit
PB: predicated region body
PF: predicated region fallthrough
CT: control target
= control target key end

     0   :  { %s1709_s12 = smov 0   ;;  %s2059_s0 = inlined_call_operand.vmem [shape: bf16[2,4,144,32], index: 0, kind: input, shape index: {}]   ;;  %s2060_s1 = inlined_call_operand.vmem [shape: bf16[32,32], index: 1, kind: input, shape index: {}]   ;;  %s2061_s2 = inlined_call_operand.vmem [shape: f32[1,32], index: 2, kind: input, shape index: {}]   ;;  %s2062_s3 = inlined_call_operand.vmem [shape: bf16[2,144,32], index: 3, kind: output, shape index: {}]  }
   0x1 LB: > { %s1251_s13 = sadd.s32 4294967295, %s1685_s12   ;;  %p1255_p0 = scmp.ge.s32.totalorder %s1685_s12, 1  ;;  %s1685_s12 = sphi %s1709_s12, %s13_s12  }
   0x2   : > { %p137_p1 = scmp.lt.s32.totalorder %s1685_s12, 3 }
   0x4   : > { %p138_p2 = pnand %p1255_p0, %p137_p1 }
   0x5   : > { %v1641_v0 = vld [vmem:[%s2060_s1] sm:$0xff] (!%p138_p2)   ;;  %v1687_v1 = vmov (!%p138_p2), 0.0   ;;  %v1642_v2 = vld [vmem:[%s2060_s1 + $0x8] sm:$0xff] (!%p138_p2)   ;;  %p161_p3 = scmp.lt.s32.totalorder (!%p138_p2), %s1251_s13, 1  ;;  %vm1688_vm0 = vmmov (!%p138_p2), 0   ;;  %vm258_vm1 = vcmask (!%p138_p2), 261120  }
   0x6   : > { %141 = sbr.rel (%p138_p2) target bundleno = 379 (0x17b), region = 32  ;;  %1469 = vmatprep.subr.bf16.mxu0 (!%p138_p2), %v1687_v1  ;;  %1509 = vmatprep.subr.bf16.mxu1 (!%p138_p2), %v1687_v1  ;;  %v1886_v39 = vld [vmem:[%s2061_s2] ss:$0 sm:$0xff] (!%p138_p2)  ;;  %vm1177_vm2 = vcmask (!%p138_p2), 257024  }
   0x7   : > { %1470 = vmatpush3.bf16.msra.mxu0 (!%p138_p2), %v1641_v0  ;;  %1510 = vmatpush3.bf16.msra.mxu1 (!%p138_p2), %v1641_v0 }
   0x8   : > { %1471 = vmatprep.subr.bf16.mxu0 (!%p138_p2), %v1687_v1  ;;  %1511 = vmatprep.subr.bf16.mxu1 (!%p138_p2), %v1687_v1 }
   0x9   : > { %1473 = vmatprep.mubr.msk.bf16.mxu0 (!%p138_p2), %vm1688_vm0, %v1687_v1  ;;  %1513 = vmatprep.mubr.msk.bf16.mxu1 (!%p138_p2), %vm1688_vm0, %v1687_v1 }
   0xb   : > { %1472 = vmatpush3.bf16.msra.mxu0 (!%p138_p2), %v1642_v2  ;;  %1512 = vmatpush3.bf16.msra.mxu1 (!%p138_p2), %v1642_v2 }
   0xc   : > { %1549 = vmatprep.subr.bf16.mxu0 (!%p138_p2), %v1687_v1  ;;  %1589 = vmatprep.subr.bf16.mxu1 (!%p138_p2), %v1687_v1 }
   0xd   : > { %s2064_s13 = smov (!%p161_p3, %s1251_s13), 1 }
   0xe   : > { %s1629_s18 = smul.u32 288, %s2064_s13 }
   0xf   : > { %s1630_s24 = smul.u32 72, %s2064_s13 }
  0x10   : > { %s1739_s21 = scalar_lea.vmem %s2059_s0, %s1629_s18 }
  0x11   : > { %v1643_v3 = vld [vmem:[%s1739_s21] sm:$0xff]   ;;  %v1644_v4 = vld [vmem:[%s1739_s21 + $0x48] sm:$0xff]   ;;  %v1646_v6 = vld [vmem:[%s1739_s21 + $0x50] sm:$0xff]   ;;  %s1969_s27 = scalar_lea.vmem %s2062_s3, %s1630_s24 }
  0x12   : > { %1474 = vmatmul.mubr.msk.bf16.vlgmr.msra.gmra.mrb[0].mxu0 %vm258_vm1, %v1643_v3  ;;  %1514 = vmatmul.mubr.msk.bf16.vlgmr.msra.gmra.mrb[0].mxu1 %vm258_vm1, %v1644_v4  ;;  %v1645_v5 = vld [vmem:[%s1739_s21 + $0x8] sm:$0xff]   ;;  %v1647_v7 = vld [vmem:[%s1739_s21 + $0x10] sm:$0xff]   ;;  %v1648_v8 = vld [vmem:[%s1739_s21 + $0x58] sm:$0xff]  }
  0x13   : > { %1550 = vmatpush3.bf16.msra.mxu0 %v1641_v0  ;;  %1590 = vmatpush3.bf16.msra.mxu1 %v1641_v0  ;;  %v1649_v9 = vld [vmem:[%s1739_s21 + $0x18] sm:$0xff]   ;;  %v1650_v10 = vld [vmem:[%s1739_s21 + $0x60] sm:$0xff]   ;;  %v1652_v12 = vld [vmem:[%s1739_s21 + $0x68] sm:$0xff]  }
  0x14   : > { %1477 = vmatprep.mubr.msk.bf16.mxu0 %vm1688_vm0, %v1687_v1  ;;  %1517 = vmatprep.mubr.msk.bf16.mxu1 %vm1688_vm0, %v1687_v1  ;;  %v1651_v11 = vld [vmem:[%s1739_s21 + $0x20] sm:$0xff]   ;;  %v1653_v13 = vld [vmem:[%s1739_s21 + $0x28] sm:$0xff]   ;;  %v1654_v14 = vld [vmem:[%s1739_s21 + $0x70] sm:$0xff]  }
  0x15   : > { %1551 = vmatprep.subr.bf16.mxu0 %v1687_v1  ;;  %1591 = vmatprep.subr.bf16.mxu1 %v1687_v1  ;;  %v1655_v15 = vld [vmem:[%s1739_s21 + $0x30] sm:$0xff]   ;;  %v1656_v16 = vld [vmem:[%s1739_s21 + $0x78] sm:$0xff]   ;;  %v1658_v18 = vld [vmem:[%s1739_s21 + $0x80] sm:$0xff]  }
  0x16   : > { %v1657_v17 = vld [vmem:[%s1739_s21 + $0x38] sm:$0xff]   ;;  %v1659_v19 = vld [vmem:[%s1739_s21 + $0x40] sm:$0xff]   ;;  %v1660_v20 = vld [vmem:[%s1739_s21 + $0x88] sm:$0xff]  }
  0x17   : > { %1552 = vmatpush3.bf16.msra.mxu0 %v1642_v2  ;;  %1592 = vmatpush3.bf16.msra.mxu1 %v1642_v2  ;;  %v1661_v21 = vld [vmem:[%s1739_s21 + $0x90] sm:$0xff]   ;;  %v1662_v22 = vld [vmem:[%s1739_s21 + $0xd8] sm:$0xff]   ;;  %v1664_v24 = vld [vmem:[%s1739_s21 + $0xe0] sm:$0xff]  }
  0x18   : > { %v1663_v23 = vld [vmem:[%s1739_s21 + $0x98] sm:$0xff]   ;;  %v1665_v25 = vld [vmem:[%s1739_s21 + $0xa0] sm:$0xff]   ;;  %v1666_v26 = vld [vmem:[%s1739_s21 + $0xe8] sm:$0xff]  }
  0x19   : > { %v1667_v27 = vld [vmem:[%s1739_s21 + $0xa8] sm:$0xff]   ;;  %v1668_v28 = vld [vmem:[%s1739_s21 + $0xf0] sm:$0xff]   ;;  %v1670_v30 = vld [vmem:[%s1739_s21 + $0xf8] sm:$0xff]  }
  0x1a   : > { %1478 = vmatmul.mubr.msk.bf16.gmra.mrb[4].mxu0 %vm258_vm1, %v1645_v5  ;;  %1518 = vmatmul.mubr.msk.bf16.gmra.mrb[4].mxu1 %vm258_vm1, %v1646_v6  ;;  %v1669_v29 = vld [vmem:[%s1739_s21 + $0xb0] sm:$0xff]   ;;  %v1671_v31 = vld [vmem:[%s1739_s21 + $0xb8] sm:$0xff]   ;;  %v1672_v32 = vld [vmem:[%s1739_s21 + $0x100] sm:$0xff]  }
  0x1b   : > { %1481 = vmatprep.mubr.msk.bf16.mxu0 %vm1688_vm0, %v1687_v1  ;;  %1521 = vmatprep.mubr.msk.bf16.mxu1 %vm1688_vm0, %v1687_v1  ;;  %v1673_v33 = vld [vmem:[%s1739_s21 + $0xc0] sm:$0xff]   ;;  %v1674_v34 = vld [vmem:[%s1739_s21 + $0x108] sm:$0xff]   ;;  %v1676_v36 = vld [vmem:[%s1739_s21 + $0x110] sm:$0xff]  }
  0x1c   : > { %v1675_v35 = vld [vmem:[%s1739_s21 + $0xc8] sm:$0xff]   ;;  %v1677_v37 = vld [vmem:[%s1739_s21 + $0xd0] sm:$0xff]   ;;  %v1678_v38 = vld [vmem:[%s1739_s21 + $0x118] sm:$0xff]  }
  0x22   : > { %1482 = vmatmul.mubr.msk.bf16.gmra.mrb[8].mxu0 %vm258_vm1, %v1647_v7  ;;  %1522 = vmatmul.mubr.msk.bf16.gmra.mrb[8].mxu1 %vm258_vm1, %v1648_v8 }
  0x23   : > { %1485 = vmatprep.mubr.msk.bf16.mxu0 %vm1688_vm0, %v1687_v1  ;;  %1525 = vmatprep.mubr.msk.bf16.mxu1 %vm1688_vm0, %v1687_v1 }
  0x2a   : > { %1486 = vmatmul.mubr.msk.bf16.gmra.mrb[12].mxu0 %vm258_vm1, %v1649_v9  ;;  %1526 = vmatmul.mubr.msk.bf16.gmra.mrb[12].mxu1 %vm258_vm1, %v1650_v10 }
  0x2b   : > { %1489 = vmatprep.mubr.msk.bf16.mxu0 %vm1688_vm0, %v1687_v1  ;;  %1529 = vmatprep.mubr.msk.bf16.mxu1 %vm1688_vm0, %v1687_v1 }
  0x32   : > { %1490 = vmatmul.mubr.msk.bf16.gmra.mrb[16].mxu0 %vm258_vm1, %v1651_v11  ;;  %1530 = vmatmul.mubr.msk.bf16.gmra.mrb[16].mxu1 %vm258_vm1, %v1652_v12 }
  0x33   : > { %1493 = vmatprep.mubr.msk.bf16.mxu0 %vm1688_vm0, %v1687_v1  ;;  %1533 = vmatprep.mubr.msk.bf16.mxu1 %vm1688_vm0, %v1687_v1 }
  0x3a   : > { %1494 = vmatmul.mubr.msk.bf16.gmra.mrb[20].mxu0 %vm258_vm1, %v1653_v13  ;;  %1534 = vmatmul.mubr.msk.bf16.gmra.mrb[20].mxu1 %vm258_vm1, %v1654_v14 }
  0x3b   : > { %1497 = vmatprep.mubr.msk.bf16.mxu0 %vm1688_vm0, %v1687_v1  ;;  %1537 = vmatprep.mubr.msk.bf16.mxu1 %vm1688_vm0, %v1687_v1 }
  0x42   : > { %1498 = vmatmul.mubr.msk.bf16.gmra.mrb[24].mxu0 %vm258_vm1, %v1655_v15  ;;  %1538 = vmatmul.mubr.msk.bf16.gmra.mrb[24].mxu1 %vm258_vm1, %v1656_v16 }
  0x43   : > { %1501 = vmatprep.mubr.msk.bf16.mxu0 %vm1688_vm0, %v1687_v1  ;;  %1541 = vmatprep.mubr.msk.bf16.mxu1 %vm1688_vm0, %v1687_v1 }
  0x4a   : > { %1502 = vmatmul.mubr.msk.bf16.gmra.mrb[28].mxu0 %vm258_vm1, %v1657_v17  ;;  %1542 = vmatmul.mubr.msk.bf16.gmra.mrb[28].mxu1 %vm258_vm1, %v1658_v18 }
  0x4b   : > { %1505 = vmatprep.mubr.msk.bf16.mxu0 %vm1688_vm0, %v1687_v1  ;;  %1545 = vmatprep.mubr.msk.bf16.mxu1 %vm1688_vm0, %v1687_v1 }
  0x52   : > { %1506 = vmatmul.mubr.msk.bf16.gmra.mrb[32].mxu0 %vm258_vm1, %v1659_v19  ;;  %1546 = vmatmul.mubr.msk.bf16.gmra.mrb[32].mxu1 %vm258_vm1, %v1660_v20 }
  0x53   : > { %1553 = vmatprep.mubr.msk.bf16.mxu0 %vm1688_vm0, %v1687_v1  ;;  %1593 = vmatprep.mubr.msk.bf16.mxu1 %vm1688_vm0, %v1687_v1 }
  0x5a   : > { %1554 = vmatmul.mubr.msk.bf16.vlgmr.msra.gmra.mrb[36].mxu0 %vm258_vm1, %v1661_v21  ;;  %1594 = vmatmul.mubr.msk.bf16.vlgmr.msra.gmra.mrb[36].mxu1 %vm258_vm1, %v1662_v22 }
  0x5b   : > { %1557 = vmatprep.mubr.msk.bf16.mxu0 %vm1688_vm0, %v1687_v1  ;;  %1597 = vmatprep.mubr.msk.bf16.mxu1 %vm1688_vm0, %v1687_v1 }
  0x62   : > { %1558 = vmatmul.mubr.msk.bf16.gmra.mrb[40].mxu0 %vm258_vm1, %v1663_v23  ;;  %1598 = vmatmul.mubr.msk.bf16.gmra.mrb[40].mxu1 %vm258_vm1, %v1664_v24 }
  0x63   : > { %1561 = vmatprep.mubr.msk.bf16.mxu0 %vm1688_vm0, %v1687_v1  ;;  %1601 = vmatprep.mubr.msk.bf16.mxu1 %vm1688_vm0, %v1687_v1 }
  0x6a   : > { %1562 = vmatmul.mubr.msk.bf16.gmra.mrb[44].mxu0 %vm258_vm1, %v1665_v25  ;;  %1602 = vmatmul.mubr.msk.bf16.gmra.mrb[44].mxu1 %vm258_vm1, %v1666_v26 }
  0x6b   : > { %1565 = vmatprep.mubr.msk.bf16.mxu0 %vm1688_vm0, %v1687_v1  ;;  %1605 = vmatprep.mubr.msk.bf16.mxu1 %vm1688_vm0, %v1687_v1 }
  0x72   : > { %1566 = vmatmul.mubr.msk.bf16.gmra.mrb[48].mxu0 %vm258_vm1, %v1667_v27  ;;  %1606 = vmatmul.mubr.msk.bf16.gmra.mrb[48].mxu1 %vm258_vm1, %v1668_v28 }
  0x73   : > { %1569 = vmatprep.mubr.msk.bf16.mxu0 %vm1688_vm0, %v1687_v1  ;;  %1609 = vmatprep.mubr.msk.bf16.mxu1 %vm1688_vm0, %v1687_v1 }
  0x7a   : > { %1570 = vmatmul.mubr.msk.bf16.gmra.mrb[52].mxu0 %vm258_vm1, %v1669_v29  ;;  %1610 = vmatmul.mubr.msk.bf16.gmra.mrb[52].mxu1 %vm258_vm1, %v1670_v30 }
  0x7b   : > { %1573 = vmatprep.mubr.msk.bf16.mxu0 %vm1688_vm0, %v1687_v1  ;;  %1613 = vmatprep.mubr.msk.bf16.mxu1 %vm1688_vm0, %v1687_v1 }
  0x82   : > { %1574 = vmatmul.mubr.msk.bf16.gmra.mrb[56].mxu0 %vm258_vm1, %v1671_v31  ;;  %1614 = vmatmul.mubr.msk.bf16.gmra.mrb[56].mxu1 %vm258_vm1, %v1672_v32 }
  0x83   : > { %1577 = vmatprep.mubr.msk.bf16.mxu0 %vm1688_vm0, %v1687_v1  ;;  %1617 = vmatprep.mubr.msk.bf16.mxu1 %vm1688_vm0, %v1687_v1 }
  0x8a   : > { %1578 = vmatmul.mubr.msk.bf16.gmra.mrb[60].mxu0 %vm258_vm1, %v1673_v33  ;;  %1618 = vmatmul.mubr.msk.bf16.gmra.mrb[60].mxu1 %vm258_vm1, %v1674_v34 }
  0x8b   : > { %1581 = vmatprep.mubr.msk.bf16.mxu0 %vm1688_vm0, %v1687_v1  ;;  %1621 = vmatprep.mubr.msk.bf16.mxu1 %vm1688_vm0, %v1687_v1 }
  0x92   : > { %1582 = vmatmul.mubr.msk.bf16.gmra.mrb[64].mxu0 %vm258_vm1, %v1675_v35  ;;  %1622 = vmatmul.mubr.msk.bf16.gmra.mrb[64].mxu1 %vm258_vm1, %v1676_v36 }
  0x93   : > { %1585 = vmatprep.mubr.msk.bf16.mxu0 %vm1688_vm0, %v1687_v1  ;;  %1625 = vmatprep.mubr.msk.bf16.mxu1 %vm1688_vm0, %v1687_v1 }
  0x9a   : > { %1586 = vmatmul.mubr.msk.bf16.gmra.mrb[68].mxu0 %vm258_vm1, %v1677_v37  ;;  %1626 = vmatmul.mubr.msk.bf16.gmra.mrb[68].mxu1 %vm258_vm1, %v1678_v38 }
  0xe5   : > { %v320_v40 = vpop.f32.mrb[0].mxu0  ;;  %v534_v42 = vpop.f32.mrb[0].mxu1 }
  0xe6   : > { %v321_v41 = vadd.f32 %v1886_v39, %v320_v40  ;;  %v1475_v43 = vpop.f32.mrb[1].mxu0  ;;  %v535_v44 = vadd.f32 %v1886_v39, %v534_v42  ;;  %v1515_v45 = vpop.f32.mrb[1].mxu1 }
  0xe7   : > { %v323_v46 = vpop.f32.mrb[2].mxu0  ;;  %v537_v49 = vpop.f32.mrb[2].mxu1 }
  0xe8   : > { %v391_v47 = vmax.f32 %v321_v41, 0.0  ;;  %v324_v48 = vadd.f32 %v1886_v39, %v323_v46  ;;  %v1476_v50 = vpop.f32.mrb[3].mxu0  ;;  %v605_v51 = vmax.f32 %v535_v44, 0.0  ;;  %v538_v52 = vadd.f32 %v1886_v39, %v537_v49  ;;  %v1516_v53 = vpop.f32.mrb[3].mxu1 }
  0xea   : > { %v392_v54 = vmax.f32 %v324_v48, 0.0  ;;  %v1892_v55 = vmax.f32 %v391_v47, %v605_v51  ;;  %v606_v56 = vmax.f32 %v538_v52, 0.0 }
  0xec   : > { %v1894_v57 = vmax.f32 %v392_v54, %v606_v56 }
  0xed   : > { %v328_v58 = vpop.f32.mrb[4].mxu0  ;;  %v542_v60 = vpop.f32.mrb[4].mxu1 }
  0xee   : > { %v329_v59 = vadd.f32 %v1886_v39, %v328_v58  ;;  %v1479_v61 = vpop.f32.mrb[5].mxu0  ;;  %v543_v62 = vadd.f32 %v1886_v39, %v542_v60  ;;  %v1519_v63 = vpop.f32.mrb[5].mxu1 }
  0xef   : > { %v331_v0 = vpop.f32.mrb[6].mxu0  ;;  %v545_v3 = vpop.f32.mrb[6].mxu1 }
  0xf0   : > { %v393_v1 = vmax.f32 %v329_v59, 0.0  ;;  %v332_v2 = vadd.f32 %v1886_v39, %v331_v0  ;;  %v1480_v4 = vpop.f32.mrb[7].mxu0  ;;  %v607_v5 = vmax.f32 %v543_v62, 0.0  ;;  %v546_v6 = vadd.f32 %v1886_v39, %v545_v3  ;;  %v1520_v7 = vpop.f32.mrb[7].mxu1 }
  0xf2   : > { %v394_v8 = vmax.f32 %v332_v2, 0.0  ;;  %v1900_v9 = vmax.f32 %v393_v1, %v607_v5  ;;  %v608_v10 = vmax.f32 %v546_v6, 0.0 }
  0xf4   : > { %v1902_v11 = vmax.f32 %v394_v8, %v608_v10 }
  0xf5   : > { %v336_v12 = vpop.f32.mrb[8].mxu0  ;;  %v550_v14 = vpop.f32.mrb[8].mxu1 }
  0xf6   : > { %v337_v13 = vadd.f32 %v1886_v39, %v336_v12  ;;  %v1483_v15 = vpop.f32.mrb[9].mxu0  ;;  %v551_v16 = vadd.f32 %v1886_v39, %v550_v14  ;;  %v1523_v17 = vpop.f32.mrb[9].mxu1 }
  0xf7   : > { %v339_v18 = vpop.f32.mrb[10].mxu0  ;;  %v553_v21 = vpop.f32.mrb[10].mxu1 }
  0xf8   : > { %v395_v19 = vmax.f32 %v337_v13, 0.0  ;;  %v340_v20 = vadd.f32 %v1886_v39, %v339_v18  ;;  %v1484_v22 = vpop.f32.mrb[11].mxu0  ;;  %v609_v23 = vmax.f32 %v551_v16, 0.0  ;;  %v554_v24 = vadd.f32 %v1886_v39, %v553_v21  ;;  %v1524_v25 = vpop.f32.mrb[11].mxu1 }
  0xfa   : > { %v396_v26 = vmax.f32 %v340_v20, 0.0  ;;  %v1908_v27 = vmax.f32 %v395_v19, %v609_v23  ;;  %v610_v28 = vmax.f32 %v554_v24, 0.0 }
  0xfc   : > { %v1910_v29 = vmax.f32 %v396_v26, %v610_v28 }
  0xfd   : > { %v344_v30 = vpop.f32.mrb[12].mxu0  ;;  %v558_v32 = vpop.f32.mrb[12].mxu1 }
  0xfe   : > { %v345_v31 = vadd.f32 %v1886_v39, %v344_v30  ;;  %v1487_v33 = vpop.f32.mrb[13].mxu0  ;;  %v559_v34 = vadd.f32 %v1886_v39, %v558_v32  ;;  %v1527_v35 = vpop.f32.mrb[13].mxu1 }
  0xff   : > { %v347_v36 = vpop.f32.mrb[14].mxu0  ;;  %v561_v40 = vpop.f32.mrb[14].mxu1 }
 0x100   : > { %v397_v37 = vmax.f32 %v345_v31, 0.0  ;;  %v348_v38 = vadd.f32 %v1886_v39, %v347_v36  ;;  %v1488_v41 = vpop.f32.mrb[15].mxu0  ;;  %v611_v42 = vmax.f32 %v559_v34, 0.0  ;;  %v562_v43 = vadd.f32 %v1886_v39, %v561_v40  ;;  %v1528_v44 = vpop.f32.mrb[15].mxu1 }
 0x102   : > { %v398_v45 = vmax.f32 %v348_v38, 0.0  ;;  %v1916_v46 = vmax.f32 %v397_v37, %v611_v42  ;;  %v612_v47 = vmax.f32 %v562_v43, 0.0 }
 0x104   : > { %v1918_v48 = vmax.f32 %v398_v45, %v612_v47 }
 0x105   : > { %v352_v49 = vpop.f32.mrb[16].mxu0  ;;  %v566_v51 = vpop.f32.mrb[16].mxu1 }
 0x106   : > { %v353_v50 = vadd.f32 %v1886_v39, %v352_v49  ;;  %v1491_v52 = vpop.f32.mrb[17].mxu0  ;;  %v567_v53 = vadd.f32 %v1886_v39, %v566_v51  ;;  %v1531_v54 = vpop.f32.mrb[17].mxu1 }
 0x107   : > { %v355_v56 = vpop.f32.mrb[18].mxu0  ;;  %v569_v60 = vpop.f32.mrb[18].mxu1 }
 0x108   : > { %v399_v58 = vmax.f32 %v353_v50, 0.0  ;;  %v356_v59 = vadd.f32 %v1886_v39, %v355_v56  ;;  %v1492_v61 = vpop.f32.mrb[19].mxu0  ;;  %v613_v62 = vmax.f32 %v567_v53, 0.0  ;;  %v570_v63 = vadd.f32 %v1886_v39, %v569_v60  ;;  %v1532_v0 = vpop.f32.mrb[19].mxu1 }
 0x10a   : > { %v400_v1 = vmax.f32 %v356_v59, 0.0  ;;  %v1924_v2 = vmax.f32 %v399_v58, %v613_v62  ;;  %v614_v3 = vmax.f32 %v570_v63, 0.0 }
 0x10c   : > { %v1926_v4 = vmax.f32 %v400_v1, %v614_v3 }
 0x10d   : > { %v360_v5 = vpop.f32.mrb[20].mxu0  ;;  %v574_v7 = vpop.f32.mrb[20].mxu1 }
 0x10e   : > { %v361_v6 = vadd.f32 %v1886_v39, %v360_v5  ;;  %v1495_v8 = vpop.f32.mrb[21].mxu0  ;;  %v575_v10 = vadd.f32 %v1886_v39, %v574_v7  ;;  %v1535_v12 = vpop.f32.mrb[21].mxu1 }
 0x10f   : > { %v363_v13 = vpop.f32.mrb[22].mxu0  ;;  %v577_v16 = vpop.f32.mrb[22].mxu1 }
 0x110   : > { %v401_v14 = vmax.f32 %v361_v6, 0.0  ;;  %v364_v15 = vadd.f32 %v1886_v39, %v363_v13  ;;  %v1496_v17 = vpop.f32.mrb[23].mxu0  ;;  %v615_v18 = vmax.f32 %v575_v10, 0.0  ;;  %v578_v19 = vadd.f32 %v1886_v39, %v577_v16  ;;  %v1536_v20 = vpop.f32.mrb[23].mxu1 }
 0x112   : > { %v402_v21 = vmax.f32 %v364_v15, 0.0  ;;  %v1932_v22 = vmax.f32 %v401_v14, %v615_v18  ;;  %v616_v23 = vmax.f32 %v578_v19, 0.0 }
 0x114   : > { %v1934_v24 = vmax.f32 %v402_v21, %v616_v23 }
 0x115   : > { %v368_v25 = vpop.f32.mrb[24].mxu0  ;;  %v582_v28 = vpop.f32.mrb[24].mxu1 }
 0x116   : > { %v369_v26 = vadd.f32 %v1886_v39, %v368_v25  ;;  %v1499_v30 = vpop.f32.mrb[25].mxu0  ;;  %v583_v31 = vadd.f32 %v1886_v39, %v582_v28  ;;  %v1539_v32 = vpop.f32.mrb[25].mxu1 }
 0x117   : > { %v371_v33 = vpop.f32.mrb[26].mxu0  ;;  %v585_v36 = vpop.f32.mrb[26].mxu1 }
 0x118   : > { %v403_v34 = vmax.f32 %v369_v26, 0.0  ;;  %v372_v35 = vadd.f32 %v1886_v39, %v371_v33  ;;  %v1500_v37 = vpop.f32.mrb[27].mxu0  ;;  %v617_v38 = vmax.f32 %v583_v31, 0.0  ;;  %v586_v40 = vadd.f32 %v1886_v39, %v585_v36  ;;  %v1540_v41 = vpop.f32.mrb[27].mxu1 }
 0x11a   : > { %v404_v42 = vmax.f32 %v372_v35, 0.0  ;;  %v1940_v43 = vmax.f32 %v403_v34, %v617_v38  ;;  %v618_v44 = vmax.f32 %v586_v40, 0.0 }
 0x11c   : > { %v1942_v45 = vmax.f32 %v404_v42, %v618_v44 }
 0x11d   : > { %v376_v47 = vpop.f32.mrb[28].mxu0  ;;  %v590_v50 = vpop.f32.mrb[28].mxu1 }
 0x11e   : > { %v377_v49 = vadd.f32 %v1886_v39, %v376_v47  ;;  %v1503_v51 = vpop.f32.mrb[29].mxu0  ;;  %v591_v52 = vadd.f32 %v1886_v39, %v590_v50  ;;  %v1543_v53 = vpop.f32.mrb[29].mxu1 }
 0x11f   : > { %v379_v54 = vpop.f32.mrb[30].mxu0  ;;  %v593_v59 = vpop.f32.mrb[30].mxu1 }
 0x120   : > { %v405_v56 = vmax.f32 %v377_v49, 0.0  ;;  %v380_v58 = vadd.f32 %v1886_v39, %v379_v54  ;;  %v1504_v60 = vpop.f32.mrb[31].mxu0  ;;  %v619_v61 = vmax.f32 %v591_v52, 0.0  ;;  %v594_v62 = vadd.f32 %v1886_v39, %v593_v59  ;;  %v1544_v63 = vpop.f32.mrb[31].mxu1 }
 0x122   : > { %v406_v0 = vmax.f32 %v380_v58, 0.0  ;;  %v1948_v1 = vmax.f32 %v405_v56, %v619_v61  ;;  %v620_v3 = vmax.f32 %v594_v62, 0.0 }
 0x124   : > { %v1950_v5 = vmax.f32 %v406_v0, %v620_v3 }
 0x125   : > { %v384_v6 = vpop.f32.mrb[32].mxu0  ;;  %v598_v8 = vpop.f32.mrb[32].mxu1 }
 0x126   : > { %v385_v7 = vadd.f32 %v1886_v39, %v384_v6  ;;  %v1507_v10 = vpop.f32.mrb[33].mxu0  ;;  %v599_v12 = vadd.f32 %v1886_v39, %v598_v8  ;;  %v1547_v13 = vpop.f32.mrb[33].mxu1 }
 0x127   : > { %v387_v14 = vpop.f32.mrb[34].mxu0  ;;  %v601_v17 = vpop.f32.mrb[34].mxu1 }
 0x128   : > { %v407_v15 = vmax.f32 %v385_v7, 0.0  ;;  %v388_v16 = vadd.f32 %v1886_v39, %v387_v14  ;;  %v1508_v18 = vpop.f32.mrb[35].mxu0  ;;  %v621_v19 = vmax.f32 %v599_v12, 0.0  ;;  %v602_v20 = vadd.f32 %v1886_v39, %v601_v17  ;;  %v1548_v21 = vpop.f32.mrb[35].mxu1 }
 0x12a   : > { %v408_v23 = vmax.f32 %v388_v16, 0.0  ;;  %v1956_v25 = vmax.f32 %v407_v15, %v621_v19  ;;  %v622_v26 = vmax.f32 %v602_v20, 0.0 }
 0x12c   : > { %v1958_v28 = vmax.f32 %v408_v23, %v622_v26 }
 0x12d   : > { %v766_v30 = vpop.f32.mrb[36].mxu0  ;;  %v980_v32 = vpop.f32.mrb[36].mxu1 }
 0x12e   : > { %v767_v31 = vadd.f32 %v1886_v39, %v766_v30  ;;  %v1555_v33 = vpop.f32.mrb[37].mxu0  ;;  %v981_v34 = vadd.f32 %v1886_v39, %v980_v32  ;;  %v1595_v35 = vpop.f32.mrb[37].mxu1 }
 0x12f   : > { %v769_v36 = vpop.f32.mrb[38].mxu0  ;;  %v983_v40 = vpop.f32.mrb[38].mxu1 }
 0x130   : > { %v837_v37 = vmax.f32 %v767_v31, 0.0  ;;  %v770_v38 = vadd.f32 %v1886_v39, %v769_v36  ;;  %v1556_v41 = vpop.f32.mrb[39].mxu0  ;;  %v1051_v42 = vmax.f32 %v981_v34, 0.0  ;;  %v984_v44 = vadd.f32 %v1886_v39, %v983_v40  ;;  %v1596_v47 = vpop.f32.mrb[39].mxu1 }
 0x132   : > { %v838_v49 = vmax.f32 %v770_v38, 0.0  ;;  %v1069_v50 = vmax.f32 %v837_v37, %v1051_v42  ;;  %v1052_v51 = vmax.f32 %v984_v44, 0.0 }
 0x134   : > { %v1087_v52 = vmax.f32 %v1892_v55, %v1069_v50  ;;  %v1070_v53 = vmax.f32 %v838_v49, %v1052_v51 }
 0x135   : > { %v774_v54 = vpop.f32.mrb[40].mxu0  ;;  %v988_v58 = vpop.f32.mrb[40].mxu1 }
 0x136   : > { %v775_v56 = vadd.f32 %v1886_v39, %v774_v54  ;;  %v1559_v59 = vpop.f32.mrb[41].mxu0  ;;  %v1407_v60 = vpack.c.bf16 %v1087_v52, %v1087_v52  ;;  %v1088_v61 = vmax.f32 %v1894_v57, %v1070_v53  ;;  %v989_v62 = vadd.f32 %v1886_v39, %v988_v58  ;;  %v1599_v55 = vpop.f32.mrb[41].mxu1 }
 0x137   : > { %v777_v63 = vpop.f32.mrb[42].mxu0  ;;  %v991_v6 = vpop.f32.mrb[42].mxu1 }
 0x138   : > { %v839_v0 = vmax.f32 %v775_v56, 0.0  ;;  %v778_v3 = vadd.f32 %v1886_v39, %v777_v63  ;;  %v1560_v7 = vpop.f32.mrb[43].mxu0  ;;  %1178 = vst.msk [vmem:[%s1969_s27] sm:$0xf] %vm1177_vm2, %v1407_v60  ;;  %v1408_v8 = vpack.c.bf16 %v1088_v61, %v1088_v61  ;;  %v1053_v10 = vmax.f32 %v989_v62, 0.0  ;;  %v1600_v13 = vpop.f32.mrb[43].mxu1 }
 0x139   : > { %v992_v12 = vadd.f32 %v1886_v39, %v991_v6 }
 0x13a   : > { %v840_v14 = vmax.f32 %v778_v3, 0.0  ;;  %1179 = vst.msk [vmem:[%s1969_s27 + $0x4] sm:$0xf] %vm1177_vm2, %v1408_v8  ;;  %v1071_v57 = vmax.f32 %v839_v0, %v1053_v10 }
 0x13b   : > { %v1054_v15 = vmax.f32 %v992_v12, 0.0 }
 0x13c   : > { %v1089_v16 = vmax.f32 %v1900_v9, %v1071_v57 }
 0x13d   : > { %v1072_v17 = vmax.f32 %v840_v14, %v1054_v15  ;;  %v782_v18 = vpop.f32.mrb[44].mxu0  ;;  %v996_v20 = vpop.f32.mrb[44].mxu1 }
 0x13e   : > { %v783_v19 = vadd.f32 %v1886_v39, %v782_v18  ;;  %v1563_v21 = vpop.f32.mrb[45].mxu0  ;;  %v1409_v23 = vpack.c.bf16 %v1089_v16, %v1089_v16  ;;  %v997_v30 = vadd.f32 %v1886_v39, %v996_v20  ;;  %v1603_v31 = vpop.f32.mrb[45].mxu1 }
 0x13f   : > { %v1090_v26 = vmax.f32 %v1902_v11, %v1072_v17  ;;  %v785_v32 = vpop.f32.mrb[46].mxu0  ;;  %v999_v35 = vpop.f32.mrb[46].mxu1 }
 0x140   : > { %v841_v33 = vmax.f32 %v783_v19, 0.0  ;;  %v786_v34 = vadd.f32 %v1886_v39, %v785_v32  ;;  %v1564_v36 = vpop.f32.mrb[47].mxu0  ;;  %1180 = vst.msk [vmem:[%s1969_s27 + $0x8] sm:$0xf] %vm1177_vm2, %v1409_v23  ;;  %v1055_v37 = vmax.f32 %v997_v30, 0.0  ;;  %v1000_v38 = vadd.f32 %v1886_v39, %v999_v35  ;;  %v1604_v40 = vpop.f32.mrb[47].mxu1 }
 0x141   : > { %v1410_v9 = vpack.c.bf16 %v1090_v26, %v1090_v26 }
 0x142   : > { %v842_v41 = vmax.f32 %v786_v34, 0.0  ;;  %v1073_v11 = vmax.f32 %v841_v33, %v1055_v37  ;;  %v1056_v42 = vmax.f32 %v1000_v38, 0.0 }
 0x143   : > { %1181 = vst.msk [vmem:[%s1969_s27 + $0xc] sm:$0xf] %vm1177_vm2, %v1410_v9 }
 0x144   : > { %v1091_v44 = vmax.f32 %v1908_v27, %v1073_v11  ;;  %v1074_v47 = vmax.f32 %v842_v41, %v1056_v42 }
 0x145   : > { %v790_v49 = vpop.f32.mrb[48].mxu0  ;;  %v1004_v51 = vpop.f32.mrb[48].mxu1 }
 0x146   : > { %v791_v50 = vadd.f32 %v1886_v39, %v790_v49  ;;  %v1567_v52 = vpop.f32.mrb[49].mxu0  ;;  %v1411_v53 = vpack.c.bf16 %v1091_v44, %v1091_v44  ;;  %v1092_v54 = vmax.f32 %v1910_v29, %v1074_v47  ;;  %v1005_v56 = vadd.f32 %v1886_v39, %v1004_v51  ;;  %v1607_v58 = vpop.f32.mrb[49].mxu1 }
 0x147   : > { %v793_v59 = vpop.f32.mrb[50].mxu0  ;;  %v1007_v62 = vpop.f32.mrb[50].mxu1 }
 0x148   : > { %v843_v60 = vmax.f32 %v791_v50, 0.0  ;;  %v794_v61 = vadd.f32 %v1886_v39, %v793_v59  ;;  %v1568_v55 = vpop.f32.mrb[51].mxu0  ;;  %1182 = vst.msk [vmem:[%s1969_s27 + $0x10] sm:$0xf] %vm1177_vm2, %v1411_v53  ;;  %v1412_v27 = vpack.c.bf16 %v1092_v54, %v1092_v54  ;;  %v1057_v63 = vmax.f32 %v1005_v56, 0.0  ;;  %v1608_v3 = vpop.f32.mrb[51].mxu1 }
 0x149   : > { %v1008_v0 = vadd.f32 %v1886_v39, %v1007_v62 }
 0x14a   : > { %v844_v6 = vmax.f32 %v794_v61, 0.0  ;;  %1183 = vst.msk [vmem:[%s1969_s27 + $0x14] sm:$0xf] %vm1177_vm2, %v1412_v27  ;;  %v1075_v29 = vmax.f32 %v843_v60, %v1057_v63 }
 0x14b   : > { %v1058_v7 = vmax.f32 %v1008_v0, 0.0 }
 0x14c   : > { %v1093_v8 = vmax.f32 %v1916_v46, %v1075_v29 }
 0x14d   : > { %v1076_v10 = vmax.f32 %v844_v6, %v1058_v7  ;;  %v798_v12 = vpop.f32.mrb[52].mxu0  ;;  %v1012_v14 = vpop.f32.mrb[52].mxu1 }
 0x14e   : > { %v799_v13 = vadd.f32 %v1886_v39, %v798_v12  ;;  %v1571_v57 = vpop.f32.mrb[53].mxu0  ;;  %v1413_v15 = vpack.c.bf16 %v1093_v8, %v1093_v8  ;;  %v1013_v17 = vadd.f32 %v1886_v39, %v1012_v14  ;;  %v1611_v18 = vpop.f32.mrb[53].mxu1 }
 0x14f   : > { %v1094_v16 = vmax.f32 %v1918_v48, %v1076_v10  ;;  %v801_v19 = vpop.f32.mrb[54].mxu0  ;;  %v1015_v23 = vpop.f32.mrb[54].mxu1 }
 0x150   : > { %v845_v20 = vmax.f32 %v799_v13, 0.0  ;;  %v802_v21 = vadd.f32 %v1886_v39, %v801_v19  ;;  %v1572_v26 = vpop.f32.mrb[55].mxu0  ;;  %1184 = vst.msk [vmem:[%s1969_s27 + $0x18] sm:$0xf] %vm1177_vm2, %v1413_v15  ;;  %v1059_v30 = vmax.f32 %v1013_v17, 0.0  ;;  %v1016_v31 = vadd.f32 %v1886_v39, %v1015_v23  ;;  %v1612_v32 = vpop.f32.mrb[55].mxu1 }
 0x151   : > { %v1414_v46 = vpack.c.bf16 %v1094_v16, %v1094_v16 }
 0x152   : > { %v846_v33 = vmax.f32 %v802_v21, 0.0  ;;  %v1077_v48 = vmax.f32 %v845_v20, %v1059_v30  ;;  %v1060_v34 = vmax.f32 %v1016_v31, 0.0 }
 0x153   : > { %1185 = vst.msk [vmem:[%s1969_s27 + $0x1c] sm:$0xf] %vm1177_vm2, %v1414_v46 }
 0x154   : > { %v1095_v35 = vmax.f32 %v1924_v2, %v1077_v48  ;;  %v1078_v36 = vmax.f32 %v846_v33, %v1060_v34 }
 0x155   : > { %v806_v9 = vpop.f32.mrb[56].mxu0  ;;  %v1020_v38 = vpop.f32.mrb[56].mxu1 }
 0x156   : > { %v807_v37 = vadd.f32 %v1886_v39, %v806_v9  ;;  %v1575_v40 = vpop.f32.mrb[57].mxu0  ;;  %v1415_v41 = vpack.c.bf16 %v1095_v35, %v1095_v35  ;;  %v1096_v11 = vmax.f32 %v1926_v4, %v1078_v36  ;;  %v1021_v42 = vadd.f32 %v1886_v39, %v1020_v38  ;;  %v1615_v44 = vpop.f32.mrb[57].mxu1 }
 0x157   : > { %v809_v47 = vpop.f32.mrb[58].mxu0  ;;  %v1023_v51 = vpop.f32.mrb[58].mxu1 }
 0x158   : > { %v847_v49 = vmax.f32 %v807_v37, 0.0  ;;  %v810_v50 = vadd.f32 %v1886_v39, %v809_v47  ;;  %v1576_v52 = vpop.f32.mrb[59].mxu0  ;;  %1186 = vst.msk [vmem:[%s1969_s27 + $0x20] sm:$0xf] %vm1177_vm2, %v1415_v41  ;;  %v1416_v2 = vpack.c.bf16 %v1096_v11, %v1096_v11  ;;  %v1061_v53 = vmax.f32 %v1021_v42, 0.0  ;;  %v1616_v56 = vpop.f32.mrb[59].mxu1 }
 0x159   : > { %v1024_v54 = vadd.f32 %v1886_v39, %v1023_v51 }
 0x15a   : > { %v848_v58 = vmax.f32 %v810_v50, 0.0  ;;  %1187 = vst.msk [vmem:[%s1969_s27 + $0x24] sm:$0xf] %vm1177_vm2, %v1416_v2  ;;  %v1079_v4 = vmax.f32 %v847_v49, %v1061_v53 }
 0x15b   : > { %v1062_v59 = vmax.f32 %v1024_v54, 0.0 }
 0x15c   : > { %v1097_v60 = vmax.f32 %v1932_v22, %v1079_v4 }
 0x15d   : > { %v1080_v61 = vmax.f32 %v848_v58, %v1062_v59  ;;  %v814_v62 = vpop.f32.mrb[60].mxu0  ;;  %v1028_v27 = vpop.f32.mrb[60].mxu1 }
 0x15e   : > { %v815_v55 = vadd.f32 %v1886_v39, %v814_v62  ;;  %v1579_v63 = vpop.f32.mrb[61].mxu0  ;;  %v1417_v0 = vpack.c.bf16 %v1097_v60, %v1097_v60  ;;  %v1029_v6 = vadd.f32 %v1886_v39, %v1028_v27  ;;  %v1619_v29 = vpop.f32.mrb[61].mxu1 }
 0x15f   : > { %v1098_v3 = vmax.f32 %v1934_v24, %v1080_v61  ;;  %v817_v7 = vpop.f32.mrb[62].mxu0  ;;  %v1031_v12 = vpop.f32.mrb[62].mxu1 }
 0x160   : > { %v849_v8 = vmax.f32 %v815_v55, 0.0  ;;  %v818_v10 = vadd.f32 %v1886_v39, %v817_v7  ;;  %v1580_v13 = vpop.f32.mrb[63].mxu0  ;;  %1188 = vst.msk [vmem:[%s1969_s27 + $0x28] sm:$0xf] %vm1177_vm2, %v1417_v0  ;;  %v1063_v14 = vmax.f32 %v1029_v6, 0.0  ;;  %v1032_v57 = vadd.f32 %v1886_v39, %v1031_v12  ;;  %v1620_v15 = vpop.f32.mrb[63].mxu1 }
 0x161   : > { %v1418_v22 = vpack.c.bf16 %v1098_v3, %v1098_v3 }
 0x162   : > { %v850_v16 = vmax.f32 %v818_v10, 0.0  ;;  %v1081_v24 = vmax.f32 %v849_v8, %v1063_v14  ;;  %v1064_v17 = vmax.f32 %v1032_v57, 0.0 }
 0x163   : > { %1189 = vst.msk [vmem:[%s1969_s27 + $0x2c] sm:$0xf] %vm1177_vm2, %v1418_v22 }
 0x164   : > { %v1099_v18 = vmax.f32 %v1940_v43, %v1081_v24  ;;  %v1082_v19 = vmax.f32 %v850_v16, %v1064_v17 }
 0x165   : > { %v822_v20 = vpop.f32.mrb[64].mxu0  ;;  %v1036_v23 = vpop.f32.mrb[64].mxu1 }
 0x166   : > { %v823_v21 = vadd.f32 %v1886_v39, %v822_v20  ;;  %v1583_v26 = vpop.f32.mrb[65].mxu0  ;;  %v1419_v46 = vpack.c.bf16 %v1099_v18, %v1099_v18  ;;  %v1100_v30 = vmax.f32 %v1942_v45, %v1082_v19  ;;  %v1037_v31 = vadd.f32 %v1886_v39, %v1036_v23  ;;  %v1623_v32 = vpop.f32.mrb[65].mxu1 }
 0x167   : > { %v825_v33 = vpop.f32.mrb[66].mxu0  ;;  %v1039_v35 = vpop.f32.mrb[66].mxu1 }
 0x168   : > { %v851_v48 = vmax.f32 %v823_v21, 0.0  ;;  %v826_v34 = vadd.f32 %v1886_v39, %v825_v33  ;;  %v1584_v36 = vpop.f32.mrb[67].mxu0  ;;  %1190 = vst.msk [vmem:[%s1969_s27 + $0x30] sm:$0xf] %vm1177_vm2, %v1419_v46  ;;  %v1420_v43 = vpack.c.bf16 %v1100_v30, %v1100_v30  ;;  %v1065_v9 = vmax.f32 %v1037_v31, 0.0  ;;  %v1624_v38 = vpop.f32.mrb[67].mxu1 }
 0x169   : > { %v1040_v37 = vadd.f32 %v1886_v39, %v1039_v35 }
 0x16a   : > { %v852_v40 = vmax.f32 %v826_v34, 0.0  ;;  %1191 = vst.msk [vmem:[%s1969_s27 + $0x34] sm:$0xf] %vm1177_vm2, %v1420_v43  ;;  %v1083_v45 = vmax.f32 %v851_v48, %v1065_v9 }
 0x16b   : > { %v1066_v41 = vmax.f32 %v1040_v37, 0.0 }
 0x16c   : > { %v1101_v11 = vmax.f32 %v1948_v1, %v1083_v45 }
 0x16d   : > { %v1084_v42 = vmax.f32 %v852_v40, %v1066_v41  ;;  %v830_v44 = vpop.f32.mrb[68].mxu0  ;;  %v1044_v49 = vpop.f32.mrb[68].mxu1 }
 0x16e   : > { %v831_v47 = vadd.f32 %v1886_v39, %v830_v44  ;;  %v1587_v50 = vpop.f32.mrb[69].mxu0  ;;  %v1421_v51 = vpack.c.bf16 %v1101_v11, %v1101_v11  ;;  %v1045_v2 = vadd.f32 %v1886_v39, %v1044_v49  ;;  %v1627_v53 = vpop.f32.mrb[69].mxu1 }
 0x16f   : > { %v1102_v52 = vmax.f32 %v1950_v5, %v1084_v42  ;;  %v833_v54 = vpop.f32.mrb[70].mxu0  ;;  %v1047_v4 = vpop.f32.mrb[70].mxu1 }
 0x170   : > { %v853_v56 = vmax.f32 %v831_v47, 0.0  ;;  %v834_v58 = vadd.f32 %v1886_v39, %v833_v54  ;;  %v1588_v1 = vpop.f32.mrb[71].mxu0  ;;  %1192 = vst.msk [vmem:[%s1969_s27 + $0x38] sm:$0xf] %vm1177_vm2, %v1421_v51  ;;  %v1067_v60 = vmax.f32 %v1045_v2, 0.0  ;;  %v1048_v61 = vadd.f32 %v1886_v39, %v1047_v4  ;;  %v1628_v62 = vpop.f32.mrb[71].mxu1 }
 0x171   : > { %v1422_v59 = vpack.c.bf16 %v1102_v52, %v1102_v52 }
 0x172   : > { %v854_v55 = vmax.f32 %v834_v58, 0.0  ;;  %v1085_v5 = vmax.f32 %v853_v56, %v1067_v60  ;;  %v1068_v27 = vmax.f32 %v1048_v61, 0.0 }
 0x173   : > { %1193 = vst.msk [vmem:[%s1969_s27 + $0x3c] sm:$0xf] %vm1177_vm2, %v1422_v59 }
 0x174   : > { %v1103_v63 = vmax.f32 %v1956_v25, %v1085_v5  ;;  %v1086_v0 = vmax.f32 %v854_v55, %v1068_v27 }
 0x176   : > { %v1423_v3 = vpack.c.bf16 %v1103_v63, %v1103_v63  ;;  %v1104_v6 = vmax.f32 %v1958_v28, %v1086_v0 }
 0x178   : > { %1194 = vst.msk [vmem:[%s1969_s27 + $0x40] sm:$0xf] %vm1177_vm2, %v1423_v3  ;;  %v1424_v29 = vpack.c.bf16 %v1104_v6, %v1104_v6 }
 0x17a   : > { %1195 = vst.msk [vmem:[%s1969_s27 + $0x44] sm:$0xf] %vm1177_vm2, %v1424_v29 }
 0x17b PF: > { %s13_s12 = sadd.s32 1, %s1685_s12  }
 0x17c   : > { %p10_p4 = scmp.ge.s32.totalorder %s13_s12, 4  }
 0x17e   :  { %12 = sbr.rel (!%p10_p4) target bundleno = 1 (0x1), region = 65 }

// kernel: forward.5
= control target key start
LH: loop header
LB: loop body
LE: loop exit
PB: predicated region body
PF: predicated region fallthrough
CT: control target
= control target key end

     0   :  { %s1569_s12 = smov 0   ;;  %s1890_s0 = inlined_call_operand.vmem [shape: bf16[2,4,36,288], index: 0, kind: input, shape index: {}]   ;;  %s1891_s1 = inlined_call_operand.vmem [shape: bf16[288,64], index: 1, kind: input, shape index: {}]   ;;  %s1892_s2 = inlined_call_operand.vmem [shape: f32[1,64], index: 2, kind: input, shape index: {}]   ;;  %s1893_s3 = inlined_call_operand.vmem [shape: bf16[2,36,64], index: 3, kind: output, shape index: {}]  }
   0x1 LB: > { %s1129_s13 = sadd.s32 4294967295, %s1545_s12   ;;  %p1133_p0 = scmp.ge.s32.totalorder %s1545_s12, 1  ;;  %s1545_s12 = sphi %s1569_s12, %s13_s12  }
   0x2   : > { %p137_p1 = scmp.lt.s32.totalorder %s1545_s12, 3 }
   0x4   : > { %p138_p2 = pnand %p1133_p0, %p137_p1 }
   0x5   : > { %v1580_v0 = vld [vmem:[%s1891_s1 + $0x40] sm:$0xff] (!%p138_p2)   ;;  %v1547_v1 = vmov (!%p138_p2), 0.0   ;;  %vm1548_vm0 = vmmov (!%p138_p2), 0   ;;  %p161_p3 = scmp.lt.s32.totalorder (!%p138_p2), %s1129_s13, 1  ;;  %v1600_v4 = vld [vmem:[%s1891_s1 + $0x48] sm:$0xff] (!%p138_p2)   ;;  %v1621_v7 = vld [vmem:[%s1891_s1 + $0x50] sm:$0xff] (!%p138_p2)  }
   0x6   : > { %141 = sbr.rel (%p138_p2) target bundleno = 358 (0x166), region = 32  ;;  %1401 = vmatprep.subr.bf16.mxu1 (!%p138_p2), %v1547_v1  ;;  %v1586_v2 = vld [vmem:[%s1891_s1 + $0x80] sm:$0xff] (!%p138_p2)   ;;  %1245 = vmatprep.subr.bf16.mxu0 (!%p138_p2), %v1580_v0  ;;  %v1607_v5 = vld [vmem:[%s1891_s1 + $0x88] sm:$0xff] (!%p138_p2)   ;;  %v1627_v8 = vld [vmem:[%s1891_s1 + $0x10] sm:$0xff] (!%p138_p2)   ;;  %vm373_vm1 = vcmask (!%p138_p2), 261120   ;;  %vm1067_vm2 = vcmask (!%p138_p2), 519168  }
   0x7   : > { %v1592_v3 = vld [vmem:[%s1891_s1] sm:$0xff] (!%p138_p2)   ;;  %1405 = vmatprep.mubr.msk.bf16.mxu1 (!%p138_p2), %vm1548_vm0, %v1547_v1  ;;  %1402 = vmatpush3.bf16.msra.mxu1 (!%p138_p2), %v1586_v2  ;;  %v1615_v6 = vld [vmem:[%s1891_s1 + $0x8] sm:$0xff] (!%p138_p2)   ;;  %v1639_v9 = vld [vmem:[%s1891_s1 + $0x58] sm:$0xff] (!%p138_p2)   ;;  %vm1072_vm3 = vcmask (!%p138_p2), 517120  }
   0x8   : > { %1246 = vmatpush3.bf16.msra.mxu0 (!%p138_p2), %v1592_v3  ;;  %1403 = vmatprep.subr.bf16.mxu1 (!%p138_p2), %v1547_v1  ;;  %v1649_v11 = vld [vmem:[%s1891_s1 + $0x18] sm:$0xff] (!%p138_p2)   ;;  %v1656_v12 = vld [vmem:[%s1891_s1 + $0x60] sm:$0xff] (!%p138_p2)   ;;  %v1673_v15 = vld [vmem:[%s1891_s1 + $0x68] sm:$0xff] (!%p138_p2)  }
   0x9   : > { %1247 = vmatprep.subr.bf16.mxu0 (!%p138_p2), %v1600_v4  ;;  %v1666_v14 = vld [vmem:[%s1891_s1 + $0x20] sm:$0xff] (!%p138_p2)   ;;  %v1681_v16 = vld [vmem:[%s1891_s1 + $0x28] sm:$0xff] (!%p138_p2)   ;;  %v1688_v17 = vld [vmem:[%s1891_s1 + $0x70] sm:$0xff] (!%p138_p2)  }
   0xa   : > { %v1699_v20 = vld [vmem:[%s1891_s1 + $0x30] sm:$0xff] (!%p138_p2)   ;;  %v1706_v21 = vld [vmem:[%s1891_s1 + $0x78] sm:$0xff] (!%p138_p2)  }
   0xb   : > { %1404 = vmatpush3.bf16.msra.mxu1 (!%p138_p2), %v1607_v5  ;;  %v1715_v23 = vld [vmem:[%s1891_s1 + $0x38] sm:$0xff] (!%p138_p2)  }
   0xc   : > { %1248 = vmatpush3.bf16.msra.mxu0 (!%p138_p2), %v1615_v6  ;;  %1284 = vmatprep.subr.bf16.mxu1 (!%p138_p2), %v1580_v0 }
   0xd   : > { %s1895_s13 = smov (!%p161_p3, %s1129_s13), 1  ;;  %1249 = vmatprep.subr.bf16.mxu0 %v1621_v7 }
   0xe   : > { %s1465_s26 = smul.u32 240, %s1895_s13 }
   0xf   : > { %s1466_s4 = smul.u32 20, %s1895_s13 }
  0x10   : > { %s1633_s6 = scalar_lea.vmem %s1890_s0, %s1465_s26  ;;  %1250 = vmatpush3.bf16.msra.mxu0 %v1627_v8 }
  0x11   : > { %v1483_v10 = vld [vmem:[%s1633_s6 + $0x8] ss:$12 sps:$4 sm:$0xff]   ;;  %1251 = vmatprep.subr.bf16.mxu0 %v1639_v9  ;;  %v1492_v13 = vld [vmem:[%s1633_s6 + $0x20] ss:$12 sps:$4 sm:$0xff]   ;;  %v1500_v18 = vld [vmem:[%s1633_s6 + $0x4] ss:$12 sps:$4 sm:$0xff]   ;;  %s1867_s13 = scalar_lea.vmem %s1893_s3, %s1466_s4 }
  0x12   : > { %1406 = vmatmul.mubr.msk.bf16.vlgmr.msra.gmra.mrb[0].mxu1 %vm373_vm1, %v1483_v10  ;;  %v1497_v19 = vld [vmem:[%s1633_s6 + $0x38] ss:$0 sps:$4 sm:$0x33]   ;;  %415 = vmatprep.mubr.bf16.mxu0 %v1500_v18  ;;  %v1503_v22 = vld [vmem:[%s1633_s6 + $0x40] ss:$12 sps:$4 sm:$0xff]  }
  0x13   : > { %1285 = vmatpush3.bf16.msra.mxu1 %v1592_v3  ;;  %1409 = vmatprep.mubr.msk.bf16.mxu1 %vm1548_vm0, %v1547_v1  ;;  %v1498_v24 = vld [vmem:[%s1633_s6] ss:$12 sps:$4 sm:$0xff]   ;;  %v1504_v25 = vld [vmem:[%s1633_s6 + $0x1c] ss:$12 sps:$4 sm:$0xff]   ;;  %v217_v26 = vld [vmem:[%s1633_s6 + $0x30] sm:$0x33] }
  0x14   : > { %1286 = vmatprep.subr.bf16.mxu1 %v1600_v4  ;;  %1252 = vmatpush3.bf16.msra.mxu0 %v1649_v11  ;;  %v1501_v27 = vld [vmem:[%s1633_s6 + $0x3c] ss:$12 sps:$4 sm:$0xff]   ;;  %v1506_v28 = vld [vmem:[%s1633_s6 + $0x18] ss:$12 sps:$4 sm:$0xff]   ;;  %v1144_v29 = vcombine.high %v217_v26, %v217_v26  ;;  %v1175_v31 = vld [vmem:[%s1633_s6 + $0x6c] sm:$0x33]  ;;  %v1143_v32 = vcombine.low %v217_v26, %v217_v26 }
  0x15   : > { %1253 = vmatprep.subr.bf16.mxu0 %v1656_v12  ;;  %v1509_v30 = vld [vmem:[%s1633_s6 + $0x58] ss:$12 sps:$4 sm:$0xff]   ;;  %v1511_v33 = vld [vmem:[%s1633_s6 + $0x54] ss:$12 sps:$4 sm:$0xff]   ;;  %v1184_v34 = vcombine.high %v1175_v31, %v1175_v31  ;;  %v1183_v36 = vcombine.low %v1175_v31, %v1175_v31  ;;  %v1518_v37 = vld [vmem:[%s1633_s6 + $0x7c] ss:$12 sps:$4 sm:$0xff]  }
  0x16   : > { %v1512_v35 = vld [vmem:[%s1633_s6 + $0x44] ss:$12 sps:$4 sm:$0xff]   ;;  %v1515_v38 = vld [vmem:[%s1633_s6 + $0x5c] ss:$12 sps:$4 sm:$0xff]   ;;  %v1521_v41 = vld [vmem:[%s1633_s6 + $0x94] ss:$12 sps:$4 sm:$0xff]  }
  0x17   : > { %1287 = vmatpush3.bf16.msra.mxu1 %v1615_v6  ;;  %v1516_v39 = vld [vmem:[%s1633_s6 + $0x78] ss:$12 sps:$4 sm:$0xff]   ;;  %v1519_v40 = vld [vmem:[%s1633_s6 + $0x74] ss:$0 sps:$4 sm:$0x33]  }
  0x18   : > { %1288 = vmatprep.subr.bf16.mxu1 %v1621_v7  ;;  %1254 = vmatpush3.bf16.msra.mxu0 %v1666_v14  ;;  %v1520_v42 = vld [vmem:[%s1633_s6 + $0x80] ss:$12 sps:$4 sm:$0xff]   ;;  %v1523_v43 = vld [vmem:[%s1633_s6 + $0x90] ss:$12 sps:$4 sm:$0xff]   ;;  %v1524_v46 = vld [vmem:[%s1633_s6 + $0x98] ss:$12 sps:$4 sm:$0xff]  }
  0x19   : > { %1255 = vmatprep.subr.bf16.mxu0 %v1673_v15  ;;  %v1197_v44 = vld [vmem:[%s1633_s6 + $0xa8] sm:$0x33]  ;;  %v1530_v48 = vld [vmem:[%s1633_s6 + $0xb8] ss:$12 sps:$4 sm:$0xff]   ;;  %v1528_v50 = vld [vmem:[%s1633_s6 + $0xb4] ss:$12 sps:$4 sm:$0xff]  }
  0x1a   : > { %1410 = vmatmul.mubr.msk.bf16.gmra.mrb[4].mxu1 %vm373_vm1, %v1492_v13  ;;  %v1206_v45 = vcombine.high %v1197_v44, %v1197_v44  ;;  %v1205_v47 = vcombine.low %v1197_v44, %v1197_v44  ;;  %v1527_v49 = vld [vmem:[%s1633_s6 + $0xb0] ss:$0 sps:$4 sm:$0x33]   ;;  %v1531_v51 = vld [vmem:[%s1633_s6 + $0xbc] ss:$12 sps:$4 sm:$0xff]  }
  0x1b   : > { %1289 = vmatpush3.bf16.msra.mxu1 %v1627_v8  ;;  %1413 = vmatprep.mubr.msk.bf16.mxu1 %vm1548_vm0, %v1547_v1  ;;  %v1532_v52 = vld [vmem:[%s1633_s6 + $0xd0] ss:$12 sps:$4 sm:$0xff]   ;;  %v1219_v53 = vld [vmem:[%s1633_s6 + $0xe4] sm:$0x33]  ;;  %v1534_v54 = vld [vmem:[%s1633_s6 + $0xcc] ss:$12 sps:$4 sm:$0xff]  }
  0x1c   : > { %1290 = vmatprep.subr.bf16.mxu1 %v1639_v9  ;;  %1256 = vmatpush3.bf16.msra.mxu0 %v1681_v16  ;;  %v1535_v55 = vld [vmem:[%s1633_s6 + $0xd4] ss:$12 sps:$4 sm:$0xff]   ;;  %v1228_v56 = vcombine.high %v1219_v53, %v1219_v53  ;;  %v1227_v57 = vcombine.low %v1219_v53, %v1219_v53  ;;  %v1538_v58 = vld [vmem:[%s1633_s6 + $0xec] ss:$0 sps:$4 sm:$0x33]  }
  0x1d   : > { %1257 = vmatprep.subr.bf16.mxu0 %v1688_v17 }
  0x1f   : > { %1291 = vmatpush3.bf16.msra.mxu1 %v1649_v11 }
  0x20   : > { %1292 = vmatprep.subr.bf16.mxu1 %v1656_v12  ;;  %1258 = vmatpush3.bf16.msra.mxu0 %v1699_v20 }
  0x21   : > { %1259 = vmatprep.subr.bf16.mxu0 %v1706_v21 }
  0x22   : > { %1414 = vmatmul.mubr.msk.bf16.gmra.mrb[8].mxu1 %vm373_vm1, %v1497_v19 }
  0x23   : > { %1293 = vmatpush3.bf16.msra.mxu1 %v1666_v14  ;;  %592 = vmatprep.mubr.bf16.mxu1 %v1503_v22 }
  0x24   : > { %1294 = vmatprep.subr.bf16.mxu1 %v1673_v15  ;;  %1260 = vmatpush3.bf16.msra.mxu0 %v1715_v23 }
  0x25   : > { %1417 = vmatprep.subr.bf16.mxu0 %v1547_v1 }
  0x27   : > { %1295 = vmatpush3.bf16.msra.mxu1 %v1681_v16  ;;  %416 = vmatmul.mubr.bf16.vlgmr.msra.gmra.mrb[0].mxu0 %v1498_v24 }
  0x28   : > { %1296 = vmatprep.subr.bf16.mxu1 %v1688_v17  ;;  %1418 = vmatpush3.bf16.msra.mxu0 %v1586_v2 }
  0x29   : > { %423 = vmatprep.mubr.bf16.mxu0 %v1504_v25  ;;  %1419 = vmatprep.subr.bf16.mxu0 %v1547_v1 }
  0x2b   : > { %1297 = vmatpush3.bf16.msra.mxu1 %v1699_v20 }
  0x2c   : > { %1298 = vmatprep.subr.bf16.mxu1 %v1706_v21  ;;  %1420 = vmatpush3.bf16.msra.mxu0 %v1607_v5 }
  0x2d   : > { %1433 = vmatprep.subr.bf16.mxu0 %v1547_v1 }
  0x2f   : > { %1299 = vmatpush3.bf16.msra.mxu1 %v1715_v23  ;;  %424 = vmatmul.mubr.bf16.gmra.mrb[4].mxu0 %v1506_v28 }
  0x30   : > { %1323 = vmatprep.subr.bf16.mxu1 %v1580_v0  ;;  %431 = vmatprep.mubr.bf16.mxu0 %v1144_v29 }
  0x32   : > { %593 = vmatmul.mubr.bf16.vlgmr.msra.gmra.mrb[12].mxu1 %v1501_v27 }
  0x33   : > { %1324 = vmatpush3.bf16.msra.mxu1 %v1592_v3  ;;  %600 = vmatprep.mubr.bf16.mxu1 %v1509_v30 }
  0x34   : > { %1325 = vmatprep.subr.bf16.mxu1 %v1600_v4 }
  0x37   : > { %1326 = vmatpush3.bf16.msra.mxu1 %v1615_v6  ;;  %432 = vmatmul.mubr.bf16.gmra.mrb[8].mxu0 %v1143_v32 }
  0x38   : > { %1327 = vmatprep.subr.bf16.mxu1 %v1621_v7  ;;  %1421 = vmatprep.mubr.msk.bf16.mxu0 %vm1548_vm0, %v1547_v1 }
  0x3a   : > { %601 = vmatmul.mubr.bf16.gmra.mrb[16].mxu1 %v1511_v33 }
  0x3b   : > { %1328 = vmatpush3.bf16.msra.mxu1 %v1627_v8  ;;  %608 = vmatprep.mubr.bf16.mxu1 %v1184_v34 }
  0x3c   : > { %1329 = vmatprep.subr.bf16.mxu1 %v1639_v9 }
  0x3f   : > { %1330 = vmatpush3.bf16.msra.mxu1 %v1649_v11  ;;  %1422 = vmatmul.mubr.msk.bf16.vlgmr.msra.gmra.mrb[12].mxu0 %vm373_vm1, %v1512_v35 }
  0x40   : > { %1331 = vmatprep.subr.bf16.mxu1 %v1656_v12  ;;  %1434 = vmatpush3.bf16.msra.mxu0 %v1586_v2 }
  0x41   : > { %1425 = vmatprep.mubr.msk.bf16.mxu0 %vm1548_vm0, %v1547_v1  ;;  %1435 = vmatprep.subr.bf16.mxu0 %v1547_v1 }
  0x42   : > { %609 = vmatmul.mubr.bf16.gmra.mrb[20].mxu1 %v1183_v36 }
  0x43   : > { %1332 = vmatpush3.bf16.msra.mxu1 %v1666_v14  ;;  %774 = vmatprep.mubr.bf16.mxu1 %v1518_v37 }
  0x44   : > { %1333 = vmatprep.subr.bf16.mxu1 %v1673_v15  ;;  %1436 = vmatpush3.bf16.msra.mxu0 %v1607_v5 }
  0x45   : > { %1449 = vmatprep.subr.bf16.mxu0 %v1547_v1 }
  0x47   : > { %1334 = vmatpush3.bf16.msra.mxu1 %v1681_v16  ;;  %1426 = vmatmul.mubr.msk.bf16.gmra.mrb[16].mxu0 %vm373_vm1, %v1515_v38 }
  0x48   : > { %1335 = vmatprep.subr.bf16.mxu1 %v1688_v17  ;;  %1429 = vmatprep.mubr.msk.bf16.mxu0 %vm1548_vm0, %v1547_v1 }
  0x4b   : > { %1336 = vmatpush3.bf16.msra.mxu1 %v1699_v20 }
  0x4c   : > { %1337 = vmatprep.subr.bf16.mxu1 %v1706_v21 }
  0x4f   : > { %1338 = vmatpush3.bf16.msra.mxu1 %v1715_v23  ;;  %1430 = vmatmul.mubr.msk.bf16.gmra.mrb[20].mxu0 %vm373_vm1, %v1519_v40 }
  0x50   : > { %1362 = vmatprep.subr.bf16.mxu1 %v1580_v0  ;;  %1437 = vmatprep.mubr.msk.bf16.mxu0 %vm1548_vm0, %v1547_v1 }
  0x52   : > { %775 = vmatmul.mubr.bf16.vlgmr.msra.gmra.mrb[24].mxu1 %v1516_v39 }
  0x53   : > { %1363 = vmatpush3.bf16.msra.mxu1 %v1592_v3  ;;  %782 = vmatprep.mubr.bf16.mxu1 %v1521_v41 }
  0x54   : > { %1364 = vmatprep.subr.bf16.mxu1 %v1600_v4 }
  0x57   : > { %1365 = vmatpush3.bf16.msra.mxu1 %v1615_v6  ;;  %1438 = vmatmul.mubr.msk.bf16.vlgmr.msra.gmra.mrb[24].mxu0 %vm373_vm1, %v1520_v42 }
  0x58   : > { %1366 = vmatprep.subr.bf16.mxu1 %v1621_v7  ;;  %1450 = vmatpush3.bf16.msra.mxu0 %v1586_v2 }
  0x59   : > { %1441 = vmatprep.mubr.msk.bf16.mxu0 %vm1548_vm0, %v1547_v1  ;;  %1451 = vmatprep.subr.bf16.mxu0 %v1547_v1 }
  0x5a   : > { %783 = vmatmul.mubr.bf16.gmra.mrb[28].mxu1 %v1523_v43 }
  0x5b   : > { %1367 = vmatpush3.bf16.msra.mxu1 %v1627_v8  ;;  %790 = vmatprep.mubr.bf16.mxu1 %v1206_v45 }
  0x5c   : > { %1368 = vmatprep.subr.bf16.mxu1 %v1639_v9  ;;  %1452 = vmatpush3.bf16.msra.mxu0 %v1607_v5 }
  0x5f   : > { %1369 = vmatpush3.bf16.msra.mxu1 %v1649_v11  ;;  %1442 = vmatmul.mubr.msk.bf16.gmra.mrb[28].mxu0 %vm373_vm1, %v1524_v46 }
  0x60   : > { %1370 = vmatprep.subr.bf16.mxu1 %v1656_v12  ;;  %1445 = vmatprep.mubr.msk.bf16.mxu0 %vm1548_vm0, %v1547_v1 }
  0x62   : > { %791 = vmatmul.mubr.bf16.gmra.mrb[32].mxu1 %v1205_v47 }
  0x63   : > { %1371 = vmatpush3.bf16.msra.mxu1 %v1666_v14  ;;  %951 = vmatprep.mubr.bf16.mxu1 %v1530_v48 }
  0x64   : > { %1372 = vmatprep.subr.bf16.mxu1 %v1673_v15 }
  0x67   : > { %1373 = vmatpush3.bf16.msra.mxu1 %v1681_v16  ;;  %1446 = vmatmul.mubr.msk.bf16.gmra.mrb[32].mxu0 %vm373_vm1, %v1527_v49 }
  0x68   : > { %1374 = vmatprep.subr.bf16.mxu1 %v1688_v17  ;;  %1453 = vmatprep.mubr.msk.bf16.mxu0 %vm1548_vm0, %v1547_v1 }
  0x6b   : > { %1375 = vmatpush3.bf16.msra.mxu1 %v1699_v20 }
  0x6c   : > { %1376 = vmatprep.subr.bf16.mxu1 %v1706_v21 }
  0x6f   : > { %1377 = vmatpush3.bf16.msra.mxu1 %v1715_v23  ;;  %1454 = vmatmul.mubr.msk.bf16.vlgmr.msra.gmra.mrb[36].mxu0 %vm373_vm1, %v1531_v51 }
  0x70   : > { %1457 = vmatprep.mubr.msk.bf16.mxu0 %vm1548_vm0, %v1547_v1 }
  0x72   : > { %952 = vmatmul.mubr.bf16.vlgmr.msra.gmra.mrb[36].mxu1 %v1528_v50 }
  0x73   : > { %959 = vmatprep.mubr.bf16.mxu1 %v1532_v52 }
  0x77   : > { %1458 = vmatmul.mubr.msk.bf16.gmra.mrb[40].mxu0 %vm373_vm1, %v1535_v55 }
  0x78   : > { %1461 = vmatprep.mubr.msk.bf16.mxu0 %vm1548_vm0, %v1547_v1  ;;  %v1826_v1 = vld [vmem:[%s1892_s2] ss:$0 sm:$0xff] }
  0x7a   : > { %960 = vmatmul.mubr.bf16.gmra.mrb[40].mxu1 %v1534_v54 }
  0x7b   : > { %967 = vmatprep.mubr.bf16.mxu1 %v1228_v56 }
  0x7f   : > { %1462 = vmatmul.mubr.msk.bf16.gmra.mrb[44].mxu0 %vm373_vm1, %v1538_v58 }
  0x82   : > { %968 = vmatmul.mubr.bf16.gmra.mrb[44].mxu1 %v1227_v57 }
  0xe5   : > { %v473_v59 = vpop.f32.mrb[0].mxu1 }
  0xe6   : > { %v1407_v60 = vpop.f32.mrb[1].mxu1 }
  0xe7   : > { %v476_v61 = vpop.f32.mrb[2].mxu1 }
  0xe8   : > { %v1408_v62 = vpop.f32.mrb[3].mxu1 }
  0xed   : > { %v481_v63 = vpop.f32.mrb[4].mxu1 }
  0xee   : > { %v1411_v0 = vpop.f32.mrb[5].mxu1 }
  0xef   : > { %v484_v2 = vpop.f32.mrb[6].mxu1 }
  0xf0   : > { %v1412_v3 = vpop.f32.mrb[7].mxu1 }
  0xf5   : > { %v489_v4 = vpop.f32.mrb[8].mxu1 }
  0xf6   : > { %v1415_v5 = vpop.f32.mrb[9].mxu1 }
  0xf7   : > { %v492_v6 = vpop.f32.mrb[10].mxu1 }
  0xf8   : > { %v1416_v7 = vpop.f32.mrb[11].mxu1 }
  0xfa   : > { %v1261_v8 = vpop.f32.mrb[0].mxu0 }
  0xfb   : > { %v1262_v9 = vpop.f32.mrb[1].mxu0 }
  0xfc   : > { %v1263_v10 = vadd.f32 %v1262_v9, %v1261_v8  ;;  %v1264_v11 = vpop.f32.mrb[2].mxu0 }
  0xfd   : > { %v1265_v12 = vpop.f32.mrb[3].mxu0 }
  0xfe   : > { %v418_v13 = vadd.f32 %v1263_v10, %v1826_v1  ;;  %v1266_v14 = vadd.f32 %v1265_v12, %v1264_v11 }
 0x100   : > { %v474_v15 = vadd.f32 %v473_v59, %v418_v13  ;;  %v421_v16 = vadd.f32 %v1266_v14, %v1826_v1 }
 0x102   : > { %v477_v17 = vadd.f32 %v476_v61, %v421_v16  ;;  %v1267_v19 = vpop.f32.mrb[4].mxu0  ;;  %v495_v57 = vmax.f32 %v474_v15, 0.0 }
 0x103   : > { %v1268_v21 = vpop.f32.mrb[5].mxu0 }
 0x104   : > { %v1269_v23 = vadd.f32 %v1268_v21, %v1267_v19  ;;  %v1270_v25 = vpop.f32.mrb[6].mxu0 }
 0x105   : > { %v1300_v18 = vpop.f32.mrb[12].mxu1  ;;  %v1271_v27 = vpop.f32.mrb[7].mxu0 }
 0x106   : > { %v1301_v20 = vpop.f32.mrb[13].mxu1  ;;  %v426_v28 = vadd.f32 %v1269_v23, %v1826_v1  ;;  %v1272_v30 = vadd.f32 %v1271_v27, %v1270_v25 }
 0x107   : > { %v1302_v22 = vadd.f32 %v1301_v20, %v1300_v18  ;;  %v1303_v24 = vpop.f32.mrb[14].mxu1 }
 0x108   : > { %v1304_v26 = vpop.f32.mrb[15].mxu1  ;;  %v482_v31 = vadd.f32 %v481_v63, %v426_v28  ;;  %v429_v32 = vadd.f32 %v1272_v30, %v1826_v1  ;;  %v496_v63 = vmax.f32 %v477_v17, 0.0 }
 0x109   : > { %v1305_v29 = vadd.f32 %v1304_v26, %v1303_v24  ;;  %v595_v47 = vadd.f32 %v1302_v22, %v1826_v1 }
 0x10a   : > { %v485_v33 = vadd.f32 %v484_v2, %v429_v32  ;;  %v1273_v34 = vpop.f32.mrb[8].mxu0  ;;  %v497_v9 = vmax.f32 %v482_v31, 0.0 }
 0x10b   : > { %v1274_v36 = vpop.f32.mrb[9].mxu0  ;;  %v598_v52 = vadd.f32 %v1305_v29, %v1826_v1 }
 0x10c   : > { %v1275_v38 = vadd.f32 %v1274_v36, %v1273_v34  ;;  %v1276_v39 = vpop.f32.mrb[10].mxu0  ;;  %v498_v14 = vmax.f32 %v485_v33, 0.0 }
 0x10d   : > { %v1306_v35 = vpop.f32.mrb[16].mxu1  ;;  %v1277_v42 = vpop.f32.mrb[11].mxu0 }
 0x10e   : > { %v1307_v37 = vpop.f32.mrb[17].mxu1  ;;  %v434_v44 = vadd.f32 %v1275_v38, %v1826_v1 }
 0x10f   : > { %v1308_v40 = vadd.f32 %v1307_v37, %v1306_v35  ;;  %v1309_v41 = vpop.f32.mrb[18].mxu1 }
 0x110   : > { %v1310_v43 = vpop.f32.mrb[19].mxu1  ;;  %v490_v46 = vadd.f32 %v489_v4, %v434_v44 }
 0x111   : > { %v1311_v45 = vadd.f32 %v1310_v43, %v1309_v41  ;;  %v603_v3 = vadd.f32 %v1308_v40, %v1826_v1 }
 0x112   : > { %v650_v48 = vpop.f32.mrb[12].mxu0  ;;  %v499_v26 = vmax.f32 %v490_v46, 0.0 }
 0x113   : > { %v651_v50 = vadd.f32 %v650_v48, %v595_v47  ;;  %v1423_v51 = vpop.f32.mrb[13].mxu0  ;;  %v606_v7 = vadd.f32 %v1311_v45, %v1826_v1 }
 0x114   : > { %v653_v54 = vpop.f32.mrb[14].mxu0 }
 0x115   : > { %v1312_v49 = vpop.f32.mrb[20].mxu1  ;;  %v672_v58 = vmax.f32 %v651_v50, 0.0  ;;  %v654_v59 = vadd.f32 %v653_v54, %v598_v52  ;;  %v1424_v60 = vpop.f32.mrb[15].mxu0 }
 0x116   : > { %v1313_v53 = vpop.f32.mrb[21].mxu1 }
 0x117   : > { %v1314_v55 = vadd.f32 %v1313_v53, %v1312_v49  ;;  %v1315_v56 = vpop.f32.mrb[22].mxu1  ;;  %v1835_v62 = vmax.f32 %v495_v57, %v672_v58  ;;  %v673_v0 = vmax.f32 %v654_v59, 0.0 }
 0x118   : > { %v1316_v61 = vpop.f32.mrb[23].mxu1 }
 0x119   : > { %v1837_v2 = vmax.f32 %v496_v63, %v673_v0  ;;  %v611_v17 = vadd.f32 %v1314_v55, %v1826_v1 }
 0x11a   : > { %v658_v4 = vpop.f32.mrb[16].mxu0 }
 0x11b   : > { %v659_v5 = vadd.f32 %v658_v4, %v603_v3  ;;  %v1427_v6 = vpop.f32.mrb[17].mxu0 }
 0x11c   : > { %v661_v8 = vpop.f32.mrb[18].mxu0 }
 0x11d   : > { %v674_v10 = vmax.f32 %v659_v5, 0.0  ;;  %v662_v11 = vadd.f32 %v661_v8, %v606_v7  ;;  %v1428_v12 = vpop.f32.mrb[19].mxu0 }
 0x11f   : > { %v1841_v13 = vmax.f32 %v497_v9, %v674_v10  ;;  %v675_v15 = vmax.f32 %v662_v11, 0.0 }
 0x121   : > { %v1843_v16 = vmax.f32 %v498_v14, %v675_v15 }
 0x122   : > { %v666_v19 = vpop.f32.mrb[20].mxu0 }
 0x123   : > { %v667_v20 = vadd.f32 %v666_v19, %v611_v17  ;;  %v1431_v22 = vpop.f32.mrb[21].mxu0 }
 0x124   : > { %v669_v25 = vpop.f32.mrb[22].mxu0 }
 0x125   : > { %v1339_v18 = vpop.f32.mrb[24].mxu1  ;;  %v676_v27 = vmax.f32 %v667_v20, 0.0  ;;  %v1432_v29 = vpop.f32.mrb[23].mxu0 }
 0x126   : > { %v1340_v21 = vpop.f32.mrb[25].mxu1 }
 0x127   : > { %v1341_v23 = vadd.f32 %v1340_v21, %v1339_v18  ;;  %v1342_v24 = vpop.f32.mrb[26].mxu1  ;;  %v1846_v31 = vmax.f32 %v499_v26, %v676_v27 }
 0x128   : > { %v1343_v28 = vpop.f32.mrb[27].mxu1 }
 0x129   : > { %v1344_v30 = vadd.f32 %v1343_v28, %v1342_v24  ;;  %v777_v32 = vadd.f32 %v1341_v23, %v1826_v1 }
 0x12a   : > { %v832_v33 = vpop.f32.mrb[24].mxu0 }
 0x12b   : > { %v833_v35 = vadd.f32 %v832_v33, %v777_v32  ;;  %v1439_v36 = vpop.f32.mrb[25].mxu0  ;;  %v780_v37 = vadd.f32 %v1344_v30, %v1826_v1 }
 0x12c   : > { %v835_v39 = vpop.f32.mrb[26].mxu0 }
 0x12d   : > { %v1345_v34 = vpop.f32.mrb[28].mxu1  ;;  %v836_v42 = vadd.f32 %v835_v39, %v780_v37  ;;  %v1440_v43 = vpop.f32.mrb[27].mxu0  ;;  %v854_v19 = vmax.f32 %v833_v35, 0.0 }
 0x12e   : > { %v1346_v38 = vpop.f32.mrb[29].mxu1 }
 0x12f   : > { %v1347_v40 = vadd.f32 %v1346_v38, %v1345_v34  ;;  %v1348_v41 = vpop.f32.mrb[30].mxu1  ;;  %v855_v26 = vmax.f32 %v836_v42, 0.0 }
 0x130   : > { %v1349_v44 = vpop.f32.mrb[31].mxu1 }
 0x131   : > { %v1350_v45 = vadd.f32 %v1349_v44, %v1348_v41  ;;  %v785_v46 = vadd.f32 %v1347_v40, %v1826_v1 }
 0x132   : > { %v840_v48 = vpop.f32.mrb[28].mxu0 }
 0x133   : > { %v788_v47 = vadd.f32 %v1350_v45, %v1826_v1  ;;  %v1852_v50 = vadd.f32 %v840_v48, %v785_v46  ;;  %v1443_v51 = vpop.f32.mrb[29].mxu0 }
 0x134   : > { %v843_v53 = vpop.f32.mrb[30].mxu0 }
 0x135   : > { %v1351_v49 = vpop.f32.mrb[32].mxu1  ;;  %v1854_v56 = vadd.f32 %v843_v53, %v788_v47  ;;  %v1444_v57 = vpop.f32.mrb[31].mxu0 }
 0x136   : > { %v1352_v52 = vpop.f32.mrb[33].mxu1 }
 0x137   : > { %v1353_v54 = vadd.f32 %v1352_v52, %v1351_v49  ;;  %v1354_v55 = vpop.f32.mrb[34].mxu1  ;;  %v857_v51 = vmax.f32 %v1854_v56, 0.0 }
 0x138   : > { %v1355_v58 = vpop.f32.mrb[35].mxu1 }
 0x139   : > { %v793_v59 = vadd.f32 %v1353_v54, %v1826_v1 }
 0x13a   : > { %v848_v60 = vpop.f32.mrb[32].mxu0 }
 0x13b   : > { %v1857_v61 = vadd.f32 %v848_v60, %v793_v59  ;;  %v1447_v63 = vpop.f32.mrb[33].mxu0 }
 0x13c   : > { %v851_v0 = vpop.f32.mrb[34].mxu0 }
 0x13d   : > { %v1448_v3 = vpop.f32.mrb[35].mxu0 }
 0x13e   : > { %v858_v3 = vmax.f32 %v1857_v61, 0.0 }
 0x142   : > { %v1009_v5 = vpop.f32.mrb[36].mxu0 }
 0x143   : > { %v1455_v7 = vpop.f32.mrb[37].mxu0 }
 0x144   : > { %v1012_v10 = vpop.f32.mrb[38].mxu0 }
 0x145   : > { %v1378_v4 = vpop.f32.mrb[36].mxu1  ;;  %v1456_v12 = vpop.f32.mrb[39].mxu0 }
 0x146   : > { %v1379_v6 = vpop.f32.mrb[37].mxu1 }
 0x147   : > { %v1380_v8 = vadd.f32 %v1379_v6, %v1378_v4  ;;  %v1381_v9 = vpop.f32.mrb[38].mxu1 }
 0x148   : > { %v1382_v11 = vpop.f32.mrb[39].mxu1 }
 0x149   : > { %v954_v14 = vadd.f32 %v1380_v8, %v1826_v1  ;;  %v1383_v15 = vadd.f32 %v1382_v11, %v1381_v9 }
 0x14a   : > { %v1017_v23 = vpop.f32.mrb[40].mxu0 }
 0x14b   : > { %v1010_v17 = vadd.f32 %v1009_v5, %v954_v14  ;;  %v957_v18 = vadd.f32 %v1383_v15, %v1826_v1  ;;  %v1459_v25 = vpop.f32.mrb[41].mxu0 }
 0x14c   : > { %v1020_v32 = vpop.f32.mrb[42].mxu0 }
 0x14d   : > { %v1031_v20 = vmax.f32 %v1010_v17, 0.0  ;;  %v1013_v21 = vadd.f32 %v1012_v10, %v957_v18  ;;  %v1384_v22 = vpop.f32.mrb[40].mxu1  ;;  %v1460_v34 = vpop.f32.mrb[43].mxu0 }
 0x14e   : > { %v1385_v24 = vpop.f32.mrb[41].mxu1 }
 0x14f   : > { %v1036_v27 = vmax.f32 %v854_v19, %v1031_v20  ;;  %v1032_v28 = vmax.f32 %v1013_v21, 0.0  ;;  %v1386_v29 = vadd.f32 %v1385_v24, %v1384_v22  ;;  %v1387_v30 = vpop.f32.mrb[42].mxu1 }
 0x150   : > { %v1388_v33 = vpop.f32.mrb[43].mxu1 }
 0x151   : > { %v1041_v36 = vmax.f32 %v1835_v62, %v1036_v27  ;;  %v1037_v37 = vmax.f32 %v855_v26, %v1032_v28  ;;  %v962_v35 = vadd.f32 %v1386_v29, %v1826_v1  ;;  %v1389_v38 = vadd.f32 %v1388_v33, %v1387_v30 }
 0x152   : > { %v856_v62 = vmax.f32 %v1852_v50, 0.0  ;;  %v1025_v47 = vpop.f32.mrb[44].mxu0 }
 0x153   : > { %v1240_v39 = vpack.c.bf16 %v1041_v36, %v1041_v36  ;;  %v1042_v40 = vmax.f32 %v1837_v2, %v1037_v37  ;;  %v1018_v41 = vadd.f32 %v1017_v23, %v962_v35  ;;  %v965_v42 = vadd.f32 %v1389_v38, %v1826_v1  ;;  %v1463_v49 = vpop.f32.mrb[45].mxu0 }
 0x154   : > { %v1028_v50 = vpop.f32.mrb[46].mxu0 }
 0x155   : > { %1068 = vst.msk [vmem:[%s1867_s13] sm:$0xf] %vm1067_vm2, %v1240_v39  ;;  %v1241_v43 = vpack.c.bf16 %v1042_v40, %v1042_v40  ;;  %v1033_v44 = vmax.f32 %v1018_v41, 0.0  ;;  %v1021_v45 = vadd.f32 %v1020_v32, %v965_v42  ;;  %v1390_v46 = vpop.f32.mrb[44].mxu1  ;;  %v1464_v57 = vpop.f32.mrb[47].mxu0 }
 0x156   : > { %v1391_v48 = vpop.f32.mrb[45].mxu1 }
 0x157   : > { %1069 = vst.msk [vmem:[%s1867_s13 + $0x4] sm:$0xf] %vm1067_vm2, %v1241_v43  ;;  %v1038_v2 = vmax.f32 %v856_v62, %v1033_v44  ;;  %v1034_v52 = vmax.f32 %v1021_v45, 0.0  ;;  %v1392_v53 = vadd.f32 %v1391_v48, %v1390_v46  ;;  %v1393_v54 = vpop.f32.mrb[46].mxu1 }
 0x158   : > { %v1394_v55 = vpop.f32.mrb[47].mxu1 }
 0x159   : > { %v1043_v58 = vmax.f32 %v1841_v13, %v1038_v2  ;;  %v1039_v59 = vmax.f32 %v857_v51, %v1034_v52  ;;  %v970_v60 = vadd.f32 %v1392_v53, %v1826_v1 }
 0x15b   : > { %v1242_v63 = vpack.c.bf16 %v1043_v58, %v1043_v58  ;;  %v1044_v56 = vmax.f32 %v1843_v16, %v1039_v59  ;;  %v1026_v0 = vadd.f32 %v1025_v47, %v970_v60 }
 0x15d   : > { %1070 = vst.msk [vmem:[%s1867_s13 + $0x8] sm:$0xf] %vm1067_vm2, %v1242_v63  ;;  %v1243_v4 = vpack.c.bf16 %v1044_v56, %v1044_v56  ;;  %v1035_v5 = vmax.f32 %v1026_v0, 0.0 }
 0x15f   : > { %1071 = vst.msk [vmem:[%s1867_s13 + $0xc] sm:$0xf] %vm1067_vm2, %v1243_v4  ;;  %v1040_v6 = vmax.f32 %v858_v3, %v1035_v5 }
 0x161   : > { %v1045_v7 = vmax.f32 %v1846_v31, %v1040_v6 }
 0x163   : > { %v1244_v13 = vpack.c.bf16 %v1045_v7, %v1045_v7 }
 0x165   : > { %1073 = vst.msk [vmem:[%s1867_s13 + $0x10] sm:$0x3] %vm1072_vm3, %v1244_v13 }
 0x166 PF: > { %s13_s12 = sadd.s32 1, %s1545_s12  }
 0x167   : > { %p10_p4 = scmp.ge.s32.totalorder %s13_s12, 4  }
 0x169   :  { %12 = sbr.rel (!%p10_p4) target bundleno = 1 (0x1), region = 65 }

// kernel: forward.6
= control target key start
LH: loop header
LB: loop body
LE: loop exit
PB: predicated region body
PF: predicated region fallthrough
CT: control target
= control target key end

     0   :  { %vm921_vm0 = vcmask 523264   ;;  %s2055_s1 = inlined_call_operand.vmem [shape: bf16[576,512], index: 1, kind: input, shape index: {}]   ;;  %s2056_s0 = inlined_call_operand.vmem [shape: bf16[8,576], index: 0, kind: input, shape index: {}]   ;;  %s2057_s2 = inlined_call_operand.vmem [shape: f32[1,512], index: 2, kind: input, shape index: {}]   ;;  %s2058_s3 = inlined_call_operand.vmem [shape: f32[8,512], index: 3, kind: output, shape index: {}]  }
   0x1   :  { %v1351_v0 = vld [vmem:[%s2055_s1 + $0x4] ss:$16 sps:$4 sm:$0xff]   ;;  %v1353_v1 = vld [vmem:[%s2055_s1 + $0xc] ss:$16 sps:$4 sm:$0xff]   ;;  %v1355_v2 = vld [vmem:[%s2055_s1] ss:$16 sps:$4 sm:$0xff]  }
   0x2   :  { %925 = vmatprep.subr.bf16.mxu0 %v1351_v0  ;;  %v1356_v3 = vld [vmem:[%s2055_s1 + $0x8] ss:$16 sps:$4 sm:$0xff]   ;;  %1048 = vmatprep.subr.bf16.mxu1 %v1353_v1  ;;  %v1357_v4 = vld [vmem:[%s2055_s1 + $0x24] ss:$16 sps:$4 sm:$0xff]   ;;  %v1359_v5 = vld [vmem:[%s2055_s1 + $0x2c] ss:$16 sps:$4 sm:$0xff]  }
   0x3   :  { %926 = vmatpush1.bf16.msra.mxu0 %v1355_v2  ;;  %1049 = vmatpush1.bf16.msra.mxu1 %v1356_v3  ;;  %v1361_v6 = vld [vmem:[%s2055_s1 + $0x20] ss:$16 sps:$4 sm:$0xff]   ;;  %v1362_v7 = vld [vmem:[%s2055_s1 + $0x28] ss:$16 sps:$4 sm:$0xff]   ;;  %v1363_v8 = vld [vmem:[%s2055_s1 + $0x44] ss:$16 sps:$4 sm:$0xff]  }
   0x4   :  { %927 = vmatprep.subr.bf16.mxu0 %v1357_v4  ;;  %1050 = vmatprep.subr.bf16.mxu1 %v1359_v5  ;;  %v1365_v9 = vld [vmem:[%s2055_s1 + $0x4c] ss:$16 sps:$4 sm:$0xff]   ;;  %v1367_v10 = vld [vmem:[%s2055_s1 + $0x40] ss:$16 sps:$4 sm:$0xff]   ;;  %v1368_v11 = vld [vmem:[%s2055_s1 + $0x48] ss:$16 sps:$4 sm:$0xff]  }
   0x5   :  { %v1369_v12 = vld [vmem:[%s2055_s1 + $0x64] ss:$16 sps:$4 sm:$0xff]   ;;  %v1371_v13 = vld [vmem:[%s2055_s1 + $0x6c] ss:$16 sps:$4 sm:$0xff]   ;;  %v1373_v14 = vld [vmem:[%s2055_s1 + $0x60] ss:$16 sps:$4 sm:$0xff]  }
   0x6   :  { %v1374_v15 = vld [vmem:[%s2055_s1 + $0x68] ss:$16 sps:$4 sm:$0xff]   ;;  %v1375_v16 = vld [vmem:[%s2055_s1 + $0x84] ss:$16 sps:$4 sm:$0xff]   ;;  %v1377_v17 = vld [vmem:[%s2055_s1 + $0x8c] ss:$16 sps:$4 sm:$0xff]  }
   0x7   :  { %928 = vmatpush1.bf16.msra.mxu0 %v1361_v6  ;;  %1051 = vmatpush1.bf16.msra.mxu1 %v1362_v7  ;;  %v1379_v18 = vld [vmem:[%s2055_s1 + $0x80] ss:$16 sps:$4 sm:$0xff]   ;;  %v1380_v19 = vld [vmem:[%s2055_s1 + $0x88] ss:$16 sps:$4 sm:$0xff]   ;;  %v1381_v20 = vld [vmem:[%s2055_s1 + $0xa4] ss:$16 sps:$4 sm:$0xff]  }
   0x8   :  { %929 = vmatprep.subr.bf16.mxu0 %v1363_v8  ;;  %1052 = vmatprep.subr.bf16.mxu1 %v1365_v9  ;;  %v1383_v21 = vld [vmem:[%s2055_s1 + $0xac] ss:$16 sps:$4 sm:$0xff]   ;;  %v1385_v22 = vld [vmem:[%s2055_s1 + $0xa0] ss:$16 sps:$4 sm:$0xff]   ;;  %v1386_v23 = vld [vmem:[%s2055_s1 + $0xa8] ss:$16 sps:$4 sm:$0xff]  }
   0x9   :  { %v1387_v24 = vld [vmem:[%s2055_s1 + $0xc4] ss:$16 sps:$4 sm:$0xff]   ;;  %v1389_v25 = vld [vmem:[%s2055_s1 + $0xcc] ss:$16 sps:$4 sm:$0xff]   ;;  %v1391_v26 = vld [vmem:[%s2055_s1 + $0xc0] ss:$16 sps:$4 sm:$0xff]  }
   0xa   :  { %v1392_v27 = vld [vmem:[%s2055_s1 + $0xc8] ss:$16 sps:$4 sm:$0xff]   ;;  %v1393_v28 = vld [vmem:[%s2055_s1 + $0xe4] ss:$16 sps:$4 sm:$0xff]   ;;  %v1395_v29 = vld [vmem:[%s2055_s1 + $0xec] ss:$16 sps:$4 sm:$0xff]  }
   0xb   :  { %930 = vmatpush1.bf16.msra.mxu0 %v1367_v10  ;;  %1053 = vmatpush1.bf16.msra.mxu1 %v1368_v11  ;;  %v1397_v30 = vld [vmem:[%s2055_s1 + $0xe0] ss:$16 sps:$4 sm:$0xff]   ;;  %v1398_v31 = vld [vmem:[%s2055_s1 + $0xe8] ss:$16 sps:$4 sm:$0xff]   ;;  %v1399_v32 = vld [vmem:[%s2055_s1 + $0x104] ss:$16 sps:$4 sm:$0xff]  }
   0xc   :  { %931 = vmatprep.subr.bf16.mxu0 %v1369_v12  ;;  %1054 = vmatprep.subr.bf16.mxu1 %v1371_v13  ;;  %v1401_v33 = vld [vmem:[%s2055_s1 + $0x10c] ss:$16 sps:$4 sm:$0xff]   ;;  %v1403_v34 = vld [vmem:[%s2055_s1 + $0x100] ss:$16 sps:$4 sm:$0xff]   ;;  %v1404_v35 = vld [vmem:[%s2055_s1 + $0x108] ss:$16 sps:$4 sm:$0xff]  }
   0xd   :  { %v1405_v36 = vld [vmem:[%s2055_s1 + $0x124] ss:$16 sps:$4 sm:$0xff]   ;;  %v1407_v37 = vld [vmem:[%s2055_s1 + $0x12c] ss:$16 sps:$4 sm:$0xff]   ;;  %v1409_v38 = vld [vmem:[%s2055_s1 + $0x120] ss:$16 sps:$4 sm:$0xff]  }
   0xe   :  { %v1410_v39 = vld [vmem:[%s2055_s1 + $0x128] ss:$16 sps:$4 sm:$0xff]   ;;  %v1411_v40 = vld [vmem:[%s2055_s1 + $0x144] ss:$16 sps:$4 sm:$0xff]   ;;  %v1413_v41 = vld [vmem:[%s2055_s1 + $0x14c] ss:$16 sps:$4 sm:$0xff]  }
   0xf   :  { %932 = vmatpush1.bf16.msra.mxu0 %v1373_v14  ;;  %1055 = vmatpush1.bf16.msra.mxu1 %v1374_v15  ;;  %v1415_v42 = vld [vmem:[%s2055_s1 + $0x140] ss:$16 sps:$4 sm:$0xff]   ;;  %v1416_v43 = vld [vmem:[%s2055_s1 + $0x148] ss:$16 sps:$4 sm:$0xff]   ;;  %v1417_v44 = vld [vmem:[%s2055_s1 + $0x164] ss:$16 sps:$4 sm:$0xff]  }
  0x10   :  { %933 = vmatprep.subr.bf16.mxu0 %v1375_v16  ;;  %1056 = vmatprep.subr.bf16.mxu1 %v1377_v17  ;;  %v1419_v45 = vld [vmem:[%s2055_s1 + $0x16c] ss:$16 sps:$4 sm:$0xff]   ;;  %v15_v46 = vld [vmem:[%s2056_s0] sm:$0xff]  ;;  %v1422_v49 = vld [vmem:[%s2055_s1 + $0x168] ss:$16 sps:$4 sm:$0xff]  }
  0x11   :  { %v1421_v47 = vld [vmem:[%s2055_s1 + $0x160] ss:$16 sps:$4 sm:$0xff]   ;;  %v1180_v48 = vcombine.high %v15_v46, %v15_v46  ;;  %v1423_v50 = vld [vmem:[%s2055_s1 + $0x184] ss:$16 sps:$4 sm:$0xff]   ;;  %v1425_v51 = vld [vmem:[%s2055_s1 + $0x18c] ss:$16 sps:$4 sm:$0xff]   ;;  %v1179_v4 = vcombine.low %v15_v46, %v15_v46 }
  0x12   :  { %v1427_v52 = vld [vmem:[%s2055_s1 + $0x180] ss:$16 sps:$4 sm:$0xff]   ;;  %v1428_v53 = vld [vmem:[%s2055_s1 + $0x188] ss:$16 sps:$4 sm:$0xff]   ;;  %v1429_v54 = vld [vmem:[%s2055_s1 + $0x1a4] ss:$16 sps:$4 sm:$0xff]  }
  0x13   :  { %934 = vmatpush1.bf16.msra.mxu0 %v1379_v18  ;;  %1057 = vmatpush1.bf16.msra.mxu1 %v1380_v19  ;;  %v1431_v55 = vld [vmem:[%s2055_s1 + $0x1ac] ss:$16 sps:$4 sm:$0xff]   ;;  %v1433_v56 = vld [vmem:[%s2055_s1 + $0x1a0] ss:$16 sps:$4 sm:$0xff]   ;;  %v1434_v57 = vld [vmem:[%s2055_s1 + $0x1a8] ss:$16 sps:$4 sm:$0xff]  }
  0x14   :  { %935 = vmatprep.subr.bf16.mxu0 %v1381_v20  ;;  %1058 = vmatprep.subr.bf16.mxu1 %v1383_v21  ;;  %v1435_v58 = vld [vmem:[%s2055_s1 + $0x1c4] ss:$16 sps:$4 sm:$0xff]   ;;  %v1437_v59 = vld [vmem:[%s2055_s1 + $0x1cc] ss:$16 sps:$4 sm:$0xff]   ;;  %v1439_v60 = vld [vmem:[%s2055_s1 + $0x1c0] ss:$16 sps:$4 sm:$0xff]  }
  0x15   :  { %957 = vmatprep.mubr.bf16.mxu0 %v1180_v48  ;;  %1080 = vmatprep.mubr.bf16.mxu1 %v1180_v48  ;;  %v1440_v61 = vld [vmem:[%s2055_s1 + $0x1c8] ss:$16 sps:$4 sm:$0xff]   ;;  %v1441_v62 = vld [vmem:[%s2055_s1 + $0x1e4] ss:$16 sps:$4 sm:$0xff]   ;;  %v1443_v63 = vld [vmem:[%s2055_s1 + $0x1ec] ss:$16 sps:$4 sm:$0xff]  }
  0x16   :  { %v1445_v0 = vld [vmem:[%s2055_s1 + $0x1e0] ss:$16 sps:$4 sm:$0xff]   ;;  %v1446_v1 = vld [vmem:[%s2055_s1 + $0x1e8] ss:$16 sps:$4 sm:$0xff]   ;;  %v1452_v2 = vld [vmem:[%s2055_s1 + $0x204] ss:$16 sps:$4 sm:$0xff]  }
  0x17   :  { %936 = vmatpush1.bf16.msra.mxu0 %v1385_v22  ;;  %1059 = vmatpush1.bf16.msra.mxu1 %v1386_v23  ;;  %v1455_v3 = vld [vmem:[%s2055_s1 + $0x20c] ss:$16 sps:$4 sm:$0xff]   ;;  %v1450_v5 = vld [vmem:[%s2055_s1 + $0x200] ss:$16 sps:$4 sm:$0xff]   ;;  %v1453_v6 = vld [vmem:[%s2055_s1 + $0x208] ss:$16 sps:$4 sm:$0xff]  }
  0x18   :  { %937 = vmatprep.subr.bf16.mxu0 %v1387_v24  ;;  %1060 = vmatprep.subr.bf16.mxu1 %v1389_v25  ;;  %v1458_v7 = vld [vmem:[%s2055_s1 + $0x224] ss:$16 sps:$4 sm:$0xff]   ;;  %v1461_v8 = vld [vmem:[%s2055_s1 + $0x22c] ss:$16 sps:$4 sm:$0xff]   ;;  %v1456_v9 = vld [vmem:[%s2055_s1 + $0x220] ss:$16 sps:$4 sm:$0xff]  }
  0x19   :  { %v1459_v10 = vld [vmem:[%s2055_s1 + $0x228] ss:$16 sps:$4 sm:$0xff]   ;;  %v1464_v11 = vld [vmem:[%s2055_s1 + $0x244] ss:$16 sps:$4 sm:$0xff]   ;;  %v1467_v12 = vld [vmem:[%s2055_s1 + $0x24c] ss:$16 sps:$4 sm:$0xff]  }
  0x1a   :  { %v1462_v13 = vld [vmem:[%s2055_s1 + $0x240] ss:$16 sps:$4 sm:$0xff]   ;;  %v1465_v14 = vld [vmem:[%s2055_s1 + $0x248] ss:$16 sps:$4 sm:$0xff]   ;;  %v1470_v15 = vld [vmem:[%s2055_s1 + $0x264] ss:$16 sps:$4 sm:$0xff]  }
  0x1b   :  { %938 = vmatpush1.bf16.msra.mxu0 %v1391_v26  ;;  %1061 = vmatpush1.bf16.msra.mxu1 %v1392_v27  ;;  %v1473_v16 = vld [vmem:[%s2055_s1 + $0x26c] ss:$16 sps:$4 sm:$0xff]   ;;  %v1468_v17 = vld [vmem:[%s2055_s1 + $0x260] ss:$16 sps:$4 sm:$0xff]   ;;  %v1471_v18 = vld [vmem:[%s2055_s1 + $0x268] ss:$16 sps:$4 sm:$0xff]  }
  0x1c   :  { %939 = vmatprep.subr.bf16.mxu0 %v1393_v28  ;;  %1062 = vmatprep.subr.bf16.mxu1 %v1395_v29  ;;  %v1476_v19 = vld [vmem:[%s2055_s1 + $0x284] ss:$16 sps:$4 sm:$0xff]   ;;  %v1479_v20 = vld [vmem:[%s2055_s1 + $0x28c] ss:$16 sps:$4 sm:$0xff]   ;;  %v1474_v21 = vld [vmem:[%s2055_s1 + $0x280] ss:$16 sps:$4 sm:$0xff]  }
  0x1d   :  { %v1477_v22 = vld [vmem:[%s2055_s1 + $0x288] ss:$16 sps:$4 sm:$0xff]   ;;  %v1482_v23 = vld [vmem:[%s2055_s1 + $0x2a4] ss:$16 sps:$4 sm:$0xff]   ;;  %v1485_v24 = vld [vmem:[%s2055_s1 + $0x2ac] ss:$16 sps:$4 sm:$0xff]  }
  0x1e   :  { %v1480_v25 = vld [vmem:[%s2055_s1 + $0x2a0] ss:$16 sps:$4 sm:$0xff]   ;;  %v1483_v26 = vld [vmem:[%s2055_s1 + $0x2a8] ss:$16 sps:$4 sm:$0xff]   ;;  %v1488_v27 = vld [vmem:[%s2055_s1 + $0x2c4] ss:$16 sps:$4 sm:$0xff]  }
  0x1f   :  { %940 = vmatpush1.bf16.msra.mxu0 %v1397_v30  ;;  %1063 = vmatpush1.bf16.msra.mxu1 %v1398_v31  ;;  %v1491_v28 = vld [vmem:[%s2055_s1 + $0x2cc] ss:$16 sps:$4 sm:$0xff]   ;;  %v1486_v30 = vld [vmem:[%s2055_s1 + $0x2c0] ss:$16 sps:$4 sm:$0xff]   ;;  %v1489_v31 = vld [vmem:[%s2055_s1 + $0x2c8] ss:$16 sps:$4 sm:$0xff]  }
  0x20   :  { %941 = vmatprep.subr.bf16.mxu0 %v1399_v32  ;;  %1064 = vmatprep.subr.bf16.mxu1 %v1401_v33  ;;  %v1869_v29 = vld [vmem:[%s2056_s0 + $0x8] sm:$0xff]  ;;  %v1494_v33 = vld [vmem:[%s2055_s1 + $0x2e4] ss:$16 sps:$4 sm:$0xff]  }
  0x21   :  { %v1182_v32 = vcombine.high %v1869_v29, %v1869_v29  ;;  %v1515_v46 = vld [vmem:[%s2055_s1 + $0x34c] ss:$16 sps:$4 sm:$0xff]   ;;  %v1513_v48 = vld [vmem:[%s2055_s1 + $0x348] ss:$16 sps:$4 sm:$0xff]  }
  0x23   :  { %942 = vmatpush1.bf16.msra.mxu0 %v1403_v34  ;;  %1065 = vmatpush1.bf16.msra.mxu1 %v1404_v35  ;;  %v1497_v34 = vld [vmem:[%s2055_s1 + $0x2ec] ss:$16 sps:$4 sm:$0xff]   ;;  %v1492_v35 = vld [vmem:[%s2055_s1 + $0x2e0] ss:$16 sps:$4 sm:$0xff]  }
  0x24   :  { %943 = vmatprep.subr.bf16.mxu0 %v1405_v36  ;;  %1066 = vmatprep.subr.bf16.mxu1 %v1407_v37  ;;  %v1495_v36 = vld [vmem:[%s2055_s1 + $0x2e8] ss:$16 sps:$4 sm:$0xff]   ;;  %v1500_v37 = vld [vmem:[%s2055_s1 + $0x304] ss:$16 sps:$4 sm:$0xff]  }
  0x27   :  { %944 = vmatpush1.bf16.msra.mxu0 %v1409_v38  ;;  %1067 = vmatpush1.bf16.msra.mxu1 %v1410_v39  ;;  %v1503_v38 = vld [vmem:[%s2055_s1 + $0x30c] ss:$16 sps:$4 sm:$0xff]   ;;  %v1498_v39 = vld [vmem:[%s2055_s1 + $0x300] ss:$16 sps:$4 sm:$0xff]  }
  0x28   :  { %945 = vmatprep.subr.bf16.mxu0 %v1411_v40  ;;  %1068 = vmatprep.subr.bf16.mxu1 %v1413_v41  ;;  %v1501_v40 = vld [vmem:[%s2055_s1 + $0x308] ss:$16 sps:$4 sm:$0xff]   ;;  %v1506_v41 = vld [vmem:[%s2055_s1 + $0x324] ss:$16 sps:$4 sm:$0xff]  }
  0x2b   :  { %946 = vmatpush1.bf16.msra.mxu0 %v1415_v42  ;;  %1069 = vmatpush1.bf16.msra.mxu1 %v1416_v43  ;;  %v1509_v42 = vld [vmem:[%s2055_s1 + $0x32c] ss:$16 sps:$4 sm:$0xff]   ;;  %v1504_v43 = vld [vmem:[%s2055_s1 + $0x320] ss:$16 sps:$4 sm:$0xff]  }
  0x2c   :  { %947 = vmatprep.subr.bf16.mxu0 %v1417_v44  ;;  %1070 = vmatprep.subr.bf16.mxu1 %v1419_v45  ;;  %v1507_v44 = vld [vmem:[%s2055_s1 + $0x328] ss:$16 sps:$4 sm:$0xff]   ;;  %v1512_v45 = vld [vmem:[%s2055_s1 + $0x344] ss:$16 sps:$4 sm:$0xff]  }
  0x2f   :  { %948 = vmatpush1.bf16.msra.mxu0 %v1421_v47  ;;  %1071 = vmatpush1.bf16.msra.mxu1 %v1422_v49  ;;  %v1510_v47 = vld [vmem:[%s2055_s1 + $0x340] ss:$16 sps:$4 sm:$0xff]   ;;  %v1518_v49 = vld [vmem:[%s2055_s1 + $0x364] ss:$16 sps:$4 sm:$0xff]  }
  0x30   :  { %949 = vmatprep.subr.bf16.mxu0 %v1423_v50  ;;  %1072 = vmatprep.subr.bf16.mxu1 %v1425_v51  ;;  %v1521_v50 = vld [vmem:[%s2055_s1 + $0x36c] ss:$16 sps:$4 sm:$0xff]   ;;  %v1516_v51 = vld [vmem:[%s2055_s1 + $0x360] ss:$16 sps:$4 sm:$0xff]  }
  0x33   :  { %950 = vmatpush1.bf16.msra.mxu0 %v1427_v52  ;;  %1073 = vmatpush1.bf16.msra.mxu1 %v1428_v53  ;;  %v1519_v52 = vld [vmem:[%s2055_s1 + $0x368] ss:$16 sps:$4 sm:$0xff]   ;;  %v1524_v53 = vld [vmem:[%s2055_s1 + $0x384] ss:$16 sps:$4 sm:$0xff]  }
  0x34   :  { %951 = vmatprep.subr.bf16.mxu0 %v1429_v54  ;;  %1074 = vmatprep.subr.bf16.mxu1 %v1431_v55  ;;  %v1527_v54 = vld [vmem:[%s2055_s1 + $0x38c] ss:$16 sps:$4 sm:$0xff]   ;;  %v1522_v55 = vld [vmem:[%s2055_s1 + $0x380] ss:$16 sps:$4 sm:$0xff]  }
  0x37   :  { %952 = vmatpush1.bf16.msra.mxu0 %v1433_v56  ;;  %1075 = vmatpush1.bf16.msra.mxu1 %v1434_v57  ;;  %v1525_v56 = vld [vmem:[%s2055_s1 + $0x388] ss:$16 sps:$4 sm:$0xff]   ;;  %v1530_v57 = vld [vmem:[%s2055_s1 + $0x3a4] ss:$16 sps:$4 sm:$0xff]  }
  0x38   :  { %953 = vmatprep.subr.bf16.mxu0 %v1435_v58  ;;  %1076 = vmatprep.subr.bf16.mxu1 %v1437_v59  ;;  %v1533_v58 = vld [vmem:[%s2055_s1 + $0x3ac] ss:$16 sps:$4 sm:$0xff]   ;;  %v1528_v59 = vld [vmem:[%s2055_s1 + $0x3a0] ss:$16 sps:$4 sm:$0xff]  }
  0x3b   :  { %954 = vmatpush1.bf16.msra.mxu0 %v1439_v60  ;;  %1077 = vmatpush1.bf16.msra.mxu1 %v1440_v61  ;;  %v1531_v60 = vld [vmem:[%s2055_s1 + $0x3a8] ss:$16 sps:$4 sm:$0xff]   ;;  %v1536_v61 = vld [vmem:[%s2055_s1 + $0x3c4] ss:$16 sps:$4 sm:$0xff]  }
  0x3c   :  { %955 = vmatprep.subr.bf16.mxu0 %v1441_v62  ;;  %1078 = vmatprep.subr.bf16.mxu1 %v1443_v63  ;;  %v1539_v62 = vld [vmem:[%s2055_s1 + $0x3cc] ss:$16 sps:$4 sm:$0xff]   ;;  %v1534_v63 = vld [vmem:[%s2055_s1 + $0x3c0] ss:$16 sps:$4 sm:$0xff]  }
  0x3f   :  { %956 = vmatpush1.bf16.msra.mxu0 %v1445_v0  ;;  %1079 = vmatpush1.bf16.msra.mxu1 %v1446_v1  ;;  %v1537_v0 = vld [vmem:[%s2055_s1 + $0x3c8] ss:$16 sps:$4 sm:$0xff]   ;;  %v1542_v1 = vld [vmem:[%s2055_s1 + $0x3e4] ss:$16 sps:$4 sm:$0xff]  }
  0x40   :  { %966 = vmatprep.subr.bf16.mxu0 %v1452_v2  ;;  %1089 = vmatprep.subr.bf16.mxu1 %v1455_v3  ;;  %v1545_v2 = vld [vmem:[%s2055_s1 + $0x3ec] ss:$16 sps:$4 sm:$0xff]   ;;  %v1540_v3 = vld [vmem:[%s2055_s1 + $0x3e0] ss:$16 sps:$4 sm:$0xff]  }
  0x42   :  { %958 = vmatmul.mubr.bf16.vlgmr.msra.gmra.mrb[0].mxu0 %v1179_v4  ;;  %1081 = vmatmul.mubr.bf16.vlgmr.msra.gmra.mrb[0].mxu1 %v1179_v4  ;;  %v1543_v4 = vld [vmem:[%s2055_s1 + $0x3e8] ss:$16 sps:$4 sm:$0xff]  }
  0x43   :  { %967 = vmatpush1.bf16.msra.mxu0 %v1450_v5  ;;  %1090 = vmatpush1.bf16.msra.mxu1 %v1453_v6  ;;  %v1550_v5 = vld [vmem:[%s2055_s1 + $0x404] ss:$16 sps:$4 sm:$0xff]   ;;  %v1553_v6 = vld [vmem:[%s2055_s1 + $0x40c] ss:$16 sps:$4 sm:$0xff]  }
  0x44   :  { %968 = vmatprep.subr.bf16.mxu0 %v1458_v7  ;;  %1091 = vmatprep.subr.bf16.mxu1 %v1461_v8  ;;  %v1181_v7 = vcombine.low %v1869_v29, %v1869_v29  ;;  %v1548_v8 = vld [vmem:[%s2055_s1 + $0x400] ss:$16 sps:$4 sm:$0xff]  }
  0x45   :  { %998 = vmatprep.mubr.bf16.mxu0 %v1182_v32  ;;  %1121 = vmatprep.mubr.bf16.mxu1 %v1182_v32 }
  0x47   :  { %969 = vmatpush1.bf16.msra.mxu0 %v1456_v9  ;;  %1092 = vmatpush1.bf16.msra.mxu1 %v1459_v10  ;;  %v1551_v9 = vld [vmem:[%s2055_s1 + $0x408] ss:$16 sps:$4 sm:$0xff]   ;;  %v1556_v10 = vld [vmem:[%s2055_s1 + $0x424] ss:$16 sps:$4 sm:$0xff]  }
  0x48   :  { %970 = vmatprep.subr.bf16.mxu0 %v1464_v11  ;;  %1093 = vmatprep.subr.bf16.mxu1 %v1467_v12  ;;  %v1559_v11 = vld [vmem:[%s2055_s1 + $0x42c] ss:$16 sps:$4 sm:$0xff]   ;;  %v1554_v12 = vld [vmem:[%s2055_s1 + $0x420] ss:$16 sps:$4 sm:$0xff]  }
  0x4b   :  { %971 = vmatpush1.bf16.msra.mxu0 %v1462_v13  ;;  %1094 = vmatpush1.bf16.msra.mxu1 %v1465_v14  ;;  %v1557_v13 = vld [vmem:[%s2055_s1 + $0x428] ss:$16 sps:$4 sm:$0xff]   ;;  %v1562_v14 = vld [vmem:[%s2055_s1 + $0x444] ss:$16 sps:$4 sm:$0xff]  }
  0x4c   :  { %972 = vmatprep.subr.bf16.mxu0 %v1470_v15  ;;  %1095 = vmatprep.subr.bf16.mxu1 %v1473_v16  ;;  %v1565_v15 = vld [vmem:[%s2055_s1 + $0x44c] ss:$16 sps:$4 sm:$0xff]   ;;  %v1572_v16 = vmov 0  }
  0x4f   :  { %973 = vmatpush1.bf16.msra.mxu0 %v1468_v17  ;;  %1096 = vmatpush1.bf16.msra.mxu1 %v1471_v18  ;;  %v1560_v17 = vld [vmem:[%s2055_s1 + $0x440] ss:$16 sps:$4 sm:$0xff]   ;;  %v1563_v18 = vld [vmem:[%s2055_s1 + $0x448] ss:$16 sps:$4 sm:$0xff]  }
  0x50   :  { %974 = vmatprep.subr.bf16.mxu0 %v1476_v19  ;;  %1097 = vmatprep.subr.bf16.mxu1 %v1479_v20  ;;  %v1568_v19 = vld [vmem:[%s2055_s1 + $0x464] ss:$16 sps:$4 sm:$0xff]   ;;  %v1571_v20 = vld [vmem:[%s2055_s1 + $0x46c] ss:$16 sps:$4 sm:$0xff]  }
  0x53   :  { %975 = vmatpush1.bf16.msra.mxu0 %v1474_v21  ;;  %1098 = vmatpush1.bf16.msra.mxu1 %v1477_v22  ;;  %v1566_v21 = vld [vmem:[%s2055_s1 + $0x460] ss:$16 sps:$4 sm:$0xff]   ;;  %v1569_v22 = vld [vmem:[%s2055_s1 + $0x468] ss:$16 sps:$4 sm:$0xff]  }
  0x54   :  { %976 = vmatprep.subr.bf16.mxu0 %v1482_v23  ;;  %1099 = vmatprep.subr.bf16.mxu1 %v1485_v24  ;;  %v1449_v23 = vld [vmem:[%s2056_s0 + $0x10] ss:$0 sps:$4 sm:$0xff]   ;;  %v164_v24 = vlaneseq }
  0x57   :  { %977 = vmatpush1.bf16.msra.mxu0 %v1480_v25  ;;  %1100 = vmatpush1.bf16.msra.mxu1 %v1483_v26  ;;  %v165_v25 = vshrl.u32 %v164_v24, 7 }
  0x58   :  { %978 = vmatprep.subr.bf16.mxu0 %v1488_v27  ;;  %1101 = vmatprep.subr.bf16.mxu1 %v1491_v28  ;;  %v162_v28 = vld [vmem:[%s2057_s2] sm:$0xf] }
  0x59   :  { %v166_v26 = vsub.s32 0, %v165_v25  ;;  %v174_v27 = vsub.s32 2, %v165_v25  ;;  %v170_v29 = vsub.s32 1, %v165_v25 }
  0x5b   :  { %979 = vmatpush1.bf16.msra.mxu0 %v1486_v30  ;;  %1102 = vmatpush1.bf16.msra.mxu1 %v1489_v31  ;;  %v178_v30 = vsub.s32 3, %v165_v25  ;;  %v167_v31 = vrot.slane %v162_v28, %v166_v26  ;;  %v175_v32 = vrot.slane %v162_v28, %v174_v27 }
  0x5c   :  { %980 = vmatprep.subr.bf16.mxu0 %v1494_v33  ;;  %1103 = vmatprep.subr.bf16.mxu1 %v1497_v34  ;;  %v171_v33 = vrot.slane %v162_v28, %v170_v29 }
  0x5d   :  { %v179_v34 = vrot.slane %v162_v28, %v178_v30 }
  0x5f   :  { %981 = vmatpush1.bf16.msra.mxu0 %v1492_v35  ;;  %1104 = vmatpush1.bf16.msra.mxu1 %v1495_v36 }
  0x60   :  { %982 = vmatprep.subr.bf16.mxu0 %v1500_v37  ;;  %1105 = vmatprep.subr.bf16.mxu1 %v1503_v38 }
  0x63   :  { %983 = vmatpush1.bf16.msra.mxu0 %v1498_v39  ;;  %1106 = vmatpush1.bf16.msra.mxu1 %v1501_v40 }
  0x64   :  { %984 = vmatprep.subr.bf16.mxu0 %v1506_v41  ;;  %1107 = vmatprep.subr.bf16.mxu1 %v1509_v42 }
  0x67   :  { %985 = vmatpush1.bf16.msra.mxu0 %v1504_v43  ;;  %1108 = vmatpush1.bf16.msra.mxu1 %v1507_v44 }
  0x68   :  { %986 = vmatprep.subr.bf16.mxu0 %v1512_v45  ;;  %1109 = vmatprep.subr.bf16.mxu1 %v1515_v46 }
  0x6b   :  { %987 = vmatpush1.bf16.msra.mxu0 %v1510_v47  ;;  %1110 = vmatpush1.bf16.msra.mxu1 %v1513_v48 }
  0x6c   :  { %988 = vmatprep.subr.bf16.mxu0 %v1518_v49  ;;  %1111 = vmatprep.subr.bf16.mxu1 %v1521_v50 }
  0x6f   :  { %989 = vmatpush1.bf16.msra.mxu0 %v1516_v51  ;;  %1112 = vmatpush1.bf16.msra.mxu1 %v1519_v52 }
  0x70   :  { %990 = vmatprep.subr.bf16.mxu0 %v1524_v53  ;;  %1113 = vmatprep.subr.bf16.mxu1 %v1527_v54 }
  0x73   :  { %991 = vmatpush1.bf16.msra.mxu0 %v1522_v55  ;;  %1114 = vmatpush1.bf16.msra.mxu1 %v1525_v56 }
  0x74   :  { %992 = vmatprep.subr.bf16.mxu0 %v1530_v57  ;;  %1115 = vmatprep.subr.bf16.mxu1 %v1533_v58 }
  0x77   :  { %993 = vmatpush1.bf16.msra.mxu0 %v1528_v59  ;;  %1116 = vmatpush1.bf16.msra.mxu1 %v1531_v60 }
  0x78   :  { %994 = vmatprep.subr.bf16.mxu0 %v1536_v61  ;;  %1117 = vmatprep.subr.bf16.mxu1 %v1539_v62 }
  0x7b   :  { %995 = vmatpush1.bf16.msra.mxu0 %v1534_v63  ;;  %1118 = vmatpush1.bf16.msra.mxu1 %v1537_v0 }
  0x7c   :  { %996 = vmatprep.subr.bf16.mxu0 %v1542_v1  ;;  %1119 = vmatprep.subr.bf16.mxu1 %v1545_v2 }
  0x7f   :  { %997 = vmatpush1.bf16.msra.mxu0 %v1540_v3  ;;  %1120 = vmatpush1.bf16.msra.mxu1 %v1543_v4 }
  0x80   :  { %1007 = vmatprep.subr.bf16.mxu0 %v1550_v5  ;;  %1130 = vmatprep.subr.bf16.mxu1 %v1553_v6 }
  0x82   :  { %999 = vmatmul.mubr.bf16.vlgmr.msra.gmra.mrb[0].mxu0 %v1181_v7  ;;  %1122 = vmatmul.mubr.bf16.vlgmr.msra.gmra.mrb[0].mxu1 %v1181_v7 }
  0x83   :  { %1008 = vmatpush1.bf16.msra.mxu0 %v1548_v8  ;;  %1131 = vmatpush1.bf16.msra.mxu1 %v1551_v9 }
  0x84   :  { %1009 = vmatprep.subr.bf16.mxu0 %v1556_v10  ;;  %1132 = vmatprep.subr.bf16.mxu1 %v1559_v11 }
  0x85   :  { %1039 = vmatprep.mubr.bf16.mxu0 %v1572_v16  ;;  %1162 = vmatprep.mubr.bf16.mxu1 %v1572_v16 }
  0x87   :  { %1010 = vmatpush1.bf16.msra.mxu0 %v1554_v12  ;;  %1133 = vmatpush1.bf16.msra.mxu1 %v1557_v13 }
  0x88   :  { %1011 = vmatprep.subr.bf16.mxu0 %v1562_v14  ;;  %1134 = vmatprep.subr.bf16.mxu1 %v1565_v15 }
  0x8b   :  { %1012 = vmatpush1.bf16.msra.mxu0 %v1560_v17  ;;  %1135 = vmatpush1.bf16.msra.mxu1 %v1563_v18 }
  0x8c   :  { %1013 = vmatprep.subr.bf16.mxu0 %v1568_v19  ;;  %1136 = vmatprep.subr.bf16.mxu1 %v1571_v20 }
  0x8f   :  { %1014 = vmatpush1.bf16.msra.mxu0 %v1566_v21  ;;  %1137 = vmatpush1.bf16.msra.mxu1 %v1569_v22 }
  0x92   :  { %1328 = vmatmul.mubr.msk.bf16.vlgmr.msra.gmra.mrb[0].mxu0 %vm921_vm0, %v1449_v23  ;;  %1329 = vmatmul.mubr.msk.bf16.vlgmr.msra.gmra.mrb[0].mxu1 %vm921_vm0, %v1449_v23 }
 0x165   :  { %v1041_v35 = vpop.f32.mrb[0].mxu0  ;;  %v1164_v36 = vpop.f32.mrb[0].mxu1 }
 0x166   :  { %v1330_v37 = vadd.f32 %v1041_v35, %v167_v31  ;;  %v1332_v38 = vadd.f32 %v1164_v36, %v175_v32  ;;  %v1043_v39 = vpop.f32.mrb[1].mxu0  ;;  %v1166_v40 = vpop.f32.mrb[1].mxu1 }
 0x167   :  { %v1331_v41 = vadd.f32 %v1043_v39, %v171_v33  ;;  %v1333_v42 = vadd.f32 %v1166_v40, %v179_v34  ;;  %v1045_v43 = vpop.f32.mrb[2].mxu0  ;;  %v1168_v44 = vpop.f32.mrb[2].mxu1 }
 0x168   :  { %1171 = vst [vmem:[%s2058_s3] sm:$0xff] %v1330_v37  ;;  %1173 = vst [vmem:[%s2058_s3 + $0x10] sm:$0xff] %v1332_v38  ;;  %v1046_v45 = vpop.f32.mrb[3].mxu0  ;;  %v1169_v46 = vpop.f32.mrb[3].mxu1 }
 0x169   :  { %1172 = vst [vmem:[%s2058_s3 + $0x8] sm:$0xff] %v1331_v41  ;;  %1174 = vst [vmem:[%s2058_s3 + $0x18] sm:$0xff] %v1333_v42 }

// kernel: forward.7
= control target key start
LH: loop header
LB: loop body
LE: loop exit
PB: predicated region body
PF: predicated region fallthrough
CT: control target
= control target key end

     0   :  { %14 = vsyncpa [#allocation5], 0  ;;  %s1323_s0 = inlined_call_operand.vmem [shape: f32[4,2,512], index: 0, kind: input, shape index: {}]   ;;  %s1324_s1 = inlined_call_operand.vmem [shape: f32[2,128], index: 1, kind: input, shape index: {}]   ;;  %s1325_s2 = inlined_call_operand.vmem [shape: f32[2,128], index: 2, kind: input, shape index: {}]   ;;  %s1326_s3 = inlined_call_operand.vmem [shape: bf16[128,512], index: 3, kind: input, shape index: {}]   ;;  %s1327_s4 = inlined_call_operand.vmem [shape: bf16[128,128], index: 4, kind: input, shape index: {}]   ;;  %s1328_s5 = inlined_call_operand.vmem [shape: f32[1,128], index: 5, kind: input, shape index: {}]   ;;  %s1329_s6 = inlined_call_operand.vmem [shape: f32[2,128], index: 6, kind: output, shape index: {0}]   ;;  %s1330_s7 = inlined_call_operand.hbm [shape: f32[2,128], index: 7, kind: output, shape index: {1}]   ;;  %s1331_s8 = inlined_call_operand.hbm [shape: f32[2,128], index: 8, kind: output, shape index: {2}]  }
   0x1   :  { %15 = vsyncpa [#allocation7], 0  ;;  %s1123_s27 = smov 0  }
   0x2 LB: > { %s1129_s28 = sadd.s32 4294967295, %s1070_s27   ;;  %p824_p0 = scmp.ge.s32.totalorder %s1070_s27, 1  ;;  %s1070_s27 = sphi %s1123_s27, %s21_s27  }
   0x3   : > { %p254_p1 = scmp.lt.s32.totalorder %s1070_s27, 5 }
   0x5   : > { %p255_p2 = pnand %p824_p0, %p254_p1 }
   0x6   : > { %p283_p3 = scmp.lt.s32.totalorder (!%p255_p2), %s1129_s28, 3  ;;  %p827_p4 = scmp.ne.s32.totalorder (!%p255_p2), %s1129_s28, 0 }
   0x7   : > { %258 = sbr.rel (%p255_p2) target bundleno = 589 (0x24d), region = 44 }
   0xe   : > { %s284_s29 = scalar_select %p283_p3, %s1129_s28, 3 }
   0xf   : > { %292 = sbr.rel (%p827_p4) target bundleno = 22 (0x16), region = 48  ;;  %v293_v0 = vld [vmem:[%s1324_s1] sm:$0x3] (!%p827_p4) }
  0x10   : > { %s876_s30 = sshll.u32 %s284_s29, 3  ;;  %v295_v1 = vld [vmem:[%s1325_s2] sm:$0x3] (!%p827_p4)  ;;  %294 = vst [vmem:[#allocation2] sm:$0x3] (!%p827_p4), %v293_v0 }
  0x11   : > { %s1138_s11 = scalar_lea.vmem %s1323_s0, %s876_s30  ;;  %296 = vst [vmem:[#allocation3] sm:$0x3] (!%p827_p4), %v295_v1 }
  0x16 PF: > { %v932_v2 = vld [vmem:[%s1326_s3 + $0x4] ss:$16 sps:$4 sm:$0xff]   ;;  %v934_v3 = vld [vmem:[%s1326_s3 + $0xc] ss:$16 sps:$4 sm:$0xff]   ;;  %v1072_v4 = vmov 0   ;;  %v583_v39 = vlaneseq  ;;  %p860_p5 = scmp.ne.s32.totalorder %s1129_s28, 3 }
  0x17   : > { %524 = vmatprep.mubr.bf16.mxu0 %v1072_v4  ;;  %565 = vmatprep.mubr.bf16.mxu1 %v1072_v4  ;;  %v936_v5 = vld [vmem:[%s1326_s3] ss:$16 sps:$4 sm:$0xff]   ;;  %v937_v6 = vld [vmem:[%s1326_s3 + $0x8] ss:$16 sps:$4 sm:$0xff]   ;;  %v938_v7 = vld [vmem:[%s1326_s3 + $0x24] ss:$16 sps:$4 sm:$0xff]  }
  0x18   : > { %492 = vmatprep.subr.bf16.mxu0 %v932_v2  ;;  %533 = vmatprep.subr.bf16.mxu1 %v934_v3  ;;  %v940_v8 = vld [vmem:[%s1326_s3 + $0x2c] ss:$16 sps:$4 sm:$0xff]   ;;  %v942_v9 = vld [vmem:[%s1326_s3 + $0x20] ss:$16 sps:$4 sm:$0xff]   ;;  %v943_v10 = vld [vmem:[%s1326_s3 + $0x28] ss:$16 sps:$4 sm:$0xff]  }
  0x19   : > { %493 = vmatpush1.bf16.msra.mxu0 %v936_v5  ;;  %534 = vmatpush1.bf16.msra.mxu1 %v937_v6  ;;  %v944_v11 = vld [vmem:[%s1326_s3 + $0x44] ss:$16 sps:$4 sm:$0xff]   ;;  %v946_v12 = vld [vmem:[%s1326_s3 + $0x4c] ss:$16 sps:$4 sm:$0xff]   ;;  %v948_v13 = vld [vmem:[%s1326_s3 + $0x40] ss:$16 sps:$4 sm:$0xff]  }
  0x1a   : > { %494 = vmatprep.subr.bf16.mxu0 %v938_v7  ;;  %535 = vmatprep.subr.bf16.mxu1 %v940_v8  ;;  %v949_v14 = vld [vmem:[%s1326_s3 + $0x48] ss:$16 sps:$4 sm:$0xff]   ;;  %v950_v15 = vld [vmem:[%s1326_s3 + $0x64] ss:$16 sps:$4 sm:$0xff]   ;;  %v952_v16 = vld [vmem:[%s1326_s3 + $0x6c] ss:$16 sps:$4 sm:$0xff]  }
  0x1b   : > { %v954_v17 = vld [vmem:[%s1326_s3 + $0x60] ss:$16 sps:$4 sm:$0xff]   ;;  %v955_v18 = vld [vmem:[%s1326_s3 + $0x68] ss:$16 sps:$4 sm:$0xff]   ;;  %v956_v19 = vld [vmem:[%s1326_s3 + $0x84] ss:$16 sps:$4 sm:$0xff]  }
  0x1c   : > { %v958_v20 = vld [vmem:[%s1326_s3 + $0x8c] ss:$16 sps:$4 sm:$0xff]   ;;  %v960_v21 = vld [vmem:[%s1326_s3 + $0x80] ss:$16 sps:$4 sm:$0xff]   ;;  %v961_v22 = vld [vmem:[%s1326_s3 + $0x88] ss:$16 sps:$4 sm:$0xff]  }
  0x1d   : > { %495 = vmatpush1.bf16.msra.mxu0 %v942_v9  ;;  %536 = vmatpush1.bf16.msra.mxu1 %v943_v10  ;;  %v962_v23 = vld [vmem:[%s1326_s3 + $0xa4] ss:$16 sps:$4 sm:$0xff]   ;;  %v964_v24 = vld [vmem:[%s1326_s3 + $0xac] ss:$16 sps:$4 sm:$0xff]   ;;  %v966_v25 = vld [vmem:[%s1326_s3 + $0xa0] ss:$16 sps:$4 sm:$0xff]  }
  0x1e   : > { %496 = vmatprep.subr.bf16.mxu0 %v944_v11  ;;  %537 = vmatprep.subr.bf16.mxu1 %v946_v12  ;;  %v967_v26 = vld [vmem:[%s1326_s3 + $0xa8] ss:$16 sps:$4 sm:$0xff]   ;;  %v968_v27 = vld [vmem:[%s1326_s3 + $0xc4] ss:$16 sps:$4 sm:$0xff]   ;;  %v970_v28 = vld [vmem:[%s1326_s3 + $0xcc] ss:$16 sps:$4 sm:$0xff]  }
  0x1f   : > { %v972_v29 = vld [vmem:[%s1326_s3 + $0xc0] ss:$16 sps:$4 sm:$0xff]   ;;  %v973_v30 = vld [vmem:[%s1326_s3 + $0xc8] ss:$16 sps:$4 sm:$0xff]   ;;  %v974_v31 = vld [vmem:[%s1326_s3 + $0xe4] ss:$16 sps:$4 sm:$0xff]  }
  0x20   : > { %v976_v32 = vld [vmem:[%s1326_s3 + $0xec] ss:$16 sps:$4 sm:$0xff]   ;;  %v978_v33 = vld [vmem:[%s1326_s3 + $0xe0] ss:$16 sps:$4 sm:$0xff]   ;;  %v979_v34 = vld [vmem:[%s1326_s3 + $0xe8] ss:$16 sps:$4 sm:$0xff]  }
  0x21   : > { %497 = vmatpush1.bf16.msra.mxu0 %v948_v13  ;;  %538 = vmatpush1.bf16.msra.mxu1 %v949_v14  ;;  %v298_v35 = vld [vmem:[#allocation2] sm:$0x3]  ;;  %v1073_v37 = vmov 1983009808   ;;  %v584_v41 = vshrl.u32 %v583_v39, 7  ;;  %vm1075_vm0 = vmmov (!%p860_p5), 0  }
  0x22   : > { %498 = vmatprep.subr.bf16.mxu0 %v950_v15  ;;  %539 = vmatprep.subr.bf16.mxu1 %v952_v16  ;;  %v299_v36 = vpack.c.bf16 %v298_v35, %v298_v35  ;;  %v581_v38 = vunpack.c.l.s4 %v1073_v37  ;;  %v297_v55 = vld [vmem:[%s1138_s11] sm:$0xff] }
  0x23   : > { %v620_v9 = vld [vmem:[#allocation3] sm:$0x3] }
  0x24   : > { %v582_v40 = vunpack.c.0.s8 %v581_v38 }
  0x25   : > { %499 = vmatpush1.bf16.msra.mxu0 %v954_v17  ;;  %540 = vmatpush1.bf16.msra.mxu1 %v955_v18 }
  0x26   : > { %500 = vmatprep.subr.bf16.mxu0 %v956_v19  ;;  %541 = vmatprep.subr.bf16.mxu1 %v958_v20  ;;  %v585_v44 = vsub.s32 %v582_v40, %v584_v41  ;;  %v996_v19 = vld [vmem:[%s1327_s4] sm:$0xff] (!%p860_p5)   ;;  %v1074_v20 = vmov (!%p860_p5), 0.0  }
  0x29   : > { %501 = vmatpush1.bf16.msra.mxu0 %v960_v21  ;;  %542 = vmatpush1.bf16.msra.mxu1 %v961_v22  ;;  %v997_v21 = vld [vmem:[%s1327_s4 + $0x8] sm:$0xff] (!%p860_p5)   ;;  %v998_v22 = vld [vmem:[%s1327_s4 + $0x10] sm:$0xff] (!%p860_p5)  }
  0x2a   : > { %502 = vmatprep.subr.bf16.mxu0 %v962_v23  ;;  %543 = vmatprep.subr.bf16.mxu1 %v964_v24  ;;  %v999_v23 = vld [vmem:[%s1327_s4 + $0x18] sm:$0xff] (!%p860_p5)   ;;  %v1000_v24 = vld [vmem:[%s1327_s4 + $0x20] sm:$0xff] (!%p860_p5)  }
  0x2d   : > { %503 = vmatpush1.bf16.msra.mxu0 %v966_v25  ;;  %544 = vmatpush1.bf16.msra.mxu1 %v967_v26  ;;  %v1001_v25 = vld [vmem:[%s1327_s4 + $0x28] sm:$0xff] (!%p860_p5)   ;;  %v1002_v26 = vld [vmem:[%s1327_s4 + $0x30] sm:$0xff] (!%p860_p5)  }
  0x2e   : > { %504 = vmatprep.subr.bf16.mxu0 %v968_v27  ;;  %545 = vmatprep.subr.bf16.mxu1 %v970_v28  ;;  %v1003_v27 = vld [vmem:[%s1327_s4 + $0x38] sm:$0xff] (!%p860_p5)  }
  0x31   : > { %505 = vmatpush1.bf16.msra.mxu0 %v972_v29  ;;  %546 = vmatpush1.bf16.msra.mxu1 %v973_v30  ;;  %v861_v29 = vld [vmem:[%s1328_s5] ss:$0 sm:$0xff] (!%p860_p5) }
  0x32   : > { %506 = vmatprep.subr.bf16.mxu0 %v974_v31  ;;  %547 = vmatprep.subr.bf16.mxu1 %v976_v32 }
  0x35   : > { %507 = vmatpush1.bf16.msra.mxu0 %v978_v33  ;;  %548 = vmatpush1.bf16.msra.mxu1 %v979_v34 }
  0x36   : > { %886 = vmatprep.subr.bf16.mxu0 (!%p860_p5), %v1074_v20 }
  0x38   : > { %525 = vmatmul.mubr.bf16.vlgmr.msra.gmra.mrb[0].mxu0 %v299_v36  ;;  %566 = vmatmul.mubr.bf16.vlgmr.msra.gmra.mrb[0].mxu1 %v299_v36 }
  0x39   : > { %887 = vmatpush3.bf16.msra.mxu0 (!%p860_p5), %v996_v19  ;;  %902 = vmatprep.mubr.msk.bf16.mxu0 (!%p860_p5), %vm1075_vm0, %v1074_v20 }
  0x3a   : > { %888 = vmatprep.subr.bf16.mxu0 (!%p860_p5), %v1074_v20 }
  0x3d   : > { %889 = vmatpush3.bf16.msra.mxu0 (!%p860_p5), %v997_v21 }
  0x3e   : > { %890 = vmatprep.subr.bf16.mxu0 (!%p860_p5), %v1074_v20 }
  0x41   : > { %891 = vmatpush3.bf16.msra.mxu0 (!%p860_p5), %v998_v22 }
  0x42   : > { %892 = vmatprep.subr.bf16.mxu0 (!%p860_p5), %v1074_v20 }
  0x45   : > { %893 = vmatpush3.bf16.msra.mxu0 (!%p860_p5), %v999_v23 }
  0x46   : > { %894 = vmatprep.subr.bf16.mxu0 (!%p860_p5), %v1074_v20 }
  0x49   : > { %895 = vmatpush3.bf16.msra.mxu0 (!%p860_p5), %v1000_v24 }
  0x4a   : > { %896 = vmatprep.subr.bf16.mxu0 (!%p860_p5), %v1074_v20 }
  0x4d   : > { %897 = vmatpush3.bf16.msra.mxu0 (!%p860_p5), %v1001_v25 }
  0x4e   : > { %898 = vmatprep.subr.bf16.mxu0 (!%p860_p5), %v1074_v20 }
  0x51   : > { %899 = vmatpush3.bf16.msra.mxu0 (!%p860_p5), %v1002_v26 }
  0x52   : > { %900 = vmatprep.subr.bf16.mxu0 (!%p860_p5), %v1074_v20 }
  0x55   : > { %901 = vmatpush3.bf16.msra.mxu0 (!%p860_p5), %v1003_v27 }
 0x10b   : > { %v526_v42 = vpop.f32.mrb[0].mxu0  ;;  %v567_v43 = vpop.f32.mrb[0].mxu1 }
 0x10c   : > { %v528_v45 = vpop.f32.mrb[1].mxu0  ;;  %v569_v46 = vpop.f32.mrb[1].mxu1 }
 0x10d   : > { %v578_v47 = vcombine.low %v526_v42, %v528_v45  ;;  %v579_v48 = vcombine.low %v567_v43, %v569_v46  ;;  %v530_v49 = vpop.f32.mrb[2].mxu0  ;;  %v571_v50 = vpop.f32.mrb[2].mxu1 }
 0x10e   : > { %v531_v51 = vpop.f32.mrb[3].mxu0  ;;  %v572_v52 = vpop.f32.mrb[3].mxu1 }
 0x10f   : > { %v586_v53 = vrot.slane %v578_v47, %v585_v44  ;;  %v593_v54 = vrot.slane %v579_v48, %v585_v44 }
 0x111   : > { %v594_v56 = vcombine.low %v586_v53, %v593_v54 }
 0x113   : > { %v596_v57 = vadd.f32 %v594_v56, %v297_v55 }
 0x115   : > { %v597_v58 = vsub.f32 0.0, %v596_v57  ;;  %v603_v59 = vrot.slane %v596_v57, 2  ;;  %v613_v63 = vrot.slane %v596_v57, 6  ;;  %v610_v3 = vrot.slane %v596_v57, 4 }
 0x117   : > { %v598_v60 = vmul.f32 1.442695, %v597_v58  ;;  %v605_v61 = vsub.f32 0.0, %v603_v59  ;;  %v615_v0 = vsub.f32 0.0, %v613_v63 }
 0x119   : > { %980 = vpow2.f32 %v598_v60  ;;  %v606_v62 = vmul.f32 1.442695, %v605_v61  ;;  %v616_v1 = vmul.f32 1.442695, %v615_v0 }
 0x11b   : > { %982 = vpow2.f32 %v606_v62 }
 0x11c   : > { %984 = vpow2.f32 %v616_v1 }
 0x123   : > { %v981_v2 = vpop.eup %980 }
 0x124   : > { %v600_v4 = vadd.f32 1.0, %v981_v2 }
 0x125   : > { %v983_v5 = vpop.eup %982 }
 0x126   : > { %986 = vrcp.f32 %v600_v4  ;;  %v608_v6 = vadd.f32 1.0, %v983_v5  ;;  %v985_v7 = vpop.eup %984 }
 0x127   : > { %988 = vtanh.f32 %v610_v3  ;;  %v618_v12 = vadd.f32 1.0, %v985_v7 }
 0x128   : > { %990 = vrcp.f32 %v608_v6 }
 0x129   : > { %992 = vrcp.f32 %v618_v12 }
 0x130   : > { %v987_v8 = vpop.eup %986 }
 0x131   : > { %v989_v10 = vpop.eup %988 }
 0x132   : > { %v991_v11 = vpop.eup %990  ;;  %v622_v14 = vmul.f32 %v989_v10, %v987_v8 }
 0x133   : > { %v621_v13 = vmul.f32 %v991_v11, %v620_v9  ;;  %v993_v16 = vpop.eup %992 }
 0x135   : > { %v623_v15 = vadd.f32 %v622_v14, %v621_v13 }
 0x137   : > { %994 = vtanh.f32 %v623_v15  ;;  %626 = vst [vmem:[#allocation3] sm:$0x3] %v623_v15  ;;  %633 = vst [vmem:[#allocation6] sm:$0x3] (!%p860_p5), %v623_v15 }
 0x13e   : > { %631 = sbr.rel (%p860_p5) target bundleno = 541 (0x21d), region = 52 }
 0x141   : > { %v995_v17 = vpop.eup %994 }
 0x142   : > { %v625_v18 = vmul.f32 %v995_v17, %v993_v16 }
 0x144   : > { %627 = vst [vmem:[#allocation2] sm:$0x3] %v625_v18  ;;  %632 = vst [vmem:[#allocation4] sm:$0x3] (!%p860_p5), %v625_v18  ;;  %v634_v28 = vpack.c.bf16 (!%p860_p5), %v625_v18, %v625_v18 }
 0x146   : > { %903 = vmatmul.mubr.bf16.vlgmr.msra.gmra.mrb[0].mxu0 %v634_v28 }
 0x219   : > { %v740_v30 = vpop.f32.mrb[0].mxu0 }
 0x21a   : > { %v741_v31 = vadd.f32 %v861_v29, %v740_v30  ;;  %v904_v32 = vpop.f32.mrb[1].mxu0 }
 0x21b   : > { %v743_v33 = vpop.f32.mrb[2].mxu0 }
 0x21c   : > { %746 = vst [vmem:[%s1329_s6] sm:$0x3] %v741_v31  ;;  %v905_v34 = vpop.f32.mrb[3].mxu0 }
 0x21d PF: > { %p914_p6 = scmp.eq.s32.totalorder %s1129_s28, 3  ;;  %s1076_s11 = smov [#allocation4]  }
 0x21e   : > { %s757_s23 = sshll.u32 %s1076_s11, 4  ;;  %s1077_s24 = smov [#allocation6]   ;;  %s758_s23 = int_to_ptr.vmem [resolvable:$true] %s757_s23 }
 0x21f   : > { %s768_s25 = sshll.u32 %s1077_s24, 4  ;;  %s1004_s26 = scalar_lea.vmem %s758_s23, 32  ;;  %s769_s25 = int_to_ptr.vmem [resolvable:$true] %s768_s25 }
 0x220   : > { %p1005_p7 = scmp.ne.s32.totalorder %s758_s23, %s1004_s26  ;;  %p1011_p10 = scmp.lt.s32.totalorder %s758_s23, %s758_s23 }
 0x221   : > { %p1012_p11 = scmp.lt.s32.totalorder %s1004_s26, %s1004_s26 }
 0x222   : > { %p1006_p8 = pnand %p1005_p7, %p914_p6 }
 0x223   : > { %p1013_p12 = por %p1012_p11, %p1011_p10 }
 0x224   : > { %p1007_p9 = pneg %p1006_p8 }
 0x226   : > { %p1014_p13 = pnand %p1013_p12, %p1007_p9 }
 0x228   : > { %1017 = shalt.err (!%p1014_p13)
}
 0x229   : > { %s1018_s9 = scalar_lea.hbm %s1330_s7, 32 }
 0x22a   : > { %p1019_p0 = scmp.ne.s32.totalorder %s1330_s7, %s1018_s9  ;;  %p1024_p3 = scmp.lt.u32.totalorder %s1018_s9, %s1330_s7 }
 0x22c   : > { %p1020_p1 = pnand %p1019_p0, %p914_p6 }
 0x22e   : > { %p1021_p2 = pneg %p1020_p1 }
 0x230   : > { %p1026_p4 = pnand %p1024_p3, %p1021_p2 }
 0x232   : > { %1029 = shalt.err (!%p1026_p4)
}
 0x233   : > { %907 = dma.vmem_to_hbm [thread:$0]  (%p914_p6), %s758_s23, 32, %s1330_s7, [#allocation5]  }
 0x234   : > { %s1030_s17 = scalar_lea.vmem %s769_s25, 32  ;;  %p1037_p9 = scmp.lt.s32.totalorder %s769_s25, %s769_s25 }
 0x235   : > { %p1031_p5 = scmp.ne.s32.totalorder %s769_s25, %s1030_s17  ;;  %p1038_p10 = scmp.lt.s32.totalorder %s1030_s17, %s1030_s17 }
 0x237   : > { %p1032_p7 = pnand %p1031_p5, %p914_p6  ;;  %p1039_p11 = por %p1038_p10, %p1037_p9 }
 0x239   : > { %p1033_p8 = pneg %p1032_p7 }
 0x23b   : > { %p1040_p12 = pnand %p1039_p11, %p1033_p8 }
 0x23d   : > { %1043 = shalt.err (!%p1040_p12)
}
 0x23e   : > { %s1044_s20 = scalar_lea.hbm %s1331_s8, 32 }
 0x23f   : > { %p1045_p13 = scmp.ne.s32.totalorder %s1331_s8, %s1044_s20  ;;  %p1050_p2 = scmp.lt.u32.totalorder %s1044_s20, %s1331_s8 }
 0x241   : > { %p1046_p0 = pnand %p1045_p13, %p914_p6 }
 0x243   : > { %p1047_p1 = pneg %p1046_p0 }
 0x245   : > { %p1052_p3 = pnand %p1050_p2, %p1047_p1 }
 0x247   : > { %1055 = shalt.err (!%p1052_p3)
}
 0x248   : > { %909 = dma.vmem_to_hbm [thread:$0]  (%p914_p6), %s769_s25, 32, %s1331_s8, [#allocation7]  }
 0x249   : > { %1061 = dma.done.wait (%p914_p6), [#allocation5], 32  }
 0x24a   : > { %1063 = vsyncadd (%p914_p6), [#allocation5], 4294967264 }
 0x24b   : > { %1065 = dma.done.wait (%p914_p6), [#allocation7], 32  }
 0x24c   : > { %1067 = vsyncadd (%p914_p6), [#allocation7], 4294967264 }
 0x24d PF: > { %s21_s27 = sadd.s32 1, %s1070_s27  }
 0x24e   : > { %p18_p4 = scmp.ge.s32.totalorder %s21_s27, 6  }
 0x250   :  { %20 = sbr.rel (!%p18_p4) target bundleno = 2 (0x2), region = 95 }
 0x257   :  { %788 = vsyncpa [#allocation5], 1 }
 0x258   :  { %790 = vsyncpa [#allocation5 + $0x1], 1 }
 0x259   :  { %791 = vsyncpa [#allocation7], 1 }

</bundles_post_ra>
